<compile_context>
chip_gen: v6e
topology: v6e:2x2x1
jax: 0.10.0
libtpu: 0.0.40
codegen_flags: <defaults>
</compile_context>

<pallas_src>
import functools

import jax
import jax.numpy as jnp
from jax import lax
from jax.experimental import pallas as pl
from jax.experimental.pallas import tpu as pltpu

EPS = 1e-5
NUM_CLASSES = 3
STEM_CH = 48            # EfficientNet-B4 stem output channels
STEM_PAD = 128          # lane-dense padded stem width
BACKBONE_FEATS = 1792   # EfficientNet-B4 classifier in_features


# ----------------------------------------------------------------------------
# Fused kernel: stem matmul + (folded) BN + SiLU + avg-pool accumulate,
# then (on the last spatial tile of each image) projection + classifier head.
# ----------------------------------------------------------------------------
def fused_kernel(hw,
                 patches_ref, w_stem_ref, b_stem_ref, w_proj_ref,
                 w1_ref, b1_ref, w2_ref, b2_ref, w3_ref, b3_ref,
                 w4_ref, b4_ref,
                 out_ref, pooled_ref):
    t = pl.program_id(1)

    # ---- stem: (tile, 27) bf16 x (27, 128) bf16 -> f32, folded BN bias, SiLU
    x = patches_ref[0]                                      # (tile, 27) bf16
    y = jnp.dot(x, w_stem_ref[...], preferred_element_type=jnp.float32)
    y = y + b_stem_ref[...]                                 # folded BN
    y = y * jax.nn.sigmoid(y)                               # SiLU (f32 on VPU/EUP)

    @pl.when(t == 0)
    def _():
        pooled_ref[...] = jnp.zeros_like(pooled_ref)

    # per-tile partial sum for the global average pool
    pooled_ref[...] += jnp.sum(y, axis=0, keepdims=True)    # (1, 128)

    # ---- head: only on the last spatial tile of this image
    @pl.when(t == pl.num_programs(1) - 1)
    def _():
        feats = (pooled_ref[...] * (1.0 / float(hw))).astype(jnp.bfloat16)
        # backbone-proxy projection (padded 128 -> 1792) + SiLU
        h = jnp.dot(feats, w_proj_ref[...], preferred_element_type=jnp.float32)
        h = h * jax.nn.sigmoid(h)
        # Dropout layers are identity in eval mode; BN folded into the Linears.
        x1 = jnp.maximum(
            jnp.dot(h.astype(jnp.bfloat16), w1_ref[...],
                    preferred_element_type=jnp.float32) + b1_ref[...], 0.0)
        x2 = jnp.maximum(
            jnp.dot(x1.astype(jnp.bfloat16), w2_ref[...],
                    preferred_element_type=jnp.float32) + b2_ref[...], 0.0)
        x3 = jnp.maximum(
            jnp.dot(x2.astype(jnp.bfloat16), w3_ref[...],
                    preferred_element_type=jnp.float32) + b3_ref[...], 0.0)
        logits = jnp.dot(x3.astype(jnp.bfloat16), w4_ref[...],
                         preferred_element_type=jnp.float32) + b4_ref[...]
        out_ref[0] = logits                                  # (1, 128), lane-dense


# ----------------------------------------------------------------------------
# Parameter construction (deterministic, synthetic, PyTorch-like layout)
# ----------------------------------------------------------------------------
def init_params(key):
    ks = jax.random.split(key, 8)

    def lin(k, fan_in, fan_out):
        scale = 1.0 / jnp.sqrt(jnp.float32(fan_in))
        w = jax.random.normal(k, (fan_in, fan_out), jnp.float32) * scale
        b = jnp.zeros((1, fan_out), jnp.float32)
        return w, b

    def bn(n):
        return (jnp.ones((1, n), jnp.float32),    # gamma
                jnp.zeros((1, n), jnp.float32),   # beta
                jnp.zeros((1, n), jnp.float32),   # running_mean
                jnp.ones((1, n), jnp.float32))    # running_var

    params = {}
    # stem conv weight as (kh*kw*cin, cout) = (27, 48); conv has no bias.
    # TODO(synk): real PyTorch stem weights (cout,cin,kh,kw) would need a
    # permute/flatten to this (kh,kw,c)-major im2col order.
    params["w_stem"] = jax.random.normal(ks[0], (27, STEM_CH), jnp.float32) \
        * (1.0 / jnp.sqrt(27.0))
    params["bn_stem"] = bn(STEM_CH)
    # backbone proxy projection 48 -> 1792
    params["w_proj"] = jax.random.normal(ks[1], (STEM_CH, BACKBONE_FEATS),
                                         jnp.float32) * (1.0 / jnp.sqrt(48.0))
    # classifier head
    params["w1"], params["b1"] = lin(ks[2], BACKBONE_FEATS, 512)
    params["bn1"] = bn(512)
    params["w2"], params["b2"] = lin(ks[3], 512, 256)
    params["bn2"] = bn(256)
    params["w3"], params["b3"] = lin(ks[4], 256, 128)
    params["bn3"] = bn(128)
    params["w4"], params["b4"] = lin(ks[5], 128, NUM_CLASSES)
    return params


def _pad_cols(a, n):
    return jnp.pad(a, ((0, 0), (0, n - a.shape[1])))


def _pad_rows(a, n):
    return jnp.pad(a, ((0, n - a.shape[0]), (0, 0)))


def fold_params(params):
    """Fold eval-mode BN into the preceding conv/linear; pad for lane density;
    cast matmul weights to bf16 (f32 accumulation is kept in-kernel)."""
    def bn_fold(w, b, bn):
        g, be, m, v = bn
        scale = g * lax.rsqrt(v + EPS)            # (1, n)
        return w * scale, (b - m) * scale + be

    kp = {}
    # stem conv (no bias) + BN2d
    g, be, m, v = params["bn_stem"]
    scale = g * lax.rsqrt(v + EPS)                # (1, 48)
    w_stem = params["w_stem"] * scale             # (27, 48)
    b_stem = be - m * scale                       # (1, 48)
    kp["w_stem"] = _pad_cols(w_stem, STEM_PAD).astype(jnp.bfloat16)   # (27,128)
    kp["b_stem"] = _pad_cols(b_stem, STEM_PAD)                        # (1,128) f32

    # projection: zero-pad input rows 48 -> 128 (pooled features are 128-wide)
    kp["w_proj"] = _pad_rows(params["w_proj"], STEM_PAD).astype(jnp.bfloat16)

    # head: Linear + BN folded
    w1, b1 = bn_fold(params["w1"], params["b1"], params["bn1"])
    kp["w1"], kp["b1"] = w1.astype(jnp.bfloat16), b1
    w2, b2 = bn_fold(params["w2"], params["b2"], params["bn2"])
    kp["w2"], kp["b2"] = w2.astype(jnp.bfloat16), b2
    w3, b3 = bn_fold(params["w3"], params["b3"], params["bn3"])
    kp["w3"], kp["b3"] = w3.astype(jnp.bfloat16), b3
    # final linear: pad output lanes 3 -> 128 (lane-dense store, sliced later)
    kp["w4"] = _pad_cols(params["w4"], 128).astype(jnp.bfloat16)
    kp["b4"] = _pad_cols(params["b4"], 128)
    return kp


# ----------------------------------------------------------------------------
# Forward wrapper
# ----------------------------------------------------------------------------
def _im2col_3x3_s2(x_nhwc):
    """3x3 stride-2 pad-1 patches, ordered (kh, kw, c); shape (B, Ho*Wo, 27)."""
    b, h, w, c = x_nhwc.shape
    ho, wo = (h + 2 - 3) // 2 + 1, (w + 2 - 3) // 2 + 1
    xp = jnp.pad(x_nhwc, ((0, 0), (1, 1), (1, 1), (0, 0)))
    cols = []
    for kh in range(3):
        for kw in range(3):
            cols.append(xp[:, kh:kh + 2 * ho:2, kw:kw + 2 * wo:2, :])
    patches = jnp.concatenate(cols, axis=-1)               # (B, Ho, Wo, 27)
    return patches.reshape(b, ho * wo, 9 * c).astype(jnp.bfloat16), ho * wo


def _spatial_tile(hw):
    """Biggest tile (multiple of 8) that divides HW and leaves >1 grid step."""
    for t in (2048, 1024, 512, 256, 128):
        if hw % t == 0 and hw // t > 1:
            return t
    return hw


@jax.jit
def osteoporosis_forward(x_nchw, kparams):
    b = x_nchw.shape[0]
    x_nhwc = jnp.transpose(x_nchw, (0, 2, 3, 1)).astype(jnp.bfloat16)
    patches, hw = _im2col_3x3_s2(x_nhwc)                   # (B, HW, 27) bf16
    tile = _spatial_tile(hw)
    n_tiles = hw // tile

    const2d = lambda i, t: (0, 0)
    out = pl.pallas_call(
        functools.partial(fused_kernel, hw),
        out_shape=jax.ShapeDtypeStruct((b, 1, 128), jnp.float32),
        grid_spec=pltpu.PrefetchScalarGridSpec(
            num_scalar_prefetch=0,
            grid=(b, n_tiles),
            in_specs=[
                pl.BlockSpec((1, tile, 27), lambda i, t: (i, t, 0)),   # patches
                pl.BlockSpec((27, STEM_PAD), const2d),                 # w_stem
                pl.BlockSpec((1, STEM_PAD), const2d),                  # b_stem
                pl.BlockSpec((STEM_PAD, BACKBONE_FEATS), const2d),     # w_proj
                pl.BlockSpec((BACKBONE_FEATS, 512), const2d),          # w1
                pl.BlockSpec((1, 512), const2d),                       # b1
                pl.BlockSpec((512, 256), const2d),                     # w2
                pl.BlockSpec((1, 256), const2d),                       # b2
                pl.BlockSpec((256, 128), const2d),                     # w3
                pl.BlockSpec((1, 128), const2d),                       # b3
                pl.BlockSpec((128, 128), const2d),                     # w4
                pl.BlockSpec((1, 128), const2d),                       # b4
            ],
            out_specs=pl.BlockSpec((1, 1, 128), lambda i, t: (i, 0, 0)),
            scratch_shapes=[pltpu.VMEM((1, 128), jnp.float32)],        # pooled sum
        ),
        compiler_params=pltpu.CompilerParams(
            dimension_semantics=("parallel", "arbitrary")),
    )(patches,
      kparams["w_stem"], kparams["b_stem"], kparams["w_proj"],
      kparams["w1"], kparams["b1"], kparams["w2"], kparams["b2"],
      kparams["w3"], kparams["b3"], kparams["w4"], kparams["b4"])
    return out[:, 0, :NUM_CLASSES]


if __name__ == "__main__":
    key = jax.random.PRNGKey(0)
    k_in, k_par = jax.random.split(key)
    # small image consistent with an NCHW conv backbone input
    x = jax.random.normal(k_in, (2, 3, 32, 32), jnp.float32)
    params = init_params(k_par)
    kparams = fold_params(params)

    logits = osteoporosis_forward(x, kparams)
    jax.block_until_ready(logits)
    assert logits.shape == (2, NUM_CLASSES)
    assert jnp.all(jnp.isfinite(logits))
    print("KERNEL_OK")
</pallas_src>

<mosaic_0001>
module attributes {stable_mosaic.version = 11 : i64} {
  func.func @fused_kernel(%arg0: i32, %arg1: i32, %arg2: memref<1x128x27xbf16, #tpu.memory_space<vmem>>, %arg3: memref<27x128xbf16, #tpu.memory_space<vmem>>, %arg4: memref<1x128xf32, #tpu.memory_space<vmem>>, %arg5: memref<128x1792xbf16, #tpu.memory_space<vmem>>, %arg6: memref<1792x512xbf16, #tpu.memory_space<vmem>>, %arg7: memref<1x512xf32, #tpu.memory_space<vmem>>, %arg8: memref<512x256xbf16, #tpu.memory_space<vmem>>, %arg9: memref<1x256xf32, #tpu.memory_space<vmem>>, %arg10: memref<256x128xbf16, #tpu.memory_space<vmem>>, %arg11: memref<1x128xf32, #tpu.memory_space<vmem>>, %arg12: memref<128x128xbf16, #tpu.memory_space<vmem>>, %arg13: memref<1x128xf32, #tpu.memory_space<vmem>>, %arg14: memref<1x1x128xf32, #tpu.memory_space<vmem>>, %arg15: memref<1x128xf32, #tpu.memory_space<vmem>>) attributes {dimension_semantics = [#tpu.dimension_semantics<parallel>, #tpu.dimension_semantics<arbitrary>], iteration_bounds = array<i64: 2, 2>, scalar_prefetch = 0 : i64, scratch_operands = 1 : i64, tpu.core_type = #tpu.core_type<tc>, window_params = [{transform_indices = @transform_0, window_bounds = array<i64: 1, 128, 27>}, {pipeline_mode = #tpu.pipeline_mode<synchronous>, transform_indices = @transform_1, window_bounds = array<i64: 27, 128>}, {pipeline_mode = #tpu.pipeline_mode<synchronous>, transform_indices = @transform_2, window_bounds = array<i64: 1, 128>}, {pipeline_mode = #tpu.pipeline_mode<synchronous>, transform_indices = @transform_3, window_bounds = array<i64: 128, 1792>}, {pipeline_mode = #tpu.pipeline_mode<synchronous>, transform_indices = @transform_4, window_bounds = array<i64: 1792, 512>}, {pipeline_mode = #tpu.pipeline_mode<synchronous>, transform_indices = @transform_5, window_bounds = array<i64: 1, 512>}, {pipeline_mode = #tpu.pipeline_mode<synchronous>, transform_indices = @transform_6, window_bounds = array<i64: 512, 256>}, {pipeline_mode = #tpu.pipeline_mode<synchronous>, transform_indices = @transform_7, window_bounds = array<i64: 1, 256>}, {pipeline_mode = #tpu.pipeline_mode<synchronous>, transform_indices = @transform_8, window_bounds = array<i64: 256, 128>}, {pipeline_mode = #tpu.pipeline_mode<synchronous>, transform_indices = @transform_9, window_bounds = array<i64: 1, 128>}, {pipeline_mode = #tpu.pipeline_mode<synchronous>, transform_indices = @transform_10, window_bounds = array<i64: 128, 128>}, {pipeline_mode = #tpu.pipeline_mode<synchronous>, transform_indices = @transform_11, window_bounds = array<i64: 1, 128>}, {transform_indices = @transform_12, window_bounds = array<i64: 1, 1, 128>}]} {
    %c0 = arith.constant 0 : index
    %c0_0 = arith.constant 0 : index
    %c0_1 = arith.constant 0 : index
    %0 = vector.load %arg2[%c0, %c0_0, %c0_1] : memref<1x128x27xbf16, #tpu.memory_space<vmem>>, vector<1x128x27xbf16>
    %1 = vector.shape_cast %0 : vector<1x128x27xbf16> to vector<128x27xbf16>
    %c0_2 = arith.constant 0 : index
    %c0_3 = arith.constant 0 : index
    %2 = vector.load %arg3[%c0_2, %c0_3] : memref<27x128xbf16, #tpu.memory_space<vmem>>, vector<27x128xbf16>
    %cst = arith.constant dense<0.000000e+00> : vector<128x128xf32>
    %3 = tpu.matmul %1, %2, %cst {dimension_numbers = #tpu.dot_dimension_numbers<[1], [0], [0], [1], [0, 0, 1, 1], [], []>} : vector<128x27xbf16>, vector<27x128xbf16>, vector<128x128xf32> -> vector<128x128xf32>
    %c0_4 = arith.constant 0 : index
    %c0_5 = arith.constant 0 : index
    %4 = vector.load %arg4[%c0_4, %c0_5] : memref<1x128xf32, #tpu.memory_space<vmem>>, vector<1x128xf32>
    %5 = vector.broadcast %4 : vector<1x128xf32> to vector<128x128xf32>
    %6 = arith.addf %3, %5 : vector<128x128xf32>
    %7 = arith.negf %6 : vector<128x128xf32>
    %8 = math.exp %7 : vector<128x128xf32>
    %cst_6 = arith.constant 1.000000e+00 : f32
    %9 = vector.broadcast %cst_6 : f32 to vector<128x128xf32>
    %10 = arith.addf %9, %8 : vector<128x128xf32>
    %11 = arith.divf %9, %10 : vector<128x128xf32>
    %12 = arith.mulf %6, %11 : vector<128x128xf32>
    %c0_i32 = arith.constant 0 : i32
    %13 = arith.cmpi eq, %arg1, %c0_i32 : i32
    %14 = arith.extui %13 : i1 to i32
    %c0_i32_7 = arith.constant 0 : i32
    %15 = arith.cmpi ne, %14, %c0_i32_7 : i32
    scf.if %15 {
      %cst_14 = arith.constant 0.000000e+00 : f32
      %24 = vector.broadcast %cst_14 : f32 to vector<1x128xf32>
      %c0_15 = arith.constant 0 : index
      %c0_16 = arith.constant 0 : index
      %25 = vector.load %arg15[%c0_15, %c0_16] : memref<1x128xf32, #tpu.memory_space<vmem>>, vector<1x128xf32>
      tpu.vector_store %arg15[%c0_15, %c0_16], %24 {strides = array<i32>} : memref<1x128xf32, #tpu.memory_space<vmem>>, vector<1x128xf32>,
    } else {
    }
    %c0_8 = arith.constant 0 : index
    %c0_9 = arith.constant 0 : index
    %16 = vector.load %arg15[%c0_8, %c0_9] : memref<1x128xf32, #tpu.memory_space<vmem>>, vector<1x128xf32>
    %cst_10 = arith.constant dense<0.000000e+00> : vector<128xf32>
    %17 = vector.multi_reduction <add>, %12, %cst_10 [0] : vector<128x128xf32> to vector<128xf32>
    %18 = vector.shape_cast %17 : vector<128xf32> to vector<1x128xf32>
    %19 = arith.addf %16, %18 : vector<1x128xf32>
    %c0_11 = arith.constant 0 : index
    %c0_12 = arith.constant 0 : index
    %20 = vector.load %arg15[%c0_11, %c0_12] : memref<1x128xf32, #tpu.memory_space<vmem>>, vector<1x128xf32>
    tpu.vector_store %arg15[%c0_11, %c0_12], %19 {strides = array<i32>} : memref<1x128xf32, #tpu.memory_space<vmem>>, vector<1x128xf32>,
    %c1_i32 = arith.constant 1 : i32
    %21 = arith.cmpi eq, %arg1, %c1_i32 : i32
    %22 = arith.extui %21 : i1 to i32
    %c0_i32_13 = arith.constant 0 : i32
    %23 = arith.cmpi ne, %22, %c0_i32_13 : i32
    scf.if %23 {
      %c0_14 = arith.constant 0 : index
      %c0_15 = arith.constant 0 : index
      %24 = vector.load %arg15[%c0_14, %c0_15] : memref<1x128xf32, #tpu.memory_space<vmem>>, vector<1x128xf32>
      %cst_16 = arith.constant 3.906250e-03 : f32
      %25 = vector.broadcast %cst_16 : f32 to vector<1x128xf32>
      %26 = arith.mulf %24, %25 : vector<1x128xf32>
      %27 = arith.truncf %26 : vector<1x128xf32> to vector<1x128xbf16>
      %c0_17 = arith.constant 0 : index
      %c0_18 = arith.constant 0 : index
      %28 = vector.load %arg5[%c0_17, %c0_18] : memref<128x1792xbf16, #tpu.memory_space<vmem>>, vector<128x1792xbf16>
      %cst_19 = arith.constant dense<0.000000e+00> : vector<1x1792xf32>
      %29 = tpu.matmul %27, %28, %cst_19 {dimension_numbers = #tpu.dot_dimension_numbers<[1], [0], [0], [1], [0, 0, 1, 1], [], []>} : vector<1x128xbf16>, vector<128x1792xbf16>, vector<1x1792xf32> -> vector<1x1792xf32>
      %30 = arith.negf %29 : vector<1x1792xf32>
      %31 = math.exp %30 : vector<1x1792xf32>
      %cst_20 = arith.constant 1.000000e+00 : f32
      %32 = vector.broadcast %cst_20 : f32 to vector<1x1792xf32>
      %33 = arith.addf %32, %31 : vector<1x1792xf32>
      %34 = arith.divf %32, %33 : vector<1x1792xf32>
      %35 = arith.mulf %29, %34 : vector<1x1792xf32>
      %36 = arith.truncf %35 : vector<1x1792xf32> to vector<1x1792xbf16>
      %c0_21 = arith.constant 0 : index
      %c0_22 = arith.constant 0 : index
      %37 = vector.load %arg6[%c0_21, %c0_22] : memref<1792x512xbf16, #tpu.memory_space<vmem>>, vector<1792x512xbf16>
      %cst_23 = arith.constant dense<0.000000e+00> : vector<1x512xf32>
      %38 = tpu.matmul %36, %37, %cst_23 {dimension_numbers = #tpu.dot_dimension_numbers<[1], [0], [0], [1], [0, 0, 1, 1], [], []>} : vector<1x1792xbf16>, vector<1792x512xbf16>, vector<1x512xf32> -> vector<1x512xf32>
      %c0_24 = arith.constant 0 : index
      %c0_25 = arith.constant 0 : index
      %39 = vector.load %arg7[%c0_24, %c0_25] : memref<1x512xf32, #tpu.memory_space<vmem>>, vector<1x512xf32>
      %40 = arith.addf %38, %39 : vector<1x512xf32>
      %cst_26 = arith.constant 0.000000e+00 : f32
      %41 = vector.broadcast %cst_26 : f32 to vector<1x512xf32>
      %42 = arith.maximumf %40, %41 : vector<1x512xf32>
      %43 = arith.truncf %42 : vector<1x512xf32> to vector<1x512xbf16>
      %c0_27 = arith.constant 0 : index
      %c0_28 = arith.constant 0 : index
      %44 = vector.load %arg8[%c0_27, %c0_28] : memref<512x256xbf16, #tpu.memory_space<vmem>>, vector<512x256xbf16>
      %cst_29 = arith.constant dense<0.000000e+00> : vector<1x256xf32>
      %45 = tpu.matmul %43, %44, %cst_29 {dimension_numbers = #tpu.dot_dimension_numbers<[1], [0], [0], [1], [0, 0, 1, 1], [], []>} : vector<1x512xbf16>, vector<512x256xbf16>, vector<1x256xf32> -> vector<1x256xf32>
      %c0_30 = arith.constant 0 : index
      %c0_31 = arith.constant 0 : index
      %46 = vector.load %arg9[%c0_30, %c0_31] : memref<1x256xf32, #tpu.memory_space<vmem>>, vector<1x256xf32>
      %47 = arith.addf %45, %46 : vector<1x256xf32>
      %cst_32 = arith.constant 0.000000e+00 : f32
      %48 = vector.broadcast %cst_32 : f32 to vector<1x256xf32>
      %49 = arith.maximumf %47, %48 : vector<1x256xf32>
      %50 = arith.truncf %49 : vector<1x256xf32> to vector<1x256xbf16>
      %c0_33 = arith.constant 0 : index
      %c0_34 = arith.constant 0 : index
      %51 = vector.load %arg10[%c0_33, %c0_34] : memref<256x128xbf16, #tpu.memory_space<vmem>>, vector<256x128xbf16>
      %cst_35 = arith.constant dense<0.000000e+00> : vector<1x128xf32>
      %52 = tpu.matmul %50, %51, %cst_35 {dimension_numbers = #tpu.dot_dimension_numbers<[1], [0], [0], [1], [0, 0, 1, 1], [], []>} : vector<1x256xbf16>, vector<256x128xbf16>, vector<1x128xf32> -> vector<1x128xf32>
      %c0_36 = arith.constant 0 : index
      %c0_37 = arith.constant 0 : index
      %53 = vector.load %arg11[%c0_36, %c0_37] : memref<1x128xf32, #tpu.memory_space<vmem>>, vector<1x128xf32>
      %54 = arith.addf %52, %53 : vector<1x128xf32>
      %cst_38 = arith.constant 0.000000e+00 : f32
      %55 = vector.broadcast %cst_38 : f32 to vector<1x128xf32>
      %56 = arith.maximumf %54, %55 : vector<1x128xf32>
      %57 = arith.truncf %56 : vector<1x128xf32> to vector<1x128xbf16>
      %c0_39 = arith.constant 0 : index
      %c0_40 = arith.constant 0 : index
      %58 = vector.load %arg12[%c0_39, %c0_40] : memref<128x128xbf16, #tpu.memory_space<vmem>>, vector<128x128xbf16>
      %cst_41 = arith.constant dense<0.000000e+00> : vector<1x128xf32>
      %59 = tpu.matmul %57, %58, %cst_41 {dimension_numbers = #tpu.dot_dimension_numbers<[1], [0], [0], [1], [0, 0, 1, 1], [], []>} : vector<1x128xbf16>, vector<128x128xbf16>, vector<1x128xf32> -> vector<1x128xf32>
      %c0_42 = arith.constant 0 : index
      %c0_43 = arith.constant 0 : index
      %60 = vector.load %arg13[%c0_42, %c0_43] : memref<1x128xf32, #tpu.memory_space<vmem>>, vector<1x128xf32>
      %61 = arith.addf %59, %60 : vector<1x128xf32>
      %c0_44 = arith.constant 0 : index
      %c0_45 = arith.constant 0 : index
      %c0_46 = arith.constant 0 : index
      %62 = vector.load %arg14[%c0_44, %c0_45, %c0_46] : memref<1x1x128xf32, #tpu.memory_space<vmem>>, vector<1x1x128xf32>
      %63 = vector.shape_cast %62 : vector<1x1x128xf32> to vector<1x128xf32>
      %64 = vector.shape_cast %61 : vector<1x128xf32> to vector<1x1x128xf32>
      tpu.vector_store %arg14[%c0_44, %c0_45, %c0_46], %64 {strides = array<i32>} : memref<1x1x128xf32, #tpu.memory_space<vmem>>, vector<1x1x128xf32>,
    } else {
    }
    return
  }
  func.func @transform_0(%arg0: i32, %arg1: i32) -> (i32, i32, i32) {
    %c0_i32 = arith.constant 0 : i32
    %c0_i32_0 = arith.constant 0 : i32
    return %arg0, %arg1, %c0_i32 : i32, i32, i32
  }
  func.func @transform_1(%arg0: i32, %arg1: i32) -> (i32, i32) {
    %c0_i32 = arith.constant 0 : i32
    %c0_i32_0 = arith.constant 0 : i32
    %c0_i32_1 = arith.constant 0 : i32
    return %c0_i32, %c0_i32_0 : i32, i32
  }
  func.func @transform_2(%arg0: i32, %arg1: i32) -> (i32, i32) {
    %c0_i32 = arith.constant 0 : i32
    %c0_i32_0 = arith.constant 0 : i32
    %c0_i32_1 = arith.constant 0 : i32
    return %c0_i32, %c0_i32_0 : i32, i32
  }
  func.func @transform_3(%arg0: i32, %arg1: i32) -> (i32, i32) {
    %c0_i32 = arith.constant 0 : i32
    %c0_i32_0 = arith.constant 0 : i32
    %c0_i32_1 = arith.constant 0 : i32
    return %c0_i32, %c0_i32_0 : i32, i32
  }
  func.func @transform_4(%arg0: i32, %arg1: i32) -> (i32, i32) {
    %c0_i32 = arith.constant 0 : i32
    %c0_i32_0 = arith.constant 0 : i32
    %c0_i32_1 = arith.constant 0 : i32
    return %c0_i32, %c0_i32_0 : i32, i32
  }
  func.func @transform_5(%arg0: i32, %arg1: i32) -> (i32, i32) {
    %c0_i32 = arith.constant 0 : i32
    %c0_i32_0 = arith.constant 0 : i32
    %c0_i32_1 = arith.constant 0 : i32
    return %c0_i32, %c0_i32_0 : i32, i32
  }
  func.func @transform_6(%arg0: i32, %arg1: i32) -> (i32, i32) {
    %c0_i32 = arith.constant 0 : i32
    %c0_i32_0 = arith.constant 0 : i32
    %c0_i32_1 = arith.constant 0 : i32
    return %c0_i32, %c0_i32_0 : i32, i32
  }
  func.func @transform_7(%arg0: i32, %arg1: i32) -> (i32, i32) {
    %c0_i32 = arith.constant 0 : i32
    %c0_i32_0 = arith.constant 0 : i32
    %c0_i32_1 = arith.constant 0 : i32
    return %c0_i32, %c0_i32_0 : i32, i32
  }
  func.func @transform_8(%arg0: i32, %arg1: i32) -> (i32, i32) {
    %c0_i32 = arith.constant 0 : i32
    %c0_i32_0 = arith.constant 0 : i32
    %c0_i32_1 = arith.constant 0 : i32
    return %c0_i32, %c0_i32_0 : i32, i32
  }
  func.func @transform_9(%arg0: i32, %arg1: i32) -> (i32, i32) {
    %c0_i32 = arith.constant 0 : i32
    %c0_i32_0 = arith.constant 0 : i32
    %c0_i32_1 = arith.constant 0 : i32
    return %c0_i32, %c0_i32_0 : i32, i32
  }
  func.func @transform_10(%arg0: i32, %arg1: i32) -> (i32, i32) {
    %c0_i32 = arith.constant 0 : i32
    %c0_i32_0 = arith.constant 0 : i32
    %c0_i32_1 = arith.constant 0 : i32
    return %c0_i32, %c0_i32_0 : i32, i32
  }
  func.func @transform_11(%arg0: i32, %arg1: i32) -> (i32, i32) {
    %c0_i32 = arith.constant 0 : i32
    %c0_i32_0 = arith.constant 0 : i32
    %c0_i32_1 = arith.constant 0 : i32
    return %c0_i32, %c0_i32_0 : i32, i32
  }
  func.func @transform_12(%arg0: i32, %arg1: i32) -> (i32, i32, i32) {
    %c0_i32 = arith.constant 0 : i32
    %c0_i32_0 = arith.constant 0 : i32
    %c0_i32_1 = arith.constant 0 : i32
    return %arg0, %c0_i32, %c0_i32_0 : i32, i32, i32
  }
}

</mosaic_0001>

<bundles_post_ra>
// kernel: osteoporosis_forward.1
= control target key start
LH: loop header
LB: loop body
LE: loop exit
PB: predicated region body
PF: predicated region fallthrough
CT: control target
= control target key end

     0   :  { %s9611_s0 = inlined_call_operand.vmem [shape: bf16[2,256,27], index: 0, kind: input, shape index: {}]   ;;  %s9612_s1 = inlined_call_operand.hbm [shape: bf16[27,128], index: 1, kind: input, shape index: {}]   ;;  %s9613_s2 = inlined_call_operand.hbm [shape: f32[1,128], index: 2, kind: input, shape index: {}]   ;;  %s9614_s3 = inlined_call_operand.vmem [shape: bf16[128,1792], index: 3, kind: input, shape index: {}]   ;;  %s9615_s4 = inlined_call_operand.hbm [shape: bf16[1792,512], index: 4, kind: input, shape index: {}]   ;;  %s9616_s5 = inlined_call_operand.hbm [shape: f32[1,512], index: 5, kind: input, shape index: {}]   ;;  %s9617_s6 = inlined_call_operand.hbm [shape: bf16[512,256], index: 6, kind: input, shape index: {}]   ;;  %s9618_s7 = inlined_call_operand.hbm [shape: f32[1,256], index: 7, kind: input, shape index: {}]   ;;  %s9619_s8 = inlined_call_operand.hbm [shape: bf16[256,128], index: 8, kind: input, shape index: {}]   ;;  %s9620_s9 = inlined_call_operand.hbm [shape: f32[1,128], index: 9, kind: input, shape index: {}]   ;;  %s9621_s10 = inlined_call_operand.hbm [shape: bf16[128,128], index: 10, kind: input, shape index: {}]   ;;  %s9622_s11 = inlined_call_operand.hbm [shape: f32[1,128], index: 11, kind: input, shape index: {}]   ;;  %s9623_s12 = inlined_call_operand.hbm [shape: f32[2,1,128], index: 12, kind: output, shape index: {}]  }
   0x1   :  { %9637 = sst [smem:[#allocation35_spill]] %s9612_s1 }
   0x2   :  { %9638 = sst [smem:[#allocation36_spill]] %s9613_s2 }
   0x3   :  { %9639 = sst [smem:[#allocation37_spill]] %s9616_s5 }
   0x4   :  { %17 = vsyncpa [#allocation4], 0 }
   0x5   :  { %18 = vsyncpa [#allocation7], 0 }
   0x6   :  { %19 = vsyncpa [#allocation10], 0 }
   0x7   :  { %20 = vsyncpa [#allocation13], 0 }
   0x8   :  { %21 = vsyncpa [#allocation16], 0 }
   0x9   :  { %22 = vsyncpa [#allocation19], 0 }
   0xa   :  { %23 = vsyncpa [#allocation5], 0 }
   0xb   :  { %25 = vsyncpa [#allocation5 + $0x1], 0  ;;  %s8790_s21 = smov 0   ;;  %s8792_s22 = smov 0  }
   0xc   :  { %s8794_s23 = smov 0   ;;  %s8796_s24 = smov 0  }
   0xd   :  { %s8798_s25 = smov 0   ;;  %s8800_s26 = smov 0  }
   0xe   :  { %s8802_s27 = smov 0   ;;  %s8804_s28 = smov 0  }
   0xf LB: > { %9640 = sst [smem:[#allocation28_spill]] %s8681_s23  ;;  %s6236_s29 = sadd.s32 4294967295, %s8701_s28   ;;  %s8701_s28 = sphi %s8804_s28, %s31_s28   ;;  %s8697_s27 = sphi %s8802_s27, %s9668_s27   ;;  %s8693_s26 = sphi %s8800_s26, %s9667_s26   ;;  %s8689_s25 = sphi %s8798_s25, %s9666_s25   ;;  %s8685_s24 = sphi %s8796_s24, %s9672_s24   ;;  %s8681_s23 = sphi %s8794_s23, %s9671_s23   ;;  %s8677_s22 = sphi %s8792_s22, %s9670_s22   ;;  %s8673_s21 = sphi %s8790_s21, %s9669_s21  }
  0x10   : > { %9641 = sst [smem:[#allocation29_spill]] %s8693_s26  ;;  %s6237_s30 = sadd.s32 4294967294, %s8701_s28  }
  0x11   : > { %9642 = sst [smem:[#allocation30_spill]] %s8697_s27  ;;  %s40_s13 = sadd.s32 1, %s8693_s26 }
  0x12   : > { %s43_s14 = sadd.s32 1, %s8697_s27  ;;  %p41_p0 = scmp.ge.s32.totalorder %s40_s13, 2 }
  0x13   : > { %s309_s15 = sadd.s32 1, %s8681_s23  ;;  %p319_p1 = scmp.ne.s32.totalorder %s8681_s23, %s8677_s22 }
  0x14   : > { %p320_p2 = scmp.eq.s32.totalorder %s6236_s29, 3  ;;  %s9674_s13 = smov (%p41_p0, %s40_s13), 0 }
  0x15   : > { %9643 = sst [smem:[#allocation31_spill]] %s9674_s13  ;;  %s9676_s14 = smov (!%p41_p0, %s43_s14), %s8697_s27 }
  0x16   : > { %p8840_p3 = por %p320_p2, %p319_p1  ;;  %p325_p4 = scmp.ne.s32.totalorder %s8677_s22, %s8673_s21 }
  0x17   : > { %p45_p5 = scmp.ge.s32.totalorder %s9676_s14, 2  ;;  %p326_p6 = scmp.eq.s32.totalorder %s6237_s30, 3 }
  0x18   : > { %s9644_s16 = scalar_select %p8840_p3, 1, 0 }
  0x19   : > { %p6238_p7 = scmp.ge.s32.totalorder %s8701_s28, 1  ;;  %p333_p8 = scmp.lt.s32.totalorder %s8701_s28, 5 }
  0x1a   : > { %s9678_s14 = smov (%p45_p5, %s9676_s14), 0  ;;  %p8850_p9 = por %p326_p6, %p325_p4 }
  0x1b   : > { %9645 = sst [smem:[#allocation32_spill]] %s9678_s14  ;;  %p8854_p10 = pnand %p6238_p7, %p333_p8 }
  0x1c   : > { %s9646_s17 = scalar_select %p8850_p9, 1, 0 }
  0x1d   : > { %s9648_s18 = scalar_select %p8854_p10, 1, 0 }
  0x1e   : > { %9647 = sst [smem:[#allocation33_spill]] %s9646_s17  ;;  %s306_s19 = ssub.s32 %s8697_s27, %s9678_s14 }
  0x1f   : > { %p307_p11 = scmp.eq.s32.totalorder %s306_s19, 0  ;;  %p7093_p12 = pneg %p8854_p10 }
  0x20   : > { %p8862_p13 = scmp.eq.s32.totalorder %s6236_s29, 0  ;;  %s8703_s26 = smov [#allocation6]  }
  0x21   : > { %s8867_s30 = scalar_select %p307_p11, %s8681_s23, %s309_s15  }
  0x22   : > { %s9649_s20 = scalar_select %p8862_p13, 1, 0 }
  0x23   : > { %9650 = sst [smem:[#allocation34_spill]] %s8867_s30  ;;  %p8871_p0 = pnand %p8862_p13, %p7093_p12 }
  0x24   : > { %s359_s17 = sshll.u32 %s8703_s26, 4  ;;  %s8704_s14 = smov [#allocation9]   ;;  %s360_s17 = int_to_ptr.vmem [resolvable:$true] %s359_s17 }
  0x25   : > { %s386_s19 = sshll.u32 %s8704_s14, 4  ;;  %p8877_p1 = pneg %p8871_p0  ;;  %s387_s19 = int_to_ptr.vmem [resolvable:$true] %s386_s19 }
  0x26   : > { %s8336_s27 = scalar_lea.vmem %s360_s17, 16  ;;  %s8343_s15 = scalar_lea.vmem %s360_s17, 32 }
  0x27   : > { %p8337_p2 = scmp.ne.s32.totalorder %s360_s17, %s8336_s27  ;;  %p8344_p6 = scmp.lt.s32.totalorder %s360_s17, %s360_s17 }
  0x28   : > { %p8345_p7 = scmp.lt.s32.totalorder %s8343_s15, %s8336_s27 }
  0x29   : > { %p8339_p4 = pnand %p8337_p2, %p8877_p1 }
  0x2a   : > { %p8346_p8 = por %p8345_p7, %p8344_p6 }
  0x2b   : > { %p8340_p5 = pneg %p8339_p4 }
  0x2d   : > { %p8347_p11 = pnand %p8346_p8, %p8340_p5 }
  0x2f   : > { %8350 = shalt.err (!%p8347_p11)
}
  0x30   : > { %s9653_s2 = sld [smem:[#allocation36_spill]]  ;;  %s8362_s30 = scalar_lea.vmem %s387_s19, 64 }
  0x31   : > { %p8363_p12 = scmp.ne.s32.totalorder %s387_s19, %s8362_s30  ;;  %p8370_p4 = scmp.lt.s32.totalorder %s387_s19, %s387_s19 }
  0x32   : > { %p8371_p3 = scmp.lt.s32.totalorder %s8362_s30, %s8362_s30 }
  0x33   : > { %p8365_p9 = pnand %p8363_p12, %p8877_p1 }
  0x34   : > { %p8372_p13 = por %p8371_p3, %p8370_p4 }
  0x35   : > { %p8366_p2 = pneg %p8365_p9 }
  0x36   : > { %7099 = dma.hbm_to_vmem [thread:$0]  (!%p8871_p0), %s9653_s2, 16, %s360_s17, [#allocation7]  }
  0x37   : > { %p8373_p10 = pnand %p8372_p13, %p8366_p2 }
  0x39   : > { %8376 = shalt.err (!%p8373_p10)
}
  0x3a   : > { %s9654_s5 = sld [smem:[#allocation37_spill]]  ;;  %s8705_s26 = smov [#allocation12]  }
  0x3b   : > { %s410_s17 = sshll.u32 %s8705_s26, 4  ;;  %s8706_s14 = smov [#allocation15]   ;;  %s411_s17 = int_to_ptr.vmem [resolvable:$true] %s410_s17 }
  0x3c   : > { %s434_s2 = sshll.u32 %s8706_s14, 4  ;;  %s8388_s23 = scalar_lea.vmem %s411_s17, 32  ;;  %s435_s2 = int_to_ptr.vmem [resolvable:$true] %s434_s2 }
  0x3d   : > { %p8389_p5 = scmp.ne.s32.totalorder %s411_s17, %s8388_s23  ;;  %p8396_p3 = scmp.lt.s32.totalorder %s411_s17, %s411_s17 }
  0x3e   : > { %p8397_p13 = scmp.lt.s32.totalorder %s8388_s23, %s8388_s23 }
  0x3f   : > { %p8391_p9 = pnand %p8389_p5, %p8877_p1 }
  0x40   : > { %7105 = dma.hbm_to_vmem [thread:$0]  (!%p8871_p0), %s9654_s5, 64, %s387_s19, [#allocation10]  }
  0x41   : > { %p8392_p6 = pneg %p8391_p9  ;;  %p8398_p10 = por %p8397_p13, %p8396_p3 }
  0x43   : > { %p8399_p7 = pnand %p8398_p10, %p8392_p6 }
  0x45   : > { %8402 = shalt.err (!%p8399_p7)
}
  0x46   : > { %7111 = dma.hbm_to_vmem [thread:$0]  (!%p8871_p0), %s9618_s7, 32, %s411_s17, [#allocation13]  }
  0x47   : > { %s8414_s19 = scalar_lea.vmem %s435_s2, 16  ;;  %s8421_s15 = scalar_lea.vmem %s435_s2, 32 }
  0x48   : > { %p8415_p8 = scmp.ne.s32.totalorder %s435_s2, %s8414_s19  ;;  %p8422_p2 = scmp.lt.s32.totalorder %s435_s2, %s435_s2 }
  0x49   : > { %p8423_p4 = scmp.lt.s32.totalorder %s8421_s15, %s8414_s19 }
  0x4a   : > { %p8417_p11 = pnand %p8415_p8, %p8877_p1 }
  0x4b   : > { %p8424_p5 = por %p8423_p4, %p8422_p2 }
  0x4c   : > { %p8418_p12 = pneg %p8417_p11 }
  0x4e   : > { %p8425_p9 = pnand %p8424_p5, %p8418_p12 }
  0x50   : > { %8428 = shalt.err (!%p8425_p9)
}
  0x51   : > { %7117 = dma.hbm_to_vmem [thread:$0]  (!%p8871_p0), %s9620_s9, 16, %s435_s2, [#allocation16]  }
  0x52   : > { %s8707_s17 = smov [#allocation3]  }
  0x53   : > { %s345_s14 = sshll.u32 %s8707_s17, 4  ;;  %s346_s14 = int_to_ptr.vmem [resolvable:$true] %s345_s14 }
  0x54   : > { %s8440_s30 = scalar_lea.vmem %s346_s14, 256  ;;  %p8448_p10 = scmp.lt.s32.totalorder %s346_s14, %s346_s14 }
  0x55   : > { %p8441_p6 = scmp.ne.s32.totalorder %s346_s14, %s8440_s30  ;;  %p8449_p7 = scmp.lt.s32.totalorder %s8440_s30, %s8440_s30 }
  0x57   : > { %p8443_p3 = pnand %p8441_p6, %p8877_p1  ;;  %p8450_p8 = por %p8449_p7, %p8448_p10 }
  0x59   : > { %p8444_p13 = pneg %p8443_p3 }
  0x5b   : > { %p8451_p11 = pnand %p8450_p8, %p8444_p13 }
  0x5d   : > { %8454 = shalt.err (!%p8451_p11)
}
  0x5e   : > { %s9633_s27 = smov 64   ;;  %s9635_s19 = smov 4  }
  0x5f   : > { %s9655_s1 = sld [smem:[#allocation35_spill]]  ;;  %s8710_s23 = smov [#allocation8]  }
  0x60   : > { %s372_s26 = sshll.u32 %s8710_s23, 4  ;;  %s373_s26 = int_to_ptr.vmem [resolvable:$true] %s372_s26 }
  0x61   : > { %s8466_s17 = scalar_lea.vmem %s373_s26, 57344  ;;  %p8474_p5 = scmp.lt.s32.totalorder %s373_s26, %s373_s26 }
  0x62   : > { %p8467_p12 = scmp.ne.s32.totalorder %s373_s26, %s8466_s17  ;;  %p8475_p9 = scmp.lt.s32.totalorder %s8466_s17, %s8466_s17 }
  0x64   : > { %p8469_p2 = pnand %p8467_p12, %p8877_p1  ;;  %p8476_p6 = por %p8475_p9, %p8474_p5 }
  0x65   : > { %7096 = dma.hbm_to_vmem [thread:$0]  (!%p8871_p0), %s9655_s1, 256, %s346_s14, [#allocation4], %s9633_s27, %s9633_s27, %s9635_s19  }
  0x66   : > { %p8470_p4 = pneg %p8469_p2 }
  0x68   : > { %p8477_p3 = pnand %p8476_p6, %p8470_p4 }
  0x6a   : > { %8480 = shalt.err (!%p8477_p3)
}
  0x6b   : > { %s8711_s30 = smov 256   ;;  %s8712_s5 = smov 16  }
  0x6c   : > { %7102 = dma.hbm_to_vmem [thread:$0]  (!%p8871_p0), %s9615_s4, 57344, %s373_s26, [#allocation7], %s8711_s30, %s8711_s30, %s8712_s5  }
  0x6d   : > { %s8713_s15 = smov [#allocation11]  }
  0x6e   : > { %s396_s23 = sshll.u32 %s8713_s15, 4  ;;  %s397_s23 = int_to_ptr.vmem [resolvable:$true] %s396_s23 }
  0x6f   : > { %s8492_s27 = scalar_lea.vmem %s397_s23, 8192  ;;  %p8500_p8 = scmp.lt.s32.totalorder %s397_s23, %s397_s23 }
  0x70   : > { %p8493_p13 = scmp.ne.s32.totalorder %s397_s23, %s8492_s27  ;;  %p8501_p11 = scmp.lt.s32.totalorder %s8492_s27, %s8492_s27 }
  0x72   : > { %p8495_p10 = pnand %p8493_p13, %p8877_p1  ;;  %p8502_p12 = por %p8501_p11, %p8500_p8 }
  0x74   : > { %p8496_p7 = pneg %p8495_p10 }
  0x76   : > { %p8503_p2 = pnand %p8502_p12, %p8496_p7 }
  0x78   : > { %8506 = shalt.err (!%p8503_p2)
}
  0x79   : > { %s8714_s17 = smov 128   ;;  %s8715_s19 = smov 8  }
  0x7a   : > { %7108 = dma.hbm_to_vmem [thread:$0]  (!%p8871_p0), %s9617_s6, 8192, %s397_s23, [#allocation10], %s8714_s17, %s8714_s17, %s8715_s19  }
  0x7b   : > { %s8716_s26 = smov [#allocation14]   ;;  %s8717_s14 = smov [#allocation17]  }
  0x7c   : > { %s420_s30 = sshll.u32 %s8716_s26, 4  ;;  %s444_s15 = sshll.u32 %s8717_s14, 4  ;;  %s421_s30 = int_to_ptr.vmem [resolvable:$true] %s420_s30  ;;  %s445_s15 = int_to_ptr.vmem [resolvable:$true] %s444_s15 }
  0x7d   : > { %s8518_s1 = scalar_lea.vmem %s421_s30, 2048  ;;  %p8526_p6 = scmp.lt.s32.totalorder %s421_s30, %s421_s30 }
  0x7e   : > { %p8519_p4 = scmp.ne.s32.totalorder %s421_s30, %s8518_s1  ;;  %p8527_p3 = scmp.lt.s32.totalorder %s8518_s1, %s8518_s1 }
  0x80   : > { %p8521_p5 = pnand %p8519_p4, %p8877_p1  ;;  %p8528_p13 = por %p8527_p3, %p8526_p6 }
  0x82   : > { %p8522_p9 = pneg %p8521_p5 }
  0x84   : > { %p8529_p10 = pnand %p8528_p13, %p8522_p9 }
  0x86   : > { %8532 = shalt.err (!%p8529_p10)
}
  0x87   : > { %s9656_s27 = smov 4   ;;  %s9657_s19 = smov 64  }
  0x88   : > { %7114 = dma.hbm_to_vmem [thread:$0]  (!%p8871_p0), %s9619_s8, 2048, %s421_s30, [#allocation13], %s9657_s19, %s9657_s19, %s9656_s27  }
  0x89   : > { %s8544_s2 = scalar_lea.vmem %s445_s15, 1024  ;;  %p8552_p12 = scmp.lt.s32.totalorder %s445_s15, %s445_s15 }
  0x8a   : > { %p8545_p7 = scmp.ne.s32.totalorder %s445_s15, %s8544_s2  ;;  %p8553_p2 = scmp.lt.s32.totalorder %s8544_s2, %s8544_s2 }
  0x8c   : > { %p8547_p8 = pnand %p8545_p7, %p8877_p1  ;;  %p8554_p4 = por %p8553_p2, %p8552_p12 }
  0x8e   : > { %p8548_p11 = pneg %p8547_p8 }
  0x90   : > { %p8555_p5 = pnand %p8554_p4, %p8548_p11 }
  0x92   : > { %8558 = shalt.err (!%p8555_p5)
}
  0x93   : > { %7120 = dma.hbm_to_vmem [thread:$0]  (!%p8871_p0), %s9621_s10, 1024, %s445_s15, [#allocation16], %s9657_s19, %s9657_s19, %s9656_s27  }
  0x94   : > { %s8718_s26 = smov [#allocation18]  }
  0x95   : > { %s458_s30 = sshll.u32 %s8718_s26, 4  ;;  %s459_s30 = int_to_ptr.vmem [resolvable:$true] %s458_s30 }
  0x96   : > { %s8570_s14 = scalar_lea.vmem %s459_s30, 16  ;;  %s8577_s23 = scalar_lea.vmem %s459_s30, 32 }
  0x97   : > { %p8571_p9 = scmp.ne.s32.totalorder %s459_s30, %s8570_s14  ;;  %p8578_p13 = scmp.lt.s32.totalorder %s459_s30, %s459_s30 }
  0x98   : > { %p8579_p10 = scmp.lt.s32.totalorder %s8577_s23, %s8570_s14 }
  0x99   : > { %p8573_p6 = pnand %p8571_p9, %p8877_p1 }
  0x9a   : > { %p8580_p7 = por %p8579_p10, %p8578_p13 }
  0x9b   : > { %p8574_p3 = pneg %p8573_p6 }
  0x9d   : > { %p8581_p8 = pnand %p8580_p7, %p8574_p3 }
  0x9f   : > { %8584 = shalt.err (!%p8581_p8)
}
  0xa0   : > { %7123 = dma.hbm_to_vmem [thread:$0]  (!%p8871_p0), %s9622_s11, 16, %s459_s30, [#allocation19]  }
  0xa1   : > { %p9658_p11 = scmp.ne.s32.totalorder %s9648_s18, 0 }
  0xa2   : > { %p9659_p12 = scmp.ne.s32.totalorder (!%p9658_p11), %s9649_s20, 0 }
  0xa3   : > { %484 = sbr.rel (%p9658_p11) target bundleno = 1965 (0x7ad), region = 68 }
  0xa8   : > { %8644 = dma.done.wait (%p9659_p12), [#allocation4], 256  }
  0xa9   : > { %8646 = vsyncadd (%p9659_p12), [#allocation4], 4294967040 }
  0xaa   : > { %8648 = dma.done.wait (%p9659_p12), [#allocation7], 57360  }
  0xab   : > { %8650 = vsyncadd (%p9659_p12), [#allocation7], 4294909936 }
  0xac   : > { %8652 = dma.done.wait (%p9659_p12), [#allocation10], 8256  }
  0xad   : > { %8654 = vsyncadd (%p9659_p12), [#allocation10], 4294959040 }
  0xae   : > { %8656 = dma.done.wait (%p9659_p12), [#allocation13], 2080  }
  0xaf   : > { %8658 = vsyncadd (%p9659_p12), [#allocation13], 4294965216 }
  0xb0   : > { %8660 = dma.done.wait (%p9659_p12), [#allocation16], 1040  }
  0xb1   : > { %8662 = vsyncadd (%p9659_p12), [#allocation16], 4294966256 }
  0xb2   : > { %8664 = dma.done.wait (%p9659_p12), [#allocation19], 16  }
  0xb3   : > { %8666 = vsyncadd (%p9659_p12), [#allocation19], 4294967280  ;;  %s563_s13 = sand.u32 1, %s8677_s22   ;;  %vm679_vm0 = vcmask 1044480   ;;  %s6261_s18 = sshll.u32 %s8685_s24, 4  ;;  %vm680_vm1 = vcmask 1045504  }
  0xb4   : > { %p566_p0 = scmp.lt.s32.totalorder %s8689_s25, 1  ;;  %p568_p1 = scmp.lt.s32.totalorder %s6261_s18, 31  ;;  %v8719_v0 = vmov 65535   ;;  %v7234_v3 = vld [vmem:[#allocation3 + $0x8] sm:$0x3f]   ;;  %v7235_v5 = vld [vmem:[#allocation3] sm:$0xff]  }
  0xb5   : > { %v681_v1 = vsel %vm679_vm0, 4294967295, %v8719_v0  ;;  %vm654_vm2 = vcmask 220160   ;;  %v6264_v14 = vld [vmem:[#allocation6] ss:$0 sm:$0xff]  ;;  %s9067_s26 = scalar_lea.vmem [#allocation20], %s563_s13  ;;  %p6299_p2 = scmp.ne.s32.totalorder %s8685_s24, 0 }
  0xb6   : > { %s567_s29 = scalar_select %p566_p0, %s8689_s25, 1  ;;  %v682_v2 = vsel %vm680_vm1, %v681_v1, 0 }
  0xb7   : > { %s9680_s18 = smov (!%p568_p1, %s6261_s18), 31  ;;  %v684_v4 = vand.u32 %v7234_v3, %v682_v2 }
  0xb8   : > { %s6262_s15 = sshll.u32 %s567_s29, 5 }
  0xb9   : > { %s571_s27 = sadd.s32 %s6262_s15, %s9680_s18  ;;  %7007 = vmatprep.subr.bf16.mxu0 %v684_v4  ;;  %7047 = vmatprep.subr.bf16.mxu1 %v684_v4 }
  0xba   : > { %s6263_s20 = sshll.u32 %s571_s27, 2  ;;  %7008 = vmatpush3.bf16.msra.mxu0 %v684_v4  ;;  %7049 = vmatpush3.bf16.msra.mxu1 %v684_v4 }
  0xbb   : > { %s573_s5 = scalar_lea.vmem %s9611_s0, %s6263_s20  ;;  %7009 = vmatprep.subr.bf16.mxu0 %v7235_v5  ;;  %7048 = vmatprep.subr.bf16.mxu1 %v7235_v5 }
  0xbc   : > { %v7236_v6 = vld [vmem:[%s573_s5] sm:$0xff]   ;;  %v7238_v8 = vld [vmem:[%s573_s5 + $0x8] sm:$0xff]   ;;  %v7240_v10 = vld [vmem:[%s573_s5 + $0x10] sm:$0xff]  }
  0xbd   : > { %v7237_v7 = vld [vmem:[%s573_s5 + $0x20] sm:$0xff]   ;;  %7011 = vmatprep.mubr.msk.bf16.mxu0 %vm654_vm2, %v7236_v6  ;;  %v7239_v9 = vld [vmem:[%s573_s5 + $0x28] sm:$0xff]   ;;  %v7241_v11 = vld [vmem:[%s573_s5 + $0x30] sm:$0xff]  }
  0xbe   : > { %7019 = vmatprep.mubr.msk.bf16.mxu1 %vm654_vm2, %v7237_v7  ;;  %7010 = vmatpush3.bf16.msra.mxu0 %v7235_v5  ;;  %v7242_v12 = vld [vmem:[%s573_s5 + $0x18] sm:$0xff]  }
  0xbf   : > { %7050 = vmatpush3.bf16.msra.mxu1 %v7235_v5  ;;  %v7243_v13 = vld [vmem:[%s573_s5 + $0x38] sm:$0xff]  }
  0xc1   : > { %7012 = vmatmul.mubr.msk.bf16.vlgmr.msra.gmra.mxu0 %vm654_vm2, %v7238_v8 }
  0xc2   : > { %7020 = vmatmul.mubr.msk.bf16.vlgmr.msra.gmra.mxu1 %vm654_vm2, %v7239_v9  ;;  %7015 = vmatprep.mubr.msk.bf16.mxu0 %vm654_vm2, %v7240_v10 }
  0xc3   : > { %7023 = vmatprep.mubr.msk.bf16.mxu1 %vm654_vm2, %v7241_v11 }
  0xc9   : > { %7016 = vmatmul.mubr.msk.bf16.gmra.mxu0 %vm654_vm2, %v7242_v12 }
  0xca   : > { %7024 = vmatmul.mubr.msk.bf16.gmra.mxu1 %vm654_vm2, %v7243_v13 }
 0x181   : > { %v7013_v15 = vpop.f32.mrf.mxu0 }
 0x182   : > { %v7021_v16 = vpop.f32.mrf.mxu1  ;;  %v9001_v17 = vadd.f32 %v7013_v15, %v6264_v14 }
 0x183   : > { %v9003_v18 = vadd.f32 %v7021_v16, %v6264_v14  ;;  %v720_v19 = vpop.f32.mrf.mxu0 }
 0x184   : > { %v752_v20 = vpop.f32.mrf.mxu1  ;;  %v6285_v21 = vmul.f32 -1.442695, %v9001_v17  ;;  %v9007_v23 = vadd.f32 %v6264_v14, %v720_v19 }
 0x185   : > { %v6293_v22 = vmul.f32 -1.442695, %v9003_v18  ;;  %v9009_v24 = vadd.f32 %v6264_v14, %v752_v20  ;;  %v7014_v25 = vpop.f32.mrf.mxu0 }
 0x186   : > { %v7022_v26 = vpop.f32.mrf.mxu1  ;;  %7244 = vpow2.f32 %v6285_v21  ;;  %v6283_v27 = vmul.f32 -1.442695, %v9007_v23  ;;  %v9013_v29 = vadd.f32 %v7014_v25, %v6264_v14 }
 0x187   : > { %v6291_v28 = vmul.f32 -1.442695, %v9009_v24  ;;  %7246 = vpow2.f32 %v6293_v22  ;;  %v9015_v30 = vadd.f32 %v7022_v26, %v6264_v14  ;;  %v723_v31 = vpop.f32.mrf.mxu0 }
 0x188   : > { %v755_v32 = vpop.f32.mrf.mxu1  ;;  %7248 = vpow2.f32 %v6283_v27  ;;  %v6286_v33 = vmul.f32 -1.442695, %v9013_v29  ;;  %v9018_v34 = vadd.f32 %v6264_v14, %v723_v31 }
 0x189   : > { %v9020_v35 = vadd.f32 %v6264_v14, %v755_v32  ;;  %7250 = vpow2.f32 %v6291_v28  ;;  %v6294_v36 = vmul.f32 -1.442695, %v9015_v30  ;;  %v7017_v37 = vpop.f32.mrf.mxu0 }
 0x18a   : > { %v7025_v38 = vpop.f32.mrf.mxu1  ;;  %7252 = vpow2.f32 %v6286_v33  ;;  %v6284_v39 = vmul.f32 -1.442695, %v9018_v34  ;;  %v9025_v41 = vadd.f32 %v7017_v37, %v6264_v14 }
 0x18b   : > { %v6292_v40 = vmul.f32 -1.442695, %v9020_v35  ;;  %7254 = vpow2.f32 %v6294_v36  ;;  %v9027_v42 = vadd.f32 %v7025_v38, %v6264_v14  ;;  %v736_v43 = vpop.f32.mrf.mxu0 }
 0x18c   : > { %v768_v44 = vpop.f32.mrf.mxu1  ;;  %7256 = vpow2.f32 %v6284_v39  ;;  %v6289_v45 = vmul.f32 -1.442695, %v9025_v41  ;;  %v9030_v46 = vadd.f32 %v6264_v14, %v736_v43 }
 0x18d   : > { %v9032_v47 = vadd.f32 %v6264_v14, %v768_v44  ;;  %7258 = vpow2.f32 %v6292_v40  ;;  %v6297_v48 = vmul.f32 -1.442695, %v9027_v42  ;;  %v7018_v49 = vpop.f32.mrf.mxu0 }
 0x18e   : > { %v7026_v50 = vpop.f32.mrf.mxu1  ;;  %7260 = vpow2.f32 %v6289_v45  ;;  %v6287_v51 = vmul.f32 -1.442695, %v9030_v46  ;;  %v9037_v53 = vadd.f32 %v7018_v49, %v6264_v14 }
 0x18f   : > { %v6295_v52 = vmul.f32 -1.442695, %v9032_v47  ;;  %7262 = vpow2.f32 %v6297_v48  ;;  %v9039_v54 = vadd.f32 %v7026_v50, %v6264_v14  ;;  %v739_v55 = vpop.f32.mrf.mxu0 }
 0x190   : > { %v771_v56 = vpop.f32.mrf.mxu1  ;;  %7264 = vpow2.f32 %v6287_v51  ;;  %v6290_v57 = vmul.f32 -1.442695, %v9037_v53  ;;  %v9042_v58 = vadd.f32 %v6264_v14, %v739_v55 }
 0x191   : > { %v9044_v59 = vadd.f32 %v6264_v14, %v771_v56  ;;  %7266 = vpow2.f32 %v6295_v52  ;;  %v6298_v60 = vmul.f32 -1.442695, %v9039_v54 }
 0x192   : > { %7268 = vpow2.f32 %v6290_v57  ;;  %v6288_v61 = vmul.f32 -1.442695, %v9042_v58 }
 0x193   : > { %v6296_v62 = vmul.f32 -1.442695, %v9044_v59  ;;  %v7245_v63 = vpop.eup %7244  ;;  %7270 = vpow2.f32 %v6298_v60 }
 0x194   : > { %v7247_v0 = vpop.eup %7246  ;;  %v833_v1 = vadd.f32 1.0, %v7245_v63  ;;  %7272 = vpow2.f32 %v6288_v61 }
 0x195   : > { %v7249_v2 = vpop.eup %7248  ;;  %v841_v3 = vadd.f32 1.0, %v7247_v0  ;;  %7274 = vpow2.f32 %v6296_v62 }
 0x196   : > { %v7251_v4 = vpop.eup %7250  ;;  %7276 = vrcp.f32 %v833_v1  ;;  %v831_v5 = vadd.f32 1.0, %v7249_v2 }
 0x197   : > { %v7253_v6 = vpop.eup %7252  ;;  %7278 = vrcp.f32 %v841_v3  ;;  %v839_v7 = vadd.f32 1.0, %v7251_v4 }
 0x198   : > { %v7255_v8 = vpop.eup %7254  ;;  %7280 = vrcp.f32 %v831_v5  ;;  %v834_v9 = vadd.f32 1.0, %v7253_v6 }
 0x199   : > { %v7257_v10 = vpop.eup %7256  ;;  %7282 = vrcp.f32 %v839_v7  ;;  %v842_v11 = vadd.f32 1.0, %v7255_v8 }
 0x19a   : > { %v7259_v12 = vpop.eup %7258  ;;  %7284 = vrcp.f32 %v834_v9  ;;  %v832_v13 = vadd.f32 1.0, %v7257_v10 }
 0x19b   : > { %v7261_v14 = vpop.eup %7260  ;;  %7286 = vrcp.f32 %v842_v11  ;;  %v840_v15 = vadd.f32 1.0, %v7259_v12 }
 0x19c   : > { %v7263_v16 = vpop.eup %7262  ;;  %7288 = vrcp.f32 %v832_v13  ;;  %v837_v19 = vadd.f32 1.0, %v7261_v14 }
 0x19d   : > { %v7265_v20 = vpop.eup %7264  ;;  %7290 = vrcp.f32 %v840_v15  ;;  %v845_v21 = vadd.f32 1.0, %v7263_v16 }
 0x19e   : > { %v7267_v22 = vpop.eup %7266  ;;  %7292 = vrcp.f32 %v837_v19  ;;  %v835_v25 = vadd.f32 1.0, %v7265_v20 }
 0x19f   : > { %v7269_v26 = vpop.eup %7268  ;;  %7294 = vrcp.f32 %v845_v21  ;;  %v843_v27 = vadd.f32 1.0, %v7267_v22 }
 0x1a0   : > { %v7271_v28 = vpop.eup %7270  ;;  %7296 = vrcp.f32 %v835_v25  ;;  %v838_v31 = vadd.f32 1.0, %v7269_v26 }
 0x1a1   : > { %v7273_v32 = vpop.eup %7272  ;;  %7298 = vrcp.f32 %v843_v27  ;;  %v846_v33 = vadd.f32 1.0, %v7271_v28 }
 0x1a2   : > { %v7275_v36 = vpop.eup %7274  ;;  %7300 = vrcp.f32 %v838_v31  ;;  %v836_v37 = vadd.f32 1.0, %v7273_v32 }
 0x1a3   : > { %v7277_v38 = vpop.eup %7276  ;;  %7302 = vrcp.f32 %v846_v33  ;;  %v844_v39 = vadd.f32 1.0, %v7275_v36 }
 0x1a4   : > { %v7279_v40 = vpop.eup %7278  ;;  %v881_v43 = vmul.f32 %v7277_v38, %v9001_v17  ;;  %7304 = vrcp.f32 %v836_v37 }
 0x1a5   : > { %v7281_v44 = vpop.eup %7280  ;;  %v889_v45 = vmul.f32 %v7279_v40, %v9003_v18  ;;  %7306 = vrcp.f32 %v844_v39 }
 0x1a6   : > { %v7283_v48 = vpop.eup %7282  ;;  %v879_v49 = vmul.f32 %v7281_v44, %v9007_v23 }
 0x1a7   : > { %v7285_v50 = vpop.eup %7284  ;;  %v887_v51 = vmul.f32 %v7283_v48, %v9009_v24 }
 0x1a8   : > { %v7287_v52 = vpop.eup %7286  ;;  %v882_v55 = vmul.f32 %v7285_v50, %v9013_v29 }
 0x1a9   : > { %v7289_v56 = vpop.eup %7288  ;;  %v890_v57 = vmul.f32 %v7287_v52, %v9015_v30 }
 0x1aa   : > { %v7291_v60 = vpop.eup %7290  ;;  %v880_v17 = vmul.f32 %v7289_v56, %v9018_v34 }
 0x1ab   : > { %v7293_v61 = vpop.eup %7292  ;;  %v888_v62 = vmul.f32 %v7291_v60, %v9020_v35 }
 0x1ac   : > { %v7295_v18 = vpop.eup %7294  ;;  %v885_v63 = vmul.f32 %v7293_v61, %v9025_v41 }
 0x1ad   : > { %v7297_v23 = vpop.eup %7296  ;;  %v893_v0 = vmul.f32 %v7295_v18, %v9027_v42 }
 0x1ae   : > { %v7299_v24 = vpop.eup %7298  ;;  %v883_v1 = vmul.f32 %v7297_v23, %v9030_v46 }
 0x1af   : > { %v7301_v29 = vpop.eup %7300  ;;  %v891_v2 = vmul.f32 %v7299_v24, %v9032_v47  ;;  %898 = sbr.rel (%p6299_p2) target bundleno = 438 (0x1b6), region = 112 }
 0x1b0   : > { %v7303_v30 = vpop.eup %7302  ;;  %v886_v3 = vmul.f32 %v7301_v29, %v9037_v53 }
 0x1b1   : > { %v7305_v34 = vpop.eup %7304  ;;  %v894_v4 = vmul.f32 %v7303_v30, %v9039_v54 }
 0x1b2   : > { %v7307_v35 = vpop.eup %7306  ;;  %v884_v5 = vmul.f32 %v7305_v34, %v9042_v58 }
 0x1b3   : > { %v892_v41 = vmul.f32 %v7307_v35, %v9044_v59 }
 0x1b4   : > { %v8720_v42 = vmov 0.0  }
 0x1b5   : > { %899 = vst [vmem:[#allocation2] sm:$0x1] %v8720_v42 }
 0x1b6 PF: > { %v901_v46 = vadd.f32 %v880_v17, %v879_v49  ;;  %p6300_p4 = scmp.ne.s32.totalorder %s8685_s24, 1 }
 0x1b8   : > { %v902_v47 = vadd.f32 %v901_v46, %v881_v43 }
 0x1ba   : > { %v903_v53 = vadd.f32 %v902_v47, %v882_v55 }
 0x1bc   : > { %v904_v6 = vadd.f32 %v903_v53, %v883_v1  ;;  %v900_v22 = vld [vmem:[#allocation2] sm:$0x1] }
 0x1be   : > { %v905_v7 = vadd.f32 %v904_v6, %v884_v5 }
 0x1c0   : > { %v906_v54 = vadd.f32 %v905_v7, %v885_v63 }
 0x1c2   : > { %v907_v8 = vadd.f32 %v906_v54, %v886_v3 }
 0x1c4   : > { %v908_v9 = vadd.f32 %v907_v8, %v887_v51 }
 0x1c6   : > { %v909_v58 = vadd.f32 %v908_v9, %v888_v62 }
 0x1c8   : > { %v910_v10 = vadd.f32 %v909_v58, %v889_v45 }
 0x1ca   : > { %v911_v59 = vadd.f32 %v910_v10, %v890_v57 }
 0x1cc   : > { %v912_v11 = vadd.f32 %v911_v59, %v891_v2 }
 0x1ce   : > { %v913_v12 = vadd.f32 %v912_v11, %v892_v41 }
 0x1d0   : > { %v914_v13 = vadd.f32 %v913_v12, %v893_v0 }
 0x1d2   : > { %v915_v14 = vadd.f32 %v914_v13, %v894_v4 }
 0x1d4   : > { %v916_v15 = vrot.slane %v915_v14, 4 }
 0x1d6   : > { %v917_v16 = vadd.f32 %v916_v15, %v915_v14 }
 0x1d8   : > { %v918_v19 = vrot.slane %v917_v16, 2 }
 0x1da   : > { %v919_v20 = vadd.f32 %v918_v19, %v917_v16 }
 0x1dc   : > { %v920_v21 = vrot.slane %v919_v20, 1 }
 0x1de   : > { %v921_v25 = vadd.f32 %v920_v21, %v919_v20  ;;  %927 = sbr.rel (%p6300_p4) target bundleno = 1941 (0x795), region = 116 }
 0x1e0   : > { %v922_v26 = vadd.f32 %v921_v25, %v900_v22 }
 0x1e2   : > { %923 = vst [vmem:[#allocation2] sm:$0x1] %v922_v26 }
 0x1e3   : > { %v7308_v27 = vld [vmem:[%s9614_s3 + $0x314] ss:$56 sps:$4 sm:$0xff]   ;;  %v8721_v31 = vmov 0   ;;  %v7312_v32 = vld [vmem:[%s9614_s3 + $0x310] ss:$56 sps:$4 sm:$0xff]   ;;  %vm8723_vm3 = vmmov 0  }
 0x1e4   : > { %v7310_v28 = vld [vmem:[%s9614_s3 + $0x31c] ss:$56 sps:$4 sm:$0xff]   ;;  %1635 = vmatprep.mubr.bf16.mxu0 %v8721_v31  ;;  %1676 = vmatprep.mubr.bf16.mxu1 %v8721_v31  ;;  %v7313_v33 = vld [vmem:[%s9614_s3 + $0x318] ss:$56 sps:$4 sm:$0xff]   ;;  %v7316_v37 = vld [vmem:[%s9614_s3 + $0x2ac] ss:$56 sps:$4 sm:$0xff]  }
 0x1e5   : > { %1603 = vmatprep.subr.bf16.mxu0 %v7308_v27  ;;  %1644 = vmatprep.subr.bf16.mxu1 %v7310_v28  ;;  %v7314_v36 = vld [vmem:[%s9614_s3 + $0x2a4] ss:$56 sps:$4 sm:$0xff]   ;;  %v7318_v38 = vld [vmem:[%s9614_s3 + $0x2a0] ss:$56 sps:$4 sm:$0xff]   ;;  %v7320_v40 = vld [vmem:[%s9614_s3 + $0x234] ss:$56 sps:$4 sm:$0xff]  }
 0x1e6   : > { %1604 = vmatpush1.bf16.msra.mxu0 %v7312_v32  ;;  %1645 = vmatpush1.bf16.msra.mxu1 %v7313_v33  ;;  %v7319_v39 = vld [vmem:[%s9614_s3 + $0x2a8] ss:$56 sps:$4 sm:$0xff]   ;;  %v7322_v43 = vld [vmem:[%s9614_s3 + $0x23c] ss:$56 sps:$4 sm:$0xff]   ;;  %v7325_v45 = vld [vmem:[%s9614_s3 + $0x238] ss:$56 sps:$4 sm:$0xff]  }
 0x1e7   : > { %1605 = vmatprep.subr.bf16.mxu0 %v7314_v36  ;;  %1646 = vmatprep.subr.bf16.mxu1 %v7316_v37  ;;  %v7324_v44 = vld [vmem:[%s9614_s3 + $0x230] ss:$56 sps:$4 sm:$0xff]   ;;  %v7326_v48 = vld [vmem:[%s9614_s3 + $0x1c4] ss:$56 sps:$4 sm:$0xff]   ;;  %v7330_v50 = vld [vmem:[%s9614_s3 + $0x1c0] ss:$56 sps:$4 sm:$0xff]  }
 0x1e8   : > { %v7328_v49 = vld [vmem:[%s9614_s3 + $0x1cc] ss:$56 sps:$4 sm:$0xff]   ;;  %v7331_v51 = vld [vmem:[%s9614_s3 + $0x1c8] ss:$56 sps:$4 sm:$0xff]   ;;  %v7334_v55 = vld [vmem:[%s9614_s3 + $0x15c] ss:$56 sps:$4 sm:$0xff]  }
 0x1e9   : > { %v7332_v52 = vld [vmem:[%s9614_s3 + $0x154] ss:$56 sps:$4 sm:$0xff]   ;;  %v7336_v56 = vld [vmem:[%s9614_s3 + $0x150] ss:$56 sps:$4 sm:$0xff]   ;;  %v7338_v60 = vld [vmem:[%s9614_s3 + $0xe4] ss:$56 sps:$4 sm:$0xff]  }
 0x1ea   : > { %1606 = vmatpush1.bf16.msra.mxu0 %v7318_v38  ;;  %1647 = vmatpush1.bf16.msra.mxu1 %v7319_v39  ;;  %v7337_v57 = vld [vmem:[%s9614_s3 + $0x158] ss:$56 sps:$4 sm:$0xff]   ;;  %v7340_v17 = vld [vmem:[%s9614_s3 + $0xec] ss:$56 sps:$4 sm:$0xff]   ;;  %v7343_v62 = vld [vmem:[%s9614_s3 + $0xe8] ss:$56 sps:$4 sm:$0xff]  }
 0x1eb   : > { %1607 = vmatprep.subr.bf16.mxu0 %v7320_v40  ;;  %1648 = vmatprep.subr.bf16.mxu1 %v7322_v43  ;;  %v7342_v61 = vld [vmem:[%s9614_s3 + $0xe0] ss:$56 sps:$4 sm:$0xff]   ;;  %v7344_v18 = vld [vmem:[%s9614_s3 + $0x74] ss:$56 sps:$4 sm:$0xff]   ;;  %v7348_v23 = vld [vmem:[%s9614_s3 + $0x70] ss:$56 sps:$4 sm:$0xff]  }
 0x1ec   : > { %v7346_v63 = vld [vmem:[%s9614_s3 + $0x7c] ss:$56 sps:$4 sm:$0xff]   ;;  %v7349_v0 = vld [vmem:[%s9614_s3 + $0x78] ss:$56 sps:$4 sm:$0xff]   ;;  %v928_v24 = vld [vmem:[#allocation2] sm:$0x1] }
 0x1ed   : > { %v7350_v1 = vld [vmem:[%s9614_s3 + $0x4] ss:$56 sps:$4 sm:$0xff]   ;;  %v7354_v2 = vld [vmem:[%s9614_s3] ss:$56 sps:$4 sm:$0xff]   ;;  %v929_v30 = vmul.f32 0.00390625, %v928_v24 }
 0x1ee   : > { %1608 = vmatpush1.bf16.msra.mxu0 %v7324_v44  ;;  %1649 = vmatpush1.bf16.msra.mxu1 %v7325_v45  ;;  %v7352_v29 = vld [vmem:[%s9614_s3 + $0xc] ss:$56 sps:$4 sm:$0xff]   ;;  %v7355_v3 = vld [vmem:[%s9614_s3 + $0x8] ss:$56 sps:$4 sm:$0xff]   ;;  %v7367_v46 = vld [vmem:[%s9614_s3 + $0x2bc] ss:$56 sps:$4 sm:$0xff]  }
 0x1ef   : > { %1609 = vmatprep.subr.bf16.mxu0 %v7326_v48  ;;  %1650 = vmatprep.subr.bf16.mxu1 %v7328_v49  ;;  %v7358_v34 = vld [vmem:[%s9614_s3 + $0x324] ss:$56 sps:$4 sm:$0xff]   ;;  %v9175_v35 = vpack.c.bf16 %v929_v30, %v929_v30  ;;  %v7356_v5 = vld [vmem:[%s9614_s3 + $0x320] ss:$56 sps:$4 sm:$0xff]   ;;  %v7364_v42 = vld [vmem:[%s9614_s3 + $0x2b4] ss:$56 sps:$4 sm:$0xff]  }
 0x1f0   : > { %v7361_v4 = vld [vmem:[%s9614_s3 + $0x32c] ss:$56 sps:$4 sm:$0xff]   ;;  %v7359_v41 = vld [vmem:[%s9614_s3 + $0x328] ss:$56 sps:$4 sm:$0xff]   ;;  %v7365_v53 = vld [vmem:[%s9614_s3 + $0x2b8] ss:$56 sps:$4 sm:$0xff]  }
 0x1f1   : > { %v7362_v47 = vld [vmem:[%s9614_s3 + $0x2b0] ss:$56 sps:$4 sm:$0xff]   ;;  %v7370_v6 = vld [vmem:[%s9614_s3 + $0x244] ss:$56 sps:$4 sm:$0xff]   ;;  %v7368_v54 = vld [vmem:[%s9614_s3 + $0x240] ss:$56 sps:$4 sm:$0xff]  }
 0x1f2   : > { %1610 = vmatpush1.bf16.msra.mxu0 %v7330_v50  ;;  %1651 = vmatpush1.bf16.msra.mxu1 %v7331_v51  ;;  %v7373_v7 = vld [vmem:[%s9614_s3 + $0x24c] ss:$56 sps:$4 sm:$0xff]   ;;  %v7371_v8 = vld [vmem:[%s9614_s3 + $0x248] ss:$56 sps:$4 sm:$0xff]   ;;  %v7379_v58 = vld [vmem:[%s9614_s3 + $0x1dc] ss:$56 sps:$4 sm:$0xff]  }
 0x1f3   : > { %1611 = vmatprep.subr.bf16.mxu0 %v7332_v52  ;;  %1652 = vmatprep.subr.bf16.mxu1 %v7334_v55  ;;  %v7376_v9 = vld [vmem:[%s9614_s3 + $0x1d4] ss:$56 sps:$4 sm:$0xff]   ;;  %v7374_v10 = vld [vmem:[%s9614_s3 + $0x1d0] ss:$56 sps:$4 sm:$0xff]   ;;  %v7382_v11 = vld [vmem:[%s9614_s3 + $0x164] ss:$56 sps:$4 sm:$0xff]  }
 0x1f4   : > { %v7377_v59 = vld [vmem:[%s9614_s3 + $0x1d8] ss:$56 sps:$4 sm:$0xff]   ;;  %v7385_v12 = vld [vmem:[%s9614_s3 + $0x16c] ss:$56 sps:$4 sm:$0xff]   ;;  %v7383_v14 = vld [vmem:[%s9614_s3 + $0x168] ss:$56 sps:$4 sm:$0xff]  }
 0x1f5   : > { %v7380_v13 = vld [vmem:[%s9614_s3 + $0x160] ss:$56 sps:$4 sm:$0xff]   ;;  %v7388_v15 = vld [vmem:[%s9614_s3 + $0xf4] ss:$56 sps:$4 sm:$0xff]   ;;  %v7386_v19 = vld [vmem:[%s9614_s3 + $0xf0] ss:$56 sps:$4 sm:$0xff]  }
 0x1f6   : > { %1612 = vmatpush1.bf16.msra.mxu0 %v7336_v56  ;;  %1653 = vmatpush1.bf16.msra.mxu1 %v7337_v57  ;;  %v7391_v16 = vld [vmem:[%s9614_s3 + $0xfc] ss:$56 sps:$4 sm:$0xff]   ;;  %v7389_v20 = vld [vmem:[%s9614_s3 + $0xf8] ss:$56 sps:$4 sm:$0xff]   ;;  %v7397_v22 = vld [vmem:[%s9614_s3 + $0x8c] ss:$56 sps:$4 sm:$0xff]  }
 0x1f7   : > { %1613 = vmatprep.subr.bf16.mxu0 %v7338_v60  ;;  %1654 = vmatprep.subr.bf16.mxu1 %v7340_v17  ;;  %v7394_v21 = vld [vmem:[%s9614_s3 + $0x84] ss:$56 sps:$4 sm:$0xff]   ;;  %v7392_v25 = vld [vmem:[%s9614_s3 + $0x80] ss:$56 sps:$4 sm:$0xff]   ;;  %v7400_v27 = vld [vmem:[%s9614_s3 + $0x14] ss:$56 sps:$4 sm:$0xff]  }
 0x1f8   : > { %v7395_v26 = vld [vmem:[%s9614_s3 + $0x88] ss:$56 sps:$4 sm:$0xff]   ;;  %v7403_v28 = vld [vmem:[%s9614_s3 + $0x1c] ss:$56 sps:$4 sm:$0xff]   ;;  %v7401_v33 = vld [vmem:[%s9614_s3 + $0x18] ss:$56 sps:$4 sm:$0xff]  }
 0x1f9   : > { %v7398_v32 = vld [vmem:[%s9614_s3 + $0x10] ss:$56 sps:$4 sm:$0xff]   ;;  %v7406_v36 = vld [vmem:[%s9614_s3 + $0x334] ss:$56 sps:$4 sm:$0xff]   ;;  %v7412_v40 = vld [vmem:[%s9614_s3 + $0x2c4] ss:$56 sps:$4 sm:$0xff]  }
 0x1fa   : > { %1614 = vmatpush1.bf16.msra.mxu0 %v7342_v61  ;;  %1655 = vmatpush1.bf16.msra.mxu1 %v7343_v62  ;;  %v7409_v37 = vld [vmem:[%s9614_s3 + $0x33c] ss:$56 sps:$4 sm:$0xff]   ;;  %v7404_v38 = vld [vmem:[%s9614_s3 + $0x330] ss:$56 sps:$4 sm:$0xff]   ;;  %v7415_v43 = vld [vmem:[%s9614_s3 + $0x2cc] ss:$56 sps:$4 sm:$0xff]  }
 0x1fb   : > { %1615 = vmatprep.subr.bf16.mxu0 %v7344_v18  ;;  %1656 = vmatprep.subr.bf16.mxu1 %v7346_v63  ;;  %v7407_v39 = vld [vmem:[%s9614_s3 + $0x338] ss:$56 sps:$4 sm:$0xff]   ;;  %v7413_v45 = vld [vmem:[%s9614_s3 + $0x2c8] ss:$56 sps:$4 sm:$0xff]   ;;  %v7418_v48 = vld [vmem:[%s9614_s3 + $0x254] ss:$56 sps:$4 sm:$0xff]  }
 0x1fc   : > { %v7410_v44 = vld [vmem:[%s9614_s3 + $0x2c0] ss:$56 sps:$4 sm:$0xff]   ;;  %v7421_v49 = vld [vmem:[%s9614_s3 + $0x25c] ss:$56 sps:$4 sm:$0xff]   ;;  %v7416_v50 = vld [vmem:[%s9614_s3 + $0x250] ss:$56 sps:$4 sm:$0xff]  }
 0x1fd   : > { %v7419_v51 = vld [vmem:[%s9614_s3 + $0x258] ss:$56 sps:$4 sm:$0xff]   ;;  %v7424_v52 = vld [vmem:[%s9614_s3 + $0x1e4] ss:$56 sps:$4 sm:$0xff]   ;;  %v7425_v57 = vld [vmem:[%s9614_s3 + $0x1e8] ss:$56 sps:$4 sm:$0xff]  }
 0x1fe   : > { %1616 = vmatpush1.bf16.msra.mxu0 %v7348_v23  ;;  %1657 = vmatpush1.bf16.msra.mxu1 %v7349_v0  ;;  %v7427_v55 = vld [vmem:[%s9614_s3 + $0x1ec] ss:$56 sps:$4 sm:$0xff]   ;;  %v7422_v56 = vld [vmem:[%s9614_s3 + $0x1e0] ss:$56 sps:$4 sm:$0xff]   ;;  %v7433_v17 = vld [vmem:[%s9614_s3 + $0x17c] ss:$56 sps:$4 sm:$0xff]  }
 0x1ff   : > { %1617 = vmatprep.subr.bf16.mxu0 %v7350_v1  ;;  %1658 = vmatprep.subr.bf16.mxu1 %v7352_v29  ;;  %v7430_v60 = vld [vmem:[%s9614_s3 + $0x174] ss:$56 sps:$4 sm:$0xff]   ;;  %v7428_v61 = vld [vmem:[%s9614_s3 + $0x170] ss:$56 sps:$4 sm:$0xff]   ;;  %v7436_v18 = vld [vmem:[%s9614_s3 + $0x104] ss:$56 sps:$4 sm:$0xff]  }
 0x200   : > { %v7431_v62 = vld [vmem:[%s9614_s3 + $0x178] ss:$56 sps:$4 sm:$0xff]   ;;  %v7439_v63 = vld [vmem:[%s9614_s3 + $0x10c] ss:$56 sps:$4 sm:$0xff]   ;;  %v7437_v0 = vld [vmem:[%s9614_s3 + $0x108] ss:$56 sps:$4 sm:$0xff]  }
 0x201   : > { %v7434_v23 = vld [vmem:[%s9614_s3 + $0x100] ss:$56 sps:$4 sm:$0xff]   ;;  %v7442_v24 = vld [vmem:[%s9614_s3 + $0x94] ss:$56 sps:$4 sm:$0xff]   ;;  %v7440_v29 = vld [vmem:[%s9614_s3 + $0x90] ss:$56 sps:$4 sm:$0xff]  }
 0x202   : > { %1618 = vmatpush1.bf16.msra.mxu0 %v7354_v2  ;;  %1659 = vmatpush1.bf16.msra.mxu1 %v7355_v3  ;;  %v7445_v1 = vld [vmem:[%s9614_s3 + $0x9c] ss:$56 sps:$4 sm:$0xff]   ;;  %v7443_v2 = vld [vmem:[%s9614_s3 + $0x98] ss:$56 sps:$4 sm:$0xff]   ;;  %v7451_v3 = vld [vmem:[%s9614_s3 + $0x2c] ss:$56 sps:$4 sm:$0xff]  }
 0x203   : > { %1685 = vmatprep.subr.bf16.mxu0 %v7358_v34  ;;  %1726 = vmatprep.subr.bf16.mxu1 %v7361_v4  ;;  %v7448_v30 = vld [vmem:[%s9614_s3 + $0x24] ss:$56 sps:$4 sm:$0xff]   ;;  %v7446_v34 = vld [vmem:[%s9614_s3 + $0x20] ss:$56 sps:$4 sm:$0xff]  }
 0x204   : > { %v7449_v4 = vld [vmem:[%s9614_s3 + $0x28] ss:$56 sps:$4 sm:$0xff]  }
 0x205   : > { %1636 = vmatmul.mubr.bf16.vlgmr.msra.gmra.mxu0 %v9175_v35  ;;  %1677 = vmatmul.mubr.bf16.vlgmr.msra.gmra.mxu1 %v9175_v35 }
 0x206   : > { %1686 = vmatpush1.bf16.msra.mxu0 %v7356_v5  ;;  %1727 = vmatpush1.bf16.msra.mxu1 %v7359_v41  ;;  %v7454_v5 = vld [vmem:[%s9614_s3 + $0x344] ss:$56 sps:$4 sm:$0xff]  }
 0x207   : > { %1687 = vmatprep.subr.bf16.mxu0 %v7364_v42  ;;  %1728 = vmatprep.subr.bf16.mxu1 %v7367_v46  ;;  %v7478_v41 = vld [vmem:[#allocation8 + $0xe4] ss:$16 sps:$4 sm:$0xff]  }
 0x208   : > { %1717 = vmatprep.mubr.bf16.mxu0 %v8721_v31  ;;  %1758 = vmatprep.mubr.bf16.mxu1 %v8721_v31  ;;  %v7452_v42 = vld [vmem:[%s9614_s3 + $0x340] ss:$56 sps:$4 sm:$0xff]   ;;  %v7457_v46 = vld [vmem:[%s9614_s3 + $0x2d4] ss:$56 sps:$4 sm:$0xff]  }
 0x20a   : > { %1688 = vmatpush1.bf16.msra.mxu0 %v7362_v47  ;;  %1729 = vmatpush1.bf16.msra.mxu1 %v7365_v53  ;;  %v7476_v47 = vld [vmem:[#allocation8 + $0xe0] ss:$16 sps:$4 sm:$0xff]   ;;  %v7484_v53 = vld [vmem:[#allocation8 + $0xc4] ss:$16 sps:$4 sm:$0xff]  }
 0x20b   : > { %1689 = vmatprep.subr.bf16.mxu0 %v7370_v6  ;;  %1730 = vmatprep.subr.bf16.mxu1 %v7373_v7  ;;  %v7455_v6 = vld [vmem:[%s9614_s3 + $0x2d0] ss:$56 sps:$4 sm:$0xff]   ;;  %v7460_v7 = vld [vmem:[%s9614_s3 + $0x264] ss:$56 sps:$4 sm:$0xff]  }
 0x20e   : > { %1690 = vmatpush1.bf16.msra.mxu0 %v7368_v54  ;;  %1731 = vmatpush1.bf16.msra.mxu1 %v7371_v8  ;;  %v7482_v54 = vld [vmem:[#allocation8 + $0xc0] ss:$16 sps:$4 sm:$0xff]  }
 0x20f   : > { %1691 = vmatprep.subr.bf16.mxu0 %v7376_v9  ;;  %1732 = vmatprep.subr.bf16.mxu1 %v7379_v58  ;;  %v7458_v8 = vld [vmem:[%s9614_s3 + $0x260] ss:$56 sps:$4 sm:$0xff]   ;;  %v7463_v58 = vld [vmem:[%s9614_s3 + $0x1f4] ss:$56 sps:$4 sm:$0xff]  }
 0x210   : > { %v7490_v9 = vld [vmem:[#allocation8 + $0xa4] ss:$16 sps:$4 sm:$0xff]  }
 0x212   : > { %1692 = vmatpush1.bf16.msra.mxu0 %v7374_v10  ;;  %1733 = vmatpush1.bf16.msra.mxu1 %v7377_v59  ;;  %v7461_v10 = vld [vmem:[%s9614_s3 + $0x1f0] ss:$56 sps:$4 sm:$0xff]  }
 0x213   : > { %1693 = vmatprep.subr.bf16.mxu0 %v7382_v11  ;;  %1734 = vmatprep.subr.bf16.mxu1 %v7385_v12  ;;  %v7496_v59 = vld [vmem:[#allocation8 + $0x84] ss:$16 sps:$4 sm:$0xff]   ;;  %v7494_v12 = vld [vmem:[#allocation8 + $0x80] ss:$16 sps:$4 sm:$0xff]  }
 0x214   : > { %v7466_v11 = vld [vmem:[%s9614_s3 + $0x184] ss:$56 sps:$4 sm:$0xff]  }
 0x216   : > { %1694 = vmatpush1.bf16.msra.mxu0 %v7380_v13  ;;  %1735 = vmatpush1.bf16.msra.mxu1 %v7383_v14  ;;  %v7464_v13 = vld [vmem:[%s9614_s3 + $0x180] ss:$56 sps:$4 sm:$0xff]  }
 0x217   : > { %1695 = vmatprep.subr.bf16.mxu0 %v7388_v15  ;;  %1736 = vmatprep.subr.bf16.mxu1 %v7391_v16  ;;  %v7502_v14 = vld [vmem:[#allocation8 + $0x64] ss:$16 sps:$4 sm:$0xff]   ;;  %v7500_v16 = vld [vmem:[#allocation8 + $0x60] ss:$16 sps:$4 sm:$0xff]  }
 0x218   : > { %v7469_v15 = vld [vmem:[%s9614_s3 + $0x114] ss:$56 sps:$4 sm:$0xff]  }
 0x21a   : > { %1696 = vmatpush1.bf16.msra.mxu0 %v7386_v19  ;;  %1737 = vmatpush1.bf16.msra.mxu1 %v7389_v20  ;;  %v7467_v19 = vld [vmem:[%s9614_s3 + $0x110] ss:$56 sps:$4 sm:$0xff]  }
 0x21b   : > { %1697 = vmatprep.subr.bf16.mxu0 %v7394_v21  ;;  %1738 = vmatprep.subr.bf16.mxu1 %v7397_v22  ;;  %v7508_v20 = vld [vmem:[#allocation8 + $0x44] ss:$16 sps:$4 sm:$0xff]   ;;  %v7506_v22 = vld [vmem:[#allocation8 + $0x40] ss:$16 sps:$4 sm:$0xff]  }
 0x21c   : > { %v7472_v21 = vld [vmem:[%s9614_s3 + $0xa4] ss:$56 sps:$4 sm:$0xff]  }
 0x21e   : > { %1698 = vmatpush1.bf16.msra.mxu0 %v7392_v25  ;;  %1739 = vmatpush1.bf16.msra.mxu1 %v7395_v26  ;;  %v7470_v25 = vld [vmem:[%s9614_s3 + $0xa0] ss:$56 sps:$4 sm:$0xff]  }
 0x21f   : > { %1699 = vmatprep.subr.bf16.mxu0 %v7400_v27  ;;  %1740 = vmatprep.subr.bf16.mxu1 %v7403_v28  ;;  %v7514_v26 = vld [vmem:[#allocation8 + $0x24] ss:$16 sps:$4 sm:$0xff]   ;;  %v7512_v28 = vld [vmem:[#allocation8 + $0x20] ss:$16 sps:$4 sm:$0xff]  }
 0x220   : > { %v7475_v27 = vld [vmem:[%s9614_s3 + $0x34] ss:$56 sps:$4 sm:$0xff]  }
 0x222   : > { %1700 = vmatpush1.bf16.msra.mxu0 %v7398_v32  ;;  %1741 = vmatpush1.bf16.msra.mxu1 %v7401_v33  ;;  %v7473_v32 = vld [vmem:[%s9614_s3 + $0x30] ss:$56 sps:$4 sm:$0xff]  }
 0x223   : > { %1767 = vmatprep.subr.bf16.mxu0 %v7406_v36  ;;  %1808 = vmatprep.subr.bf16.mxu1 %v7409_v37  ;;  %v7520_v33 = vld [vmem:[#allocation8 + $0x4] ss:$16 sps:$4 sm:$0xff]   ;;  %v7518_v37 = vld [vmem:[#allocation8] ss:$16 sps:$4 sm:$0xff]  }
 0x224   : > { %v7481_v36 = vld [vmem:[#allocation8 + $0x2e4] ss:$16 sps:$4 sm:$0xff]  }
 0x225   : > { %1718 = vmatmul.mubr.bf16.vlgmr.msra.gmra.mxu0 %v9175_v35  ;;  %1759 = vmatmul.mubr.bf16.vlgmr.msra.gmra.mxu1 %v9175_v35 }
 0x226   : > { %1768 = vmatpush1.bf16.msra.mxu0 %v7404_v38  ;;  %1809 = vmatpush1.bf16.msra.mxu1 %v7407_v39  ;;  %v7479_v38 = vld [vmem:[#allocation8 + $0x2e0] ss:$16 sps:$4 sm:$0xff]   ;;  %v7526_v39 = vld [vmem:[#allocation8 + $0x1e4] ss:$16 sps:$4 sm:$0xff]  }
 0x227   : > { %1769 = vmatprep.subr.bf16.mxu0 %v7412_v40  ;;  %1810 = vmatprep.subr.bf16.mxu1 %v7415_v43  ;;  %v7487_v40 = vld [vmem:[#allocation8 + $0x2c4] ss:$16 sps:$4 sm:$0xff]   ;;  %v7524_v43 = vld [vmem:[#allocation8 + $0x1e0] ss:$16 sps:$4 sm:$0xff]  }
 0x228   : > { %1799 = vmatprep.mubr.bf16.mxu0 %v8721_v31  ;;  %1840 = vmatprep.mubr.bf16.mxu1 %v8721_v31 }
 0x22a   : > { %1770 = vmatpush1.bf16.msra.mxu0 %v7410_v44  ;;  %1811 = vmatpush1.bf16.msra.mxu1 %v7413_v45  ;;  %v7485_v44 = vld [vmem:[#allocation8 + $0x2c0] ss:$16 sps:$4 sm:$0xff]   ;;  %v7532_v45 = vld [vmem:[#allocation8 + $0x1c4] ss:$16 sps:$4 sm:$0xff]  }
 0x22b   : > { %1771 = vmatprep.subr.bf16.mxu0 %v7418_v48  ;;  %1812 = vmatprep.subr.bf16.mxu1 %v7421_v49  ;;  %v7493_v48 = vld [vmem:[#allocation8 + $0x2a4] ss:$16 sps:$4 sm:$0xff]   ;;  %v7530_v49 = vld [vmem:[#allocation8 + $0x1c0] ss:$16 sps:$4 sm:$0xff]  }
 0x22e   : > { %1772 = vmatpush1.bf16.msra.mxu0 %v7416_v50  ;;  %1813 = vmatpush1.bf16.msra.mxu1 %v7419_v51  ;;  %v7491_v50 = vld [vmem:[#allocation8 + $0x2a0] ss:$16 sps:$4 sm:$0xff]   ;;  %v7538_v51 = vld [vmem:[#allocation8 + $0x1a4] ss:$16 sps:$4 sm:$0xff]  }
 0x22f   : > { %1773 = vmatprep.subr.bf16.mxu0 %v7424_v52  ;;  %1814 = vmatprep.subr.bf16.mxu1 %v7427_v55  ;;  %v7499_v52 = vld [vmem:[#allocation8 + $0x284] ss:$16 sps:$4 sm:$0xff]   ;;  %v7536_v55 = vld [vmem:[#allocation8 + $0x1a0] ss:$16 sps:$4 sm:$0xff]  }
 0x232   : > { %1774 = vmatpush1.bf16.msra.mxu0 %v7422_v56  ;;  %1815 = vmatpush1.bf16.msra.mxu1 %v7425_v57  ;;  %v7497_v56 = vld [vmem:[#allocation8 + $0x280] ss:$16 sps:$4 sm:$0xff]   ;;  %v7544_v57 = vld [vmem:[#allocation8 + $0x184] ss:$16 sps:$4 sm:$0xff]  }
 0x233   : > { %1775 = vmatprep.subr.bf16.mxu0 %v7430_v60  ;;  %1816 = vmatprep.subr.bf16.mxu1 %v7433_v17  ;;  %v7505_v60 = vld [vmem:[#allocation8 + $0x264] ss:$16 sps:$4 sm:$0xff]   ;;  %v7542_v17 = vld [vmem:[#allocation8 + $0x180] ss:$16 sps:$4 sm:$0xff]  }
 0x236   : > { %1776 = vmatpush1.bf16.msra.mxu0 %v7428_v61  ;;  %1817 = vmatpush1.bf16.msra.mxu1 %v7431_v62  ;;  %v7550_v61 = vld [vmem:[#allocation8 + $0x164] ss:$16 sps:$4 sm:$0xff]  }
 0x237   : > { %1777 = vmatprep.subr.bf16.mxu0 %v7436_v18  ;;  %1818 = vmatprep.subr.bf16.mxu1 %v7439_v63  ;;  %v7511_v62 = vld [vmem:[#allocation8 + $0x244] ss:$16 sps:$4 sm:$0xff]   ;;  %v7548_v18 = vld [vmem:[#allocation8 + $0x160] ss:$16 sps:$4 sm:$0xff]  }
 0x238   : > { %v7509_v63 = vld [vmem:[#allocation8 + $0x240] ss:$16 sps:$4 sm:$0xff]  }
 0x23a   : > { %1778 = vmatpush1.bf16.msra.mxu0 %v7434_v23  ;;  %1819 = vmatpush1.bf16.msra.mxu1 %v7437_v0  ;;  %v7556_v23 = vld [vmem:[#allocation8 + $0x144] ss:$16 sps:$4 sm:$0xff]  }
 0x23b   : > { %1779 = vmatprep.subr.bf16.mxu0 %v7442_v24  ;;  %1820 = vmatprep.subr.bf16.mxu1 %v7445_v1  ;;  %v7517_v0 = vld [vmem:[#allocation8 + $0x224] ss:$16 sps:$4 sm:$0xff]   ;;  %v7554_v24 = vld [vmem:[#allocation8 + $0x140] ss:$16 sps:$4 sm:$0xff]  }
 0x23c   : > { %v7515_v1 = vld [vmem:[#allocation8 + $0x220] ss:$16 sps:$4 sm:$0xff]  }
 0x23e   : > { %1780 = vmatpush1.bf16.msra.mxu0 %v7440_v29  ;;  %1821 = vmatpush1.bf16.msra.mxu1 %v7443_v2  ;;  %v7562_v29 = vld [vmem:[#allocation8 + $0x124] ss:$16 sps:$4 sm:$0xff]  }
 0x23f   : > { %1781 = vmatprep.subr.bf16.mxu0 %v7448_v30  ;;  %1822 = vmatprep.subr.bf16.mxu1 %v7451_v3  ;;  %v7523_v2 = vld [vmem:[#allocation8 + $0x204] ss:$16 sps:$4 sm:$0xff]   ;;  %v7560_v30 = vld [vmem:[#allocation8 + $0x120] ss:$16 sps:$4 sm:$0xff]  }
 0x240   : > { %v7521_v3 = vld [vmem:[#allocation8 + $0x200] ss:$16 sps:$4 sm:$0xff]  }
 0x242   : > { %1782 = vmatpush1.bf16.msra.mxu0 %v7446_v34  ;;  %1823 = vmatpush1.bf16.msra.mxu1 %v7449_v4  ;;  %v7568_v34 = vld [vmem:[#allocation8 + $0x104] ss:$16 sps:$4 sm:$0xff]  }
 0x243   : > { %1849 = vmatprep.subr.bf16.mxu0 %v7454_v5  ;;  %4712 = vmatprep.subr.bf16.mxu1 %v7478_v41  ;;  %v7529_v4 = vld [vmem:[#allocation8 + $0x3e4] ss:$16 sps:$4 sm:$0xff]   ;;  %v7566_v5 = vld [vmem:[#allocation8 + $0x100] ss:$16 sps:$4 sm:$0xff]  }
 0x244   : > { %v7574_v41 = vld [vmem:[#allocation8 + $0x4e4] ss:$16 sps:$4 sm:$0xff]  }
 0x245   : > { %1800 = vmatmul.mubr.bf16.vlgmr.msra.gmra.mxu0 %v9175_v35  ;;  %1841 = vmatmul.mubr.bf16.vlgmr.msra.gmra.mxu1 %v9175_v35 }
 0x246   : > { %1850 = vmatpush1.bf16.msra.mxu0 %v7452_v42  ;;  %1881 = vmatprep.mubr.bf16.mxu0 %v8721_v31  ;;  %v7488_v31 = vld [vmem:[#allocation8 + $0xa0] ss:$16 sps:$4 sm:$0xff]  }
 0x247   : > { %1851 = vmatprep.subr.bf16.mxu0 %v7457_v46  ;;  %4713 = vmatpush1.bf16.msra.mxu1 %v7476_v47  ;;  %v7527_v42 = vld [vmem:[#allocation8 + $0x3e0] ss:$16 sps:$4 sm:$0xff]   ;;  %v7535_v46 = vld [vmem:[#allocation8 + $0x3c4] ss:$16 sps:$4 sm:$0xff]  }
 0x248   : > { %4714 = vmatprep.subr.bf16.mxu1 %v7484_v53  ;;  %v7533_v47 = vld [vmem:[#allocation8 + $0x3c0] ss:$16 sps:$4 sm:$0xff]   ;;  %v7541_v53 = vld [vmem:[#allocation8 + $0x3a4] ss:$16 sps:$4 sm:$0xff]  }
 0x24a   : > { %1852 = vmatpush1.bf16.msra.mxu0 %v7455_v6  ;;  %v7539_v6 = vld [vmem:[#allocation8 + $0x3a0] ss:$16 sps:$4 sm:$0xff]  }
 0x24b   : > { %1853 = vmatprep.subr.bf16.mxu0 %v7460_v7  ;;  %4715 = vmatpush1.bf16.msra.mxu1 %v7482_v54  ;;  %v7547_v7 = vld [vmem:[#allocation8 + $0x384] ss:$16 sps:$4 sm:$0xff]   ;;  %v7545_v54 = vld [vmem:[#allocation8 + $0x380] ss:$16 sps:$4 sm:$0xff]  }
 0x24c   : > { %4716 = vmatprep.subr.bf16.mxu1 %v7490_v9  ;;  %v7551_v9 = vld [vmem:[#allocation8 + $0x360] ss:$16 sps:$4 sm:$0xff]  }
 0x24e   : > { %1854 = vmatpush1.bf16.msra.mxu0 %v7458_v8  ;;  %v7553_v8 = vld [vmem:[#allocation8 + $0x364] ss:$16 sps:$4 sm:$0xff]  }
 0x24f   : > { %1855 = vmatprep.subr.bf16.mxu0 %v7463_v58  ;;  %4717 = vmatpush1.bf16.msra.mxu1 %v7488_v31  ;;  %v7559_v58 = vld [vmem:[#allocation8 + $0x344] ss:$16 sps:$4 sm:$0xff]   ;;  %v7557_v31 = vld [vmem:[#allocation8 + $0x340] ss:$16 sps:$4 sm:$0xff]  }
 0x250   : > { %4718 = vmatprep.subr.bf16.mxu1 %v7496_v59  ;;  %v7563_v59 = vld [vmem:[#allocation8 + $0x320] ss:$16 sps:$4 sm:$0xff]  }
 0x252   : > { %1856 = vmatpush1.bf16.msra.mxu0 %v7461_v10  ;;  %v7565_v10 = vld [vmem:[#allocation8 + $0x324] ss:$16 sps:$4 sm:$0xff]  }
 0x253   : > { %1857 = vmatprep.subr.bf16.mxu0 %v7466_v11  ;;  %4719 = vmatpush1.bf16.msra.mxu1 %v7494_v12  ;;  %v7571_v11 = vld [vmem:[#allocation8 + $0x304] ss:$16 sps:$4 sm:$0xff]   ;;  %v7569_v12 = vld [vmem:[#allocation8 + $0x300] ss:$16 sps:$4 sm:$0xff]  }
 0x254   : > { %4720 = vmatprep.subr.bf16.mxu1 %v7502_v14 }
 0x256   : > { %1858 = vmatpush1.bf16.msra.mxu0 %v7464_v13  ;;  %v7577_v13 = vld [vmem:[#allocation8 + $0x6e4] ss:$16 sps:$4 sm:$0xff]  }
 0x257   : > { %1859 = vmatprep.subr.bf16.mxu0 %v7469_v15  ;;  %4721 = vmatpush1.bf16.msra.mxu1 %v7500_v16 }
 0x258   : > { %4722 = vmatprep.subr.bf16.mxu1 %v7508_v20 }
 0x25a   : > { %1860 = vmatpush1.bf16.msra.mxu0 %v7467_v19 }
 0x25b   : > { %1861 = vmatprep.subr.bf16.mxu0 %v7472_v21  ;;  %4723 = vmatpush1.bf16.msra.mxu1 %v7506_v22 }
 0x25c   : > { %4724 = vmatprep.subr.bf16.mxu1 %v7514_v26 }
 0x25e   : > { %1862 = vmatpush1.bf16.msra.mxu0 %v7470_v25 }
 0x25f   : > { %1863 = vmatprep.subr.bf16.mxu0 %v7475_v27  ;;  %4725 = vmatpush1.bf16.msra.mxu1 %v7512_v28 }
 0x260   : > { %4726 = vmatprep.subr.bf16.mxu1 %v7520_v33 }
 0x262   : > { %1864 = vmatpush1.bf16.msra.mxu0 %v7473_v32 }
 0x263   : > { %4753 = vmatprep.subr.bf16.mxu0 %v7481_v36  ;;  %4727 = vmatpush1.bf16.msra.mxu1 %v7518_v37 }
 0x264   : > { %4728 = vmatprep.subr.bf16.mxu1 %v7526_v39 }
 0x265   : > { %1882 = vmatmul.mubr.bf16.vlgmr.msra.gmra.mxu0 %v9175_v35  ;;  %v7503_v35 = vld [vmem:[#allocation8 + $0x260] ss:$16 sps:$4 sm:$0xff]  }
 0x266   : > { %4754 = vmatpush1.bf16.msra.mxu0 %v7479_v38 }
 0x267   : > { %4755 = vmatprep.subr.bf16.mxu0 %v7487_v40  ;;  %4729 = vmatpush2.bf16.msra.mxu1 %v7524_v43 }
 0x268   : > { %4730 = vmatprep.subr.bf16.mxu1 %v7532_v45 }
 0x26a   : > { %4756 = vmatpush1.bf16.msra.mxu0 %v7485_v44 }
 0x26b   : > { %4757 = vmatprep.subr.bf16.mxu0 %v7493_v48  ;;  %4731 = vmatpush2.bf16.msra.mxu1 %v7530_v49 }
 0x26c   : > { %4732 = vmatprep.subr.bf16.mxu1 %v7538_v51 }
 0x26e   : > { %4758 = vmatpush1.bf16.msra.mxu0 %v7491_v50 }
 0x26f   : > { %4759 = vmatprep.subr.bf16.mxu0 %v7499_v52  ;;  %4733 = vmatpush2.bf16.msra.mxu1 %v7536_v55 }
 0x270   : > { %4734 = vmatprep.subr.bf16.mxu1 %v7544_v57 }
 0x272   : > { %4760 = vmatpush1.bf16.msra.mxu0 %v7497_v56 }
 0x273   : > { %4761 = vmatprep.subr.bf16.mxu0 %v7505_v60  ;;  %4735 = vmatpush2.bf16.msra.mxu1 %v7542_v17 }
 0x274   : > { %4736 = vmatprep.subr.bf16.mxu1 %v7550_v61  ;;  %v7572_v61 = vld [vmem:[#allocation8 + $0x4e0] ss:$16 sps:$4 sm:$0xff]  }
 0x276   : > { %4762 = vmatpush1.bf16.msra.mxu0 %v7503_v35 }
 0x277   : > { %4763 = vmatprep.subr.bf16.mxu0 %v7511_v62  ;;  %4737 = vmatpush2.bf16.msra.mxu1 %v7548_v18 }
 0x278   : > { %4738 = vmatprep.subr.bf16.mxu1 %v7556_v23  ;;  %v7580_v23 = vld [vmem:[#allocation8 + $0x4c4] ss:$16 sps:$4 sm:$0xff]  }
 0x27a   : > { %4764 = vmatpush1.bf16.msra.mxu0 %v7509_v63  ;;  %v7575_v63 = vld [vmem:[#allocation8 + $0x6e0] ss:$16 sps:$4 sm:$0xff]  }
 0x27b   : > { %4765 = vmatprep.subr.bf16.mxu0 %v7517_v0  ;;  %4739 = vmatpush2.bf16.msra.mxu1 %v7554_v24 }
 0x27c   : > { %4740 = vmatprep.subr.bf16.mxu1 %v7562_v29 }
 0x27e   : > { %4766 = vmatpush1.bf16.msra.mxu0 %v7515_v1 }
 0x27f   : > { %4767 = vmatprep.subr.bf16.mxu0 %v7523_v2  ;;  %4741 = vmatpush2.bf16.msra.mxu1 %v7560_v30 }
 0x280   : > { %4742 = vmatprep.subr.bf16.mxu1 %v7568_v34 }
 0x282   : > { %4768 = vmatpush1.bf16.msra.mxu0 %v7521_v3 }
 0x283   : > { %4769 = vmatprep.subr.bf16.mxu0 %v7529_v4  ;;  %4743 = vmatpush2.bf16.msra.mxu1 %v7566_v5  ;;  %v7583_v4 = vld [vmem:[#allocation8 + $0x6c4] ss:$16 sps:$4 sm:$0xff]   ;;  %v7578_v5 = vld [vmem:[#allocation8 + $0x4c0] ss:$16 sps:$4 sm:$0xff]  }
 0x284   : > { %4794 = vmatprep.subr.bf16.mxu1 %v7574_v41  ;;  %v7581_v41 = vld [vmem:[#allocation8 + $0x6c0] ss:$16 sps:$4 sm:$0xff]  }
 0x286   : > { %4770 = vmatpush2.bf16.msra.mxu0 %v7527_v42  ;;  %v7586_v42 = vld [vmem:[#allocation8 + $0x4a4] ss:$16 sps:$4 sm:$0xff]  }
 0x287   : > { %4771 = vmatprep.subr.bf16.mxu0 %v7535_v46  ;;  %v7584_v46 = vld [vmem:[#allocation8 + $0x4a0] ss:$16 sps:$4 sm:$0xff]  }
 0x28a   : > { %4772 = vmatpush2.bf16.msra.mxu0 %v7533_v47  ;;  %v7589_v47 = vld [vmem:[#allocation8 + $0x6a4] ss:$16 sps:$4 sm:$0xff]  }
 0x28b   : > { %4773 = vmatprep.subr.bf16.mxu0 %v7541_v53  ;;  %v7587_v53 = vld [vmem:[#allocation8 + $0x6a0] ss:$16 sps:$4 sm:$0xff]  }
 0x28e   : > { %4774 = vmatpush2.bf16.msra.mxu0 %v7539_v6  ;;  %v7592_v6 = vld [vmem:[#allocation8 + $0x484] ss:$16 sps:$4 sm:$0xff]  }
 0x28f   : > { %4775 = vmatprep.subr.bf16.mxu0 %v7547_v7  ;;  %v7595_v7 = vld [vmem:[#allocation8 + $0x684] ss:$16 sps:$4 sm:$0xff]  }
 0x292   : > { %4776 = vmatpush2.bf16.msra.mxu0 %v7545_v54  ;;  %v7590_v54 = vld [vmem:[#allocation8 + $0x480] ss:$16 sps:$4 sm:$0xff]  }
 0x293   : > { %4777 = vmatprep.subr.bf16.mxu0 %v7553_v8 }
 0x296   : > { %4778 = vmatpush2.bf16.msra.mxu0 %v7551_v9  ;;  %v7593_v9 = vld [vmem:[#allocation8 + $0x680] ss:$16 sps:$4 sm:$0xff]  }
 0x297   : > { %4779 = vmatprep.subr.bf16.mxu0 %v7559_v58  ;;  %v7598_v58 = vld [vmem:[#allocation8 + $0x464] ss:$16 sps:$4 sm:$0xff]  }
 0x29a   : > { %4780 = vmatpush2.bf16.msra.mxu0 %v7557_v31 }
 0x29b   : > { %4781 = vmatprep.subr.bf16.mxu0 %v7565_v10 }
 0x29e   : > { %4782 = vmatpush2.bf16.msra.mxu0 %v7563_v59  ;;  %v7596_v59 = vld [vmem:[#allocation8 + $0x460] ss:$16 sps:$4 sm:$0xff]  }
 0x29f   : > { %4783 = vmatprep.subr.bf16.mxu0 %v7571_v11  ;;  %v7601_v11 = vld [vmem:[#allocation8 + $0x664] ss:$16 sps:$4 sm:$0xff]  }
 0x2a2   : > { %4784 = vmatpush2.bf16.msra.mxu0 %v7569_v12 }
 0x2a3   : > { %4835 = vmatprep.subr.bf16.mxu0 %v7577_v13  ;;  %v7599_v13 = vld [vmem:[#allocation8 + $0x660] ss:$16 sps:$4 sm:$0xff]  }
 0x2c5   : > { %v1637_v14 = vpop.f32.mrf.mxu0  ;;  %v1678_v15 = vpop.f32.mrf.mxu1 }
 0x2c6   : > { %v6413_v16 = vmul.f32 -1.442695, %v1637_v14  ;;  %v6415_v19 = vmul.f32 -1.442695, %v1678_v15 }
 0x2c7   : > { %v1639_v20 = vpop.f32.mrf.mxu0  ;;  %v1680_v21 = vpop.f32.mrf.mxu1 }
 0x2c8   : > { %8268 = vpow2.f32 %v6413_v16  ;;  %v6414_v22 = vmul.f32 -1.442695, %v1639_v20  ;;  %v6416_v25 = vmul.f32 -1.442695, %v1680_v21  ;;  %v7602_v16 = vld [vmem:[#allocation8 + $0x440] ss:$16 sps:$4 sm:$0xff]  }
 0x2c9   : > { %8270 = vpow2.f32 %v6415_v19  ;;  %v1641_v26 = vpop.f32.mrf.mxu0  ;;  %v1682_v27 = vpop.f32.mrf.mxu1  ;;  %v7605_v19 = vld [vmem:[#allocation8 + $0x640] ss:$16 sps:$4 sm:$0xff]  }
 0x2ca   : > { %8272 = vpow2.f32 %v6414_v22  ;;  %v7613_v22 = vld [vmem:[#allocation8 + $0x624] ss:$16 sps:$4 sm:$0xff]   ;;  %v7608_v26 = vld [vmem:[#allocation8 + $0x420] ss:$16 sps:$4 sm:$0xff]  }
 0x2cb   : > { %8274 = vpow2.f32 %v6416_v25  ;;  %v1642_v28 = vpop.f32.mrf.mxu0  ;;  %v1683_v32 = vpop.f32.mrf.mxu1  ;;  %v7611_v27 = vld [vmem:[#allocation8 + $0x620] ss:$16 sps:$4 sm:$0xff]  }
 0x2cc   : > { %v7616_v28 = vld [vmem:[#allocation8 + $0x404] ss:$16 sps:$4 sm:$0xff]  }
 0x2cd   : > { %v7619_v32 = vld [vmem:[#allocation8 + $0x604] ss:$16 sps:$4 sm:$0xff]  }
 0x2d5   : > { %v8269_v33 = vpop.eup %8268 }
 0x2d6   : > { %v8271_v36 = vpop.eup %8270  ;;  %v1932_v37 = vadd.f32 1.0, %v8269_v33 }
 0x2d7   : > { %v8273_v38 = vpop.eup %8272  ;;  %v1934_v39 = vadd.f32 1.0, %v8271_v36 }
 0x2d8   : > { %v8275_v40 = vpop.eup %8274  ;;  %8276 = vrcp.f32 %v1932_v37  ;;  %v1933_v43 = vadd.f32 1.0, %v8273_v38  ;;  %v7614_v37 = vld [vmem:[#allocation8 + $0x400] ss:$16 sps:$4 sm:$0xff]  }
 0x2d9   : > { %8278 = vrcp.f32 %v1934_v39  ;;  %v1935_v44 = vadd.f32 1.0, %v8275_v40  ;;  %v7617_v39 = vld [vmem:[#allocation8 + $0x600] ss:$16 sps:$4 sm:$0xff]   ;;  %v7622_v40 = vld [vmem:[#allocation8 + $0x5e4] ss:$16 sps:$4 sm:$0xff]  }
 0x2da   : > { %8280 = vrcp.f32 %v1933_v43 }
 0x2db   : > { %8282 = vrcp.f32 %v1935_v44 }
 0x2e5   : > { %v8277_v45 = vpop.eup %8276  ;;  %v9423_v48 = vpop.f32.mrf.mxu0 }
 0x2e6   : > { %v9425_v49 = vpop.f32.mrf.mxu1  ;;  %v8279_v50 = vpop.eup %8278  ;;  %v1974_v52 = vmul.f32 %v8277_v45, %v1637_v14  ;;  %v7604_v14 = vld [vmem:[#allocation8 + $0x444] ss:$16 sps:$4 sm:$0xff]  }
 0x2e7   : > { %v8281_v51 = vpop.eup %8280  ;;  %v9427_v55 = vpop.f32.mrf.mxu0  ;;  %v1976_v60 = vmul.f32 %v8279_v50, %v1678_v15  ;;  %v7607_v15 = vld [vmem:[#allocation8 + $0x644] ss:$16 sps:$4 sm:$0xff]   ;;  %v6419_v25 = vmul.f32 -1.442695, %v9425_v49 }
 0x2e8   : > { %v9429_v56 = vpop.f32.mrf.mxu1  ;;  %v8283_v57 = vpop.eup %8282  ;;  %v1975_v17 = vmul.f32 %v8281_v51, %v1639_v20  ;;  %v6418_v35 = vmul.f32 -1.442695, %v9427_v55  ;;  %v9435_v29 = vpack.c.bf16 %v1974_v52, %v1974_v52  ;;  %v6417_v20 = vmul.f32 -1.442695, %v9423_v48  ;;  %v7620_v51 = vld [vmem:[#allocation8 + $0x5e0] ss:$16 sps:$4 sm:$0xff]  }
 0x2e9   : > { %v1977_v62 = vmul.f32 %v8283_v57, %v1680_v21  ;;  %v6420_v18 = vmul.f32 -1.442695, %v9429_v56  ;;  %v1723_v0 = vpop.f32.mrf.mxu0  ;;  %v9439_v34 = vpack.c.bf16 %v1976_v60, %v1976_v60  ;;  %v7610_v21 = vld [vmem:[#allocation8 + $0x424] ss:$16 sps:$4 sm:$0xff]  }
 0x2ea   : > { %v1764_v24 = vpop.f32.mrf.mxu1  ;;  %v9433_v1 = vpack.c.bf16 %v1975_v17, %v1975_v17  ;;  %8284 = vpow2.f32 %v6418_v35  ;;  %v7625_v52 = vld [vmem:[#allocation8 + $0x7e4] ss:$16 sps:$4 sm:$0xff]  }
 0x2eb   : > { %v9437_v2 = vpack.c.bf16 %v1977_v62, %v1977_v62  ;;  %8286 = vpow2.f32 %v6420_v18  ;;  %v1724_v30 = vpop.f32.mrf.mxu0  ;;  %v7631_v24 = vld [vmem:[#allocation8 + $0x7c4] ss:$16 sps:$4 sm:$0xff]  }
 0x2ec   : > { %v1765_v3 = vpop.f32.mrf.mxu1  ;;  %4744 = vmatprep.mubr.bf16.mxu1 %v9433_v1  ;;  %v7629_v30 = vld [vmem:[#allocation8 + $0x7c0] ss:$16 sps:$4 sm:$0xff]  }
 0x2ed   : > { %4785 = vmatprep.mubr.bf16.mxu0 %v9437_v2  ;;  %4745 = vmatmul.mubr.bf16.vlgmr.msra.gmra.mxu1 %v9435_v29  ;;  %v7634_v3 = vld [vmem:[#allocation8 + $0x5a4] ss:$16 sps:$4 sm:$0xff]  }
 0x2ee   : > { %4786 = vmatmul.mubr.bf16.vlgmr.msra.gmra.mxu0 %v9439_v34  ;;  %4795 = vmatpush1.bf16.msra.mxu1 %v7572_v61 }
 0x2ef   : > { %4836 = vmatpush1.bf16.msra.mxu0 %v7575_v63  ;;  %4796 = vmatprep.subr.bf16.mxu1 %v7580_v23  ;;  %v7628_v63 = vld [vmem:[#allocation8 + $0x5c4] ss:$16 sps:$4 sm:$0xff]  }
 0x2f0   : > { %4837 = vmatprep.subr.bf16.mxu0 %v7583_v4 }
 0x2f2   : > { %4797 = vmatpush1.bf16.msra.mxu1 %v7578_v5  ;;  %v7632_v5 = vld [vmem:[#allocation8 + $0x5a0] ss:$16 sps:$4 sm:$0xff]  }
 0x2f3   : > { %4838 = vmatpush1.bf16.msra.mxu0 %v7581_v41  ;;  %4798 = vmatprep.subr.bf16.mxu1 %v7586_v42  ;;  %v7637_v41 = vld [vmem:[#allocation8 + $0x7a4] ss:$16 sps:$4 sm:$0xff]  }
 0x2f4   : > { %4839 = vmatprep.subr.bf16.mxu0 %v7589_v47  ;;  %v7635_v47 = vld [vmem:[#allocation8 + $0x7a0] ss:$16 sps:$4 sm:$0xff]  }
 0x2f6   : > { %4799 = vmatpush1.bf16.msra.mxu1 %v7584_v46 }
 0x2f7   : > { %v8285_v8 = vpop.eup %8284  ;;  %4840 = vmatpush1.bf16.msra.mxu0 %v7587_v53  ;;  %4800 = vmatprep.subr.bf16.mxu1 %v7592_v6  ;;  %v7640_v53 = vld [vmem:[#allocation8 + $0x584] ss:$16 sps:$4 sm:$0xff]  }
 0x2f8   : > { %v8287_v31 = vpop.eup %8286  ;;  %v1937_v10 = vadd.f32 1.0, %v8285_v8  ;;  %4841 = vmatprep.subr.bf16.mxu0 %v7595_v7  ;;  %v7638_v7 = vld [vmem:[#allocation8 + $0x580] ss:$16 sps:$4 sm:$0xff]  }
 0x2f9   : > { %v1939_v12 = vadd.f32 1.0, %v8287_v31 }
 0x2fa   : > { %8288 = vrcp.f32 %v1937_v10  ;;  %4801 = vmatpush1.bf16.msra.mxu1 %v7590_v54  ;;  %v7643_v54 = vld [vmem:[#allocation8 + $0x784] ss:$16 sps:$4 sm:$0xff]   ;;  %v7644_v10 = vld [vmem:[#allocation8 + $0x560] ss:$16 sps:$4 sm:$0xff]  }
 0x2fb   : > { %8290 = vrcp.f32 %v1939_v12  ;;  %4842 = vmatpush1.bf16.msra.mxu0 %v7593_v9  ;;  %4802 = vmatprep.subr.bf16.mxu1 %v7598_v58  ;;  %v7641_v9 = vld [vmem:[#allocation8 + $0x780] ss:$16 sps:$4 sm:$0xff]   ;;  %v7646_v58 = vld [vmem:[#allocation8 + $0x564] ss:$16 sps:$4 sm:$0xff]  }
 0x2fc   : > { %4843 = vmatprep.subr.bf16.mxu0 %v7601_v11  ;;  %8292 = vpow2.f32 %v6417_v20  ;;  %v7658_v20 = vld [vmem:[#allocation8 + $0x524] ss:$16 sps:$4 sm:$0xff]  }
 0x2fd   : > { %8294 = vpow2.f32 %v6419_v25  ;;  %v7659_v25 = vld [vmem:[#allocation8 + $0x720] ss:$16 sps:$4 sm:$0xff]  }
 0x2fe   : > { %4803 = vmatpush1.bf16.msra.mxu1 %v7596_v59  ;;  %v7649_v59 = vld [vmem:[#allocation8 + $0x764] ss:$16 sps:$4 sm:$0xff]  }
 0x2ff   : > { %4844 = vmatpush1.bf16.msra.mxu0 %v7599_v13  ;;  %4804 = vmatprep.subr.bf16.mxu1 %v7604_v14  ;;  %v7647_v13 = vld [vmem:[#allocation8 + $0x760] ss:$16 sps:$4 sm:$0xff]   ;;  %v7652_v14 = vld [vmem:[#allocation8 + $0x544] ss:$16 sps:$4 sm:$0xff]  }
 0x300   : > { %4845 = vmatprep.subr.bf16.mxu0 %v7607_v15  ;;  %v7650_v15 = vld [vmem:[#allocation8 + $0x540] ss:$16 sps:$4 sm:$0xff]  }
 0x302   : > { %4805 = vmatpush1.bf16.msra.mxu1 %v7602_v16  ;;  %v7655_v16 = vld [vmem:[#allocation8 + $0x744] ss:$16 sps:$4 sm:$0xff]  }
 0x303   : > { %4846 = vmatpush1.bf16.msra.mxu0 %v7605_v19  ;;  %4806 = vmatprep.subr.bf16.mxu1 %v7610_v21  ;;  %v7653_v19 = vld [vmem:[#allocation8 + $0x740] ss:$16 sps:$4 sm:$0xff]   ;;  %v7661_v21 = vld [vmem:[#allocation8 + $0x724] ss:$16 sps:$4 sm:$0xff]  }
 0x304   : > { %4847 = vmatprep.subr.bf16.mxu0 %v7613_v22  ;;  %v7656_v22 = vld [vmem:[#allocation8 + $0x520] ss:$16 sps:$4 sm:$0xff]  }
 0x305   : > { %v9447_v33 = vpop.f32.mrf.mxu0  ;;  %v9449_v36 = vpop.f32.mrf.mxu1 }
 0x306   : > { %4807 = vmatpush1.bf16.msra.mxu1 %v7608_v26  ;;  %v7664_v26 = vld [vmem:[#allocation8 + $0x504] ss:$16 sps:$4 sm:$0xff]  }
 0x307   : > { %v8289_v38 = vpop.eup %8288  ;;  %4848 = vmatpush1.bf16.msra.mxu0 %v7611_v27  ;;  %4808 = vmatprep.subr.bf16.mxu1 %v7616_v28  ;;  %v9451_v43 = vpop.f32.mrf.mxu0  ;;  %v7667_v27 = vld [vmem:[#allocation8 + $0x704] ss:$16 sps:$4 sm:$0xff]  }
 0x308   : > { %v9453_v44 = vpop.f32.mrf.mxu1  ;;  %v8291_v45 = vpop.eup %8290  ;;  %v1979_v50 = vmul.f32 %v8289_v38, %v9427_v55  ;;  %4849 = vmatprep.subr.bf16.mxu0 %v7619_v32  ;;  %v6422_v57 = vmul.f32 -1.442695, %v9451_v43  ;;  %v7623_v55 = vld [vmem:[#allocation8 + $0x7e0] ss:$16 sps:$4 sm:$0xff]  }
 0x309   : > { %v1981_v60 = vmul.f32 %v8291_v45, %v9429_v56  ;;  %v6424_v17 = vmul.f32 -1.442695, %v9453_v44  ;;  %v1805_v35 = vpop.f32.mrf.mxu0  ;;  %v7626_v56 = vld [vmem:[#allocation8 + $0x5c0] ss:$16 sps:$4 sm:$0xff]   ;;  %v8293_v4 = vpop.eup %8292 }
 0x30a   : > { %v1846_v61 = vpop.f32.mrf.mxu1  ;;  %v9459_v62 = vpack.c.bf16 %v1979_v50, %v1979_v50  ;;  %4809 = vmatpush1.bf16.msra.mxu1 %v7614_v37  ;;  %8296 = vpow2.f32 %v6422_v57  ;;  %v8295_v42 = vpop.eup %8294  ;;  %v1936_v46 = vadd.f32 1.0, %v8293_v4  ;;  %v7662_v32 = vld [vmem:[#allocation8 + $0x500] ss:$16 sps:$4 sm:$0xff]   ;;  %v7670_v50 = vld [vmem:[#allocation8 + $0x8e4] ss:$16 sps:$4 sm:$0xff]  }
 0x30b   : > { %v9461_v18 = vpack.c.bf16 %v1981_v60, %v1981_v60  ;;  %4850 = vmatpush1.bf16.msra.mxu0 %v7617_v39  ;;  %4810 = vmatprep.subr.bf16.mxu1 %v7622_v40  ;;  %8298 = vpow2.f32 %v6424_v17  ;;  %v1806_v23 = vpop.f32.mrf.mxu0  ;;  %v1938_v6 = vadd.f32 1.0, %v8295_v42  ;;  %v7665_v45 = vld [vmem:[#allocation8 + $0x700] ss:$16 sps:$4 sm:$0xff]   ;;  %v7685_v4 = vld [vmem:[#allocation8 + $0xaa4] ss:$16 sps:$4 sm:$0xff]  }
 0x30c   : > { %v1847_v0 = vpop.f32.mrf.mxu1  ;;  %4826 = vmatprep.mubr.bf16.mxu1 %v9459_v62  ;;  %4851 = vmatprep.subr.bf16.mxu0 %v7625_v52  ;;  %8300 = vrcp.f32 %v1936_v46  ;;  %v7668_v35 = vld [vmem:[#allocation8 + $0x8e0] ss:$16 sps:$4 sm:$0xff]   ;;  %v7688_v42 = vld [vmem:[#allocation8 + $0x884] ss:$16 sps:$4 sm:$0xff]  }
 0x30d   : > { %4867 = vmatprep.mubr.bf16.mxu0 %v9461_v18  ;;  %8302 = vrcp.f32 %v1938_v6  ;;  %v7691_v46 = vld [vmem:[#allocation8 + $0xa84] ss:$16 sps:$4 sm:$0xff]  }
 0x30e   : > { %4811 = vmatpush2.bf16.msra.mxu1 %v7620_v51  ;;  %v7673_v51 = vld [vmem:[#allocation8 + $0xae4] ss:$16 sps:$4 sm:$0xff]  }
 0x30f   : > { %4852 = vmatpush2.bf16.msra.mxu0 %v7623_v55  ;;  %4812 = vmatprep.subr.bf16.mxu1 %v7628_v63  ;;  %v7671_v55 = vld [vmem:[#allocation8 + $0xae0] ss:$16 sps:$4 sm:$0xff]   ;;  %v7676_v63 = vld [vmem:[#allocation8 + $0x8c4] ss:$16 sps:$4 sm:$0xff]  }
 0x310   : > { %4853 = vmatprep.subr.bf16.mxu0 %v7631_v24  ;;  %v7694_v6 = vld [vmem:[#allocation8 + $0x864] ss:$16 sps:$4 sm:$0xff]  }
 0x312   : > { %4813 = vmatpush2.bf16.msra.mxu1 %v7626_v56 }
 0x313   : > { %4854 = vmatpush2.bf16.msra.mxu0 %v7629_v30  ;;  %4814 = vmatprep.subr.bf16.mxu1 %v7634_v3  ;;  %v7677_v30 = vld [vmem:[#allocation8 + $0xac0] ss:$16 sps:$4 sm:$0xff]   ;;  %v7682_v3 = vld [vmem:[#allocation8 + $0x8a4] ss:$16 sps:$4 sm:$0xff]  }
 0x314   : > { %4855 = vmatprep.subr.bf16.mxu0 %v7637_v41  ;;  %v7683_v41 = vld [vmem:[#allocation8 + $0xaa0] ss:$16 sps:$4 sm:$0xff]  }
 0x316   : > { %4815 = vmatpush2.bf16.msra.mxu1 %v7632_v5  ;;  %v7680_v5 = vld [vmem:[#allocation8 + $0x8a0] ss:$16 sps:$4 sm:$0xff]  }
 0x317   : > { %v8297_v8 = vpop.eup %8296  ;;  %4856 = vmatpush2.bf16.msra.mxu0 %v7635_v47  ;;  %4816 = vmatprep.subr.bf16.mxu1 %v7640_v53  ;;  %v7686_v47 = vld [vmem:[#allocation8 + $0x880] ss:$16 sps:$4 sm:$0xff]  }
 0x318   : > { %v8299_v31 = vpop.eup %8298  ;;  %4857 = vmatprep.subr.bf16.mxu0 %v7643_v54  ;;  %v1941_v11 = vadd.f32 1.0, %v8297_v8  ;;  %v7689_v53 = vld [vmem:[#allocation8 + $0xa80] ss:$16 sps:$4 sm:$0xff]   ;;  %v7697_v54 = vld [vmem:[#allocation8 + $0xa64] ss:$16 sps:$4 sm:$0xff]  }
 0x319   : > { %v1943_v12 = vadd.f32 1.0, %v8299_v31  ;;  %v8301_v28 = vpop.eup %8300  ;;  %v7695_v8 = vld [vmem:[#allocation8 + $0xa60] ss:$16 sps:$4 sm:$0xff]   ;;  %v7703_v31 = vld [vmem:[#allocation8 + $0xa44] ss:$16 sps:$4 sm:$0xff]  }
 0x31a   : > { %4817 = vmatpush2.bf16.msra.mxu1 %v7638_v7  ;;  %8304 = vrcp.f32 %v1941_v11  ;;  %v8303_v37 = vpop.eup %8302  ;;  %v1978_v40 = vmul.f32 %v8301_v28, %v9423_v48  ;;  %v7692_v7 = vld [vmem:[#allocation8 + $0x860] ss:$16 sps:$4 sm:$0xff]   ;;  %v6421_v11 = vmul.f32 -1.442695, %v9447_v33 }
 0x31b   : > { %4858 = vmatpush2.bf16.msra.mxu0 %v7641_v9  ;;  %4818 = vmatprep.subr.bf16.mxu1 %v7646_v58  ;;  %8306 = vrcp.f32 %v1943_v12  ;;  %v1980_v60 = vmul.f32 %v8303_v37, %v9425_v49  ;;  %v7679_v49 = vld [vmem:[#allocation8 + $0xac4] ss:$16 sps:$4 sm:$0xff]   ;;  %v7698_v58 = vld [vmem:[#allocation8 + $0x840] ss:$16 sps:$4 sm:$0xff]   ;;  %v6423_v12 = vmul.f32 -1.442695, %v9449_v36 }
 0x31c   : > { %4859 = vmatprep.subr.bf16.mxu0 %v7649_v59  ;;  %v9473_v48 = vpack.c.bf16 %v1978_v40, %v1978_v40  ;;  %v7700_v9 = vld [vmem:[#allocation8 + $0x844] ss:$16 sps:$4 sm:$0xff]   ;;  %8308 = vpow2.f32 %v6421_v11  ;;  %v7719_v28 = vld [vmem:[#allocation8 + $0xbe0] ss:$16 sps:$4 sm:$0xff]  }
 0x31d   : > { %v9475_v56 = vpack.c.bf16 %v1980_v60, %v1980_v60  ;;  %v7706_v59 = vld [vmem:[#allocation8 + $0x824] ss:$16 sps:$4 sm:$0xff]   ;;  %8310 = vpow2.f32 %v6423_v12  ;;  %v7725_v40 = vld [vmem:[#allocation8 + $0xbc0] ss:$16 sps:$4 sm:$0xff]  }
 0x31e   : > { %4819 = vmatpush2.bf16.msra.mxu1 %v7644_v10  ;;  %v7701_v10 = vld [vmem:[#allocation8 + $0xa40] ss:$16 sps:$4 sm:$0xff]   ;;  %v7727_v37 = vld [vmem:[#allocation8 + $0xbc4] ss:$16 sps:$4 sm:$0xff]  }
 0x31f   : > { %4860 = vmatpush2.bf16.msra.mxu0 %v7647_v13  ;;  %4820 = vmatprep.subr.bf16.mxu1 %v7652_v14  ;;  %v7709_v13 = vld [vmem:[#allocation8 + $0xa24] ss:$16 sps:$4 sm:$0xff]   ;;  %v7704_v14 = vld [vmem:[#allocation8 + $0x820] ss:$16 sps:$4 sm:$0xff]  }
 0x320   : > { %4861 = vmatprep.subr.bf16.mxu0 %v7655_v16  ;;  %v7707_v16 = vld [vmem:[#allocation8 + $0xa20] ss:$16 sps:$4 sm:$0xff]  }
 0x321   : > { %v7761_v12 = vld [vmem:[#allocation8 + $0xb00] ss:$16 sps:$4 sm:$0xff]  }
 0x322   : > { %4821 = vmatpush2.bf16.msra.mxu1 %v7650_v15 }
 0x323   : > { %4862 = vmatpush2.bf16.msra.mxu0 %v7653_v19  ;;  %4822 = vmatprep.subr.bf16.mxu1 %v7658_v20  ;;  %v7712_v19 = vld [vmem:[#allocation8 + $0x804] ss:$16 sps:$4 sm:$0xff]   ;;  %v7710_v20 = vld [vmem:[#allocation8 + $0x800] ss:$16 sps:$4 sm:$0xff]  }
 0x324   : > { %4863 = vmatprep.subr.bf16.mxu0 %v7661_v21  ;;  %v7715_v21 = vld [vmem:[#allocation8 + $0xa04] ss:$16 sps:$4 sm:$0xff]  }
 0x325   : > { %v9465_v38 = vpop.f32.mrf.mxu0 }
 0x326   : > { %4823 = vmatpush2.bf16.msra.mxu1 %v7656_v22  ;;  %v7713_v22 = vld [vmem:[#allocation8 + $0xa00] ss:$16 sps:$4 sm:$0xff]  }
 0x327   : > { %v8305_v39 = vpop.eup %8304  ;;  %4864 = vmatpush2.bf16.msra.mxu0 %v7659_v25  ;;  %4824 = vmatprep.subr.bf16.mxu1 %v7664_v26  ;;  %v9468_v52 = vpop.f32.mrf.mxu0  ;;  %v7718_v25 = vld [vmem:[#allocation8 + $0x9e4] ss:$16 sps:$4 sm:$0xff]  }
 0x328   : > { %v8307_v57 = vpop.eup %8306  ;;  %v1983_v17 = vmul.f32 %v8305_v39, %v9451_v43  ;;  %4865 = vmatprep.subr.bf16.mxu0 %v7667_v27  ;;  %v6426_v15 = vmul.f32 -1.442695, %v9468_v52  ;;  %v7721_v26 = vld [vmem:[#allocation8 + $0xbe4] ss:$16 sps:$4 sm:$0xff]   ;;  %v7716_v27 = vld [vmem:[#allocation8 + $0x9e0] ss:$16 sps:$4 sm:$0xff]  }
 0x329   : > { %v1985_v61 = vmul.f32 %v8307_v57, %v9453_v44  ;;  %v1887_v23 = vpop.f32.mrf.mxu0  ;;  %v7674_v44 = vld [vmem:[#allocation8 + $0x8c0] ss:$16 sps:$4 sm:$0xff]  }
 0x32a   : > { %4825 = vmatpush2.bf16.msra.mxu1 %v7662_v32  ;;  %v9477_v24 = vpack.c.bf16 %v1983_v17, %v1983_v17  ;;  %8312 = vpow2.f32 %v6426_v15  ;;  %v7724_v32 = vld [vmem:[#allocation8 + $0x9c4] ss:$16 sps:$4 sm:$0xff]   ;;  %v7722_v39 = vld [vmem:[#allocation8 + $0x9c0] ss:$16 sps:$4 sm:$0xff]   ;;  %v7769_v15 = vld [vmem:[#allocation8 + $0xec] ss:$16 sps:$4 sm:$0xff]  }
 0x32b   : > { %4866 = vmatpush2.bf16.msra.mxu0 %v7665_v45  ;;  %4876 = vmatprep.subr.bf16.mxu1 %v7670_v50  ;;  %v1888_v0 = vpop.f32.mrf.mxu0  ;;  %v9479_v43 = vpack.c.bf16 %v1985_v61, %v1985_v61  ;;  %v7730_v45 = vld [vmem:[#allocation8 + $0x9a4] ss:$16 sps:$4 sm:$0xff]   ;;  %v8309_v50 = vpop.eup %8308  ;;  %v7728_v17 = vld [vmem:[#allocation8 + $0x9a0] ss:$16 sps:$4 sm:$0xff]  }
 0x32c   : > { %4917 = vmatprep.subr.bf16.mxu0 %v7673_v51  ;;  %v7733_v51 = vld [vmem:[#allocation8 + $0xba4] ss:$16 sps:$4 sm:$0xff]   ;;  %v8311_v57 = vpop.eup %8310  ;;  %v7731_v61 = vld [vmem:[#allocation8 + $0xba0] ss:$16 sps:$4 sm:$0xff]  }
 0x32d   : > { %4827 = vmatmul.mubr.bf16.vlgmr.msra.gmra.mxu1 %v9473_v48  ;;  %v7739_v23 = vld [vmem:[#allocation8 + $0xb84] ss:$16 sps:$4 sm:$0xff]  }
 0x32e   : > { %4868 = vmatmul.mubr.bf16.vlgmr.msra.gmra.mxu0 %v9475_v56  ;;  %4877 = vmatpush1.bf16.msra.mxu1 %v7668_v35  ;;  %v1940_v35 = vadd.f32 1.0, %v8309_v50  ;;  %v7790_v50 = vld [vmem:[#allocation8 + $0xc64] ss:$16 sps:$4 sm:$0xff]  }
 0x32f   : > { %4918 = vmatpush1.bf16.msra.mxu0 %v7671_v55  ;;  %4878 = vmatprep.subr.bf16.mxu1 %v7676_v63  ;;  %v7736_v55 = vld [vmem:[#allocation8 + $0x984] ss:$16 sps:$4 sm:$0xff]   ;;  %v1942_v63 = vadd.f32 1.0, %v8311_v57  ;;  %v7788_v57 = vld [vmem:[#allocation8 + $0xc60] ss:$16 sps:$4 sm:$0xff]  }
 0x330   : > { %4919 = vmatprep.subr.bf16.mxu0 %v7679_v49  ;;  %4908 = vmatprep.mubr.bf16.mxu1 %v9477_v24  ;;  %v7734_v49 = vld [vmem:[#allocation8 + $0x980] ss:$16 sps:$4 sm:$0xff]   ;;  %8314 = vrcp.f32 %v1940_v35  ;;  %v7799_v35 = vld [vmem:[#allocation8 + $0x4c] ss:$16 sps:$4 sm:$0xff]  }
 0x331   : > { %4949 = vmatprep.mubr.bf16.mxu0 %v9479_v43  ;;  %8316 = vrcp.f32 %v1942_v63  ;;  %v7797_v63 = vld [vmem:[#allocation8 + $0x48] ss:$16 sps:$4 sm:$0xff]  }
 0x332   : > { %4879 = vmatpush1.bf16.msra.mxu1 %v7674_v44  ;;  %v7737_v44 = vld [vmem:[#allocation8 + $0xb80] ss:$16 sps:$4 sm:$0xff]  }
 0x333   : > { %4920 = vmatpush1.bf16.msra.mxu0 %v7677_v30  ;;  %4880 = vmatprep.subr.bf16.mxu1 %v7682_v3  ;;  %v7742_v30 = vld [vmem:[#allocation8 + $0x964] ss:$16 sps:$4 sm:$0xff]  }
 0x334   : > { %4921 = vmatprep.subr.bf16.mxu0 %v7685_v4  ;;  %v7745_v3 = vld [vmem:[#allocation8 + $0xb64] ss:$16 sps:$4 sm:$0xff]   ;;  %v7740_v4 = vld [vmem:[#allocation8 + $0x960] ss:$16 sps:$4 sm:$0xff]  }
 0x336   : > { %4881 = vmatpush1.bf16.msra.mxu1 %v7680_v5  ;;  %v7743_v5 = vld [vmem:[#allocation8 + $0xb60] ss:$16 sps:$4 sm:$0xff]  }
 0x337   : > { %4922 = vmatpush1.bf16.msra.mxu0 %v7683_v41  ;;  %4882 = vmatprep.subr.bf16.mxu1 %v7688_v42  ;;  %v8313_v60 = vpop.eup %8312  ;;  %v7748_v41 = vld [vmem:[#allocation8 + $0x944] ss:$16 sps:$4 sm:$0xff]  }
 0x338   : > { %4923 = vmatprep.subr.bf16.mxu0 %v7691_v46  ;;  %v1945_v0 = vadd.f32 1.0, %v8313_v60  ;;  %v7751_v42 = vld [vmem:[#allocation8 + $0xb44] ss:$16 sps:$4 sm:$0xff]   ;;  %v7746_v46 = vld [vmem:[#allocation8 + $0x940] ss:$16 sps:$4 sm:$0xff]  }
 0x339   : > { %v7791_v60 = vld [vmem:[#allocation8 + $0x68] ss:$16 sps:$4 sm:$0xff]  }
 0x33a   : > { %4883 = vmatpush1.bf16.msra.mxu1 %v7686_v47  ;;  %8318 = vrcp.f32 %v1945_v0  ;;  %v7749_v47 = vld [vmem:[#allocation8 + $0xb40] ss:$16 sps:$4 sm:$0xff]   ;;  %v7805_v0 = vld [vmem:[#allocation8 + $0x2c] ss:$16 sps:$4 sm:$0xff]  }
 0x33b   : > { %4924 = vmatpush1.bf16.msra.mxu0 %v7689_v53  ;;  %4884 = vmatprep.subr.bf16.mxu1 %v7694_v6  ;;  %v7754_v53 = vld [vmem:[#allocation8 + $0x924] ss:$16 sps:$4 sm:$0xff]  }
 0x33c   : > { %4925 = vmatprep.subr.bf16.mxu0 %v7697_v54  ;;  %v7757_v6 = vld [vmem:[#allocation8 + $0xb24] ss:$16 sps:$4 sm:$0xff]   ;;  %v7755_v54 = vld [vmem:[#allocation8 + $0xb20] ss:$16 sps:$4 sm:$0xff]  }
 0x33e   : > { %4885 = vmatpush1.bf16.msra.mxu1 %v7692_v7  ;;  %v7752_v7 = vld [vmem:[#allocation8 + $0x920] ss:$16 sps:$4 sm:$0xff]  }
 0x33f   : > { %4926 = vmatpush1.bf16.msra.mxu0 %v7695_v8  ;;  %4886 = vmatprep.subr.bf16.mxu1 %v7700_v9  ;;  %v7760_v8 = vld [vmem:[#allocation8 + $0x904] ss:$16 sps:$4 sm:$0xff]   ;;  %v8315_v9 = vpop.eup %8314 }
 0x340   : > { %4927 = vmatprep.subr.bf16.mxu0 %v7703_v31  ;;  %v8317_v31 = vpop.eup %8316  ;;  %v1982_v11 = vmul.f32 %v8315_v9, %v9447_v33  ;;  %v7772_v33 = vld [vmem:[#allocation8 + $0xcc4] ss:$16 sps:$4 sm:$0xff]  }
 0x342   : > { %4887 = vmatpush1.bf16.msra.mxu1 %v7698_v58  ;;  %v7763_v58 = vld [vmem:[#allocation8 + $0xb04] ss:$16 sps:$4 sm:$0xff]  }
 0x343   : > { %4928 = vmatpush1.bf16.msra.mxu0 %v7701_v10  ;;  %4888 = vmatprep.subr.bf16.mxu1 %v7706_v59  ;;  %v7758_v59 = vld [vmem:[#allocation8 + $0x900] ss:$16 sps:$4 sm:$0xff]  }
 0x344   : > { %4929 = vmatprep.subr.bf16.mxu0 %v7709_v13  ;;  %v7766_v13 = vld [vmem:[#allocation8 + $0xce4] ss:$16 sps:$4 sm:$0xff]  }
 0x346   : > { %4889 = vmatpush1.bf16.msra.mxu1 %v7704_v14  ;;  %v1984_v14 = vmul.f32 %v8317_v31, %v9449_v36  ;;  %v7770_v36 = vld [vmem:[#allocation8 + $0xcc0] ss:$16 sps:$4 sm:$0xff]  }
 0x347   : > { %4930 = vmatpush1.bf16.msra.mxu0 %v7707_v16  ;;  %4890 = vmatprep.subr.bf16.mxu1 %v7712_v19  ;;  %v8319_v10 = vpop.eup %8318  ;;  %v7764_v19 = vld [vmem:[#allocation8 + $0xce0] ss:$16 sps:$4 sm:$0xff]  }
 0x348   : > { %4931 = vmatprep.subr.bf16.mxu0 %v7715_v21  ;;  %v1987_v16 = vmul.f32 %v8319_v10, %v9468_v52  ;;  %v7767_v21 = vld [vmem:[#allocation8 + $0xe8] ss:$16 sps:$4 sm:$0xff]   ;;  %v7824_v31 = vld [vmem:[#allocation8 + $0xda0] ss:$16 sps:$4 sm:$0xff]  }
 0x349   : > { %v7773_v52 = vld [vmem:[#allocation8 + $0xc8] ss:$16 sps:$4 sm:$0xff]  }
 0x34a   : > { %4891 = vmatpush1.bf16.msra.mxu1 %v7710_v20  ;;  %v9491_v20 = vpack.c.bf16 %v1982_v11, %v1982_v11  ;;  %v7832_v11 = vld [vmem:[#allocation8 + $0xd84] ss:$16 sps:$4 sm:$0xff]  }
 0x34b   : > { %4932 = vmatpush1.bf16.msra.mxu0 %v7713_v22  ;;  %4892 = vmatprep.subr.bf16.mxu1 %v7718_v25  ;;  %v9493_v22 = vpack.c.bf16 %v1984_v14, %v1984_v14  ;;  %v7775_v25 = vld [vmem:[#allocation8 + $0xcc] ss:$16 sps:$4 sm:$0xff]   ;;  %v7833_v14 = vld [vmem:[#allocation8 + $0x188] ss:$16 sps:$4 sm:$0xff]  }
 0x34c   : > { %4933 = vmatprep.subr.bf16.mxu0 %v7721_v26  ;;  %v9495_v26 = vpack.c.bf16 %v1987_v16, %v1987_v16  ;;  %v7841_v16 = vld [vmem:[#allocation8 + $0x16c] ss:$16 sps:$4 sm:$0xff]  }
 0x34e   : > { %4893 = vmatpush2.bf16.msra.mxu1 %v7716_v27  ;;  %v7778_v27 = vld [vmem:[#allocation8 + $0xca4] ss:$16 sps:$4 sm:$0xff]  }
 0x34f   : > { %4934 = vmatpush2.bf16.msra.mxu0 %v7719_v28  ;;  %4894 = vmatprep.subr.bf16.mxu1 %v7724_v32  ;;  %v7781_v28 = vld [vmem:[#allocation8 + $0xac] ss:$16 sps:$4 sm:$0xff]   ;;  %v7776_v32 = vld [vmem:[#allocation8 + $0xca0] ss:$16 sps:$4 sm:$0xff]  }
 0x350   : > { %4935 = vmatprep.subr.bf16.mxu0 %v7727_v37  ;;  %v7779_v37 = vld [vmem:[#allocation8 + $0xa8] ss:$16 sps:$4 sm:$0xff]  }
 0x352   : > { %4895 = vmatpush2.bf16.msra.mxu1 %v7722_v39  ;;  %v7784_v39 = vld [vmem:[#allocation8 + $0xc84] ss:$16 sps:$4 sm:$0xff]  }
 0x353   : > { %4936 = vmatpush2.bf16.msra.mxu0 %v7725_v40  ;;  %4896 = vmatprep.subr.bf16.mxu1 %v7730_v45  ;;  %v7787_v40 = vld [vmem:[#allocation8 + $0x8c] ss:$16 sps:$4 sm:$0xff]   ;;  %v7782_v45 = vld [vmem:[#allocation8 + $0xc80] ss:$16 sps:$4 sm:$0xff]  }
 0x354   : > { %4937 = vmatprep.subr.bf16.mxu0 %v7733_v51  ;;  %v7793_v51 = vld [vmem:[#allocation8 + $0x6c] ss:$16 sps:$4 sm:$0xff]  }
 0x356   : > { %4897 = vmatpush2.bf16.msra.mxu1 %v7728_v17  ;;  %v7796_v17 = vld [vmem:[#allocation8 + $0xc44] ss:$16 sps:$4 sm:$0xff]  }
 0x357   : > { %4938 = vmatpush2.bf16.msra.mxu0 %v7731_v61  ;;  %4898 = vmatprep.subr.bf16.mxu1 %v7736_v55  ;;  %v7794_v61 = vld [vmem:[#allocation8 + $0xc40] ss:$16 sps:$4 sm:$0xff]   ;;  %v6425_v55 = vmul.f32 -1.442695, %v9465_v38 }
 0x358   : > { %4939 = vmatprep.subr.bf16.mxu0 %v7739_v23  ;;  %v7802_v23 = vld [vmem:[#allocation8 + $0xc24] ss:$16 sps:$4 sm:$0xff]  }
 0x359   : > { %8320 = vpow2.f32 %v6425_v55  ;;  %v7865_v55 = vld [vmem:[#allocation8 + $0x4ec] ss:$16 sps:$4 sm:$0xff]  }
 0x35a   : > { %4899 = vmatpush2.bf16.msra.mxu1 %v7734_v49  ;;  %v7800_v49 = vld [vmem:[#allocation8 + $0xc20] ss:$16 sps:$4 sm:$0xff]  }
 0x35b   : > { %4940 = vmatpush2.bf16.msra.mxu0 %v7737_v44  ;;  %4900 = vmatprep.subr.bf16.mxu1 %v7742_v30  ;;  %v7803_v44 = vld [vmem:[#allocation8 + $0x28] ss:$16 sps:$4 sm:$0xff]   ;;  %v7808_v30 = vld [vmem:[#allocation8 + $0xc04] ss:$16 sps:$4 sm:$0xff]  }
 0x35c   : > { %4941 = vmatprep.subr.bf16.mxu0 %v7745_v3  ;;  %v7811_v3 = vld [vmem:[#allocation8 + $0xc] ss:$16 sps:$4 sm:$0xff]  }
 0x35e   : > { %4901 = vmatpush2.bf16.msra.mxu1 %v7740_v4  ;;  %v7806_v4 = vld [vmem:[#allocation8 + $0xc00] ss:$16 sps:$4 sm:$0xff]  }
 0x35f   : > { %4942 = vmatpush2.bf16.msra.mxu0 %v7743_v5  ;;  %4902 = vmatprep.subr.bf16.mxu1 %v7748_v41  ;;  %v7809_v5 = vld [vmem:[#allocation8 + $0x8] ss:$16 sps:$4 sm:$0xff]   ;;  %v7814_v41 = vld [vmem:[#allocation8 + $0xde4] ss:$16 sps:$4 sm:$0xff]  }
 0x360   : > { %4943 = vmatprep.subr.bf16.mxu0 %v7751_v42  ;;  %v7817_v42 = vld [vmem:[#allocation8 + $0x1ec] ss:$16 sps:$4 sm:$0xff]  }
 0x362   : > { %4903 = vmatpush2.bf16.msra.mxu1 %v7746_v46  ;;  %v7812_v46 = vld [vmem:[#allocation8 + $0xde0] ss:$16 sps:$4 sm:$0xff]  }
 0x363   : > { %4944 = vmatpush2.bf16.msra.mxu0 %v7749_v47  ;;  %4904 = vmatprep.subr.bf16.mxu1 %v7754_v53  ;;  %v7815_v47 = vld [vmem:[#allocation8 + $0x1e8] ss:$16 sps:$4 sm:$0xff]   ;;  %v7820_v53 = vld [vmem:[#allocation8 + $0xdc4] ss:$16 sps:$4 sm:$0xff]  }
 0x364   : > { %4945 = vmatprep.subr.bf16.mxu0 %v7757_v6  ;;  %v7823_v6 = vld [vmem:[#allocation8 + $0x1cc] ss:$16 sps:$4 sm:$0xff]  }
 0x366   : > { %4905 = vmatpush2.bf16.msra.mxu1 %v7752_v7  ;;  %v7818_v7 = vld [vmem:[#allocation8 + $0xdc0] ss:$16 sps:$4 sm:$0xff]   ;;  %v8321_v9 = vpop.eup %8320 }
 0x367   : > { %4946 = vmatpush2.bf16.msra.mxu0 %v7755_v54  ;;  %4906 = vmatprep.subr.bf16.mxu1 %v7760_v8  ;;  %v7821_v54 = vld [vmem:[#allocation8 + $0x1c8] ss:$16 sps:$4 sm:$0xff]   ;;  %v7826_v8 = vld [vmem:[#allocation8 + $0xda4] ss:$16 sps:$4 sm:$0xff]   ;;  %v1944_v10 = vadd.f32 1.0, %v8321_v9 }
 0x368   : > { %4947 = vmatprep.subr.bf16.mxu0 %v7763_v58  ;;  %v7829_v58 = vld [vmem:[#allocation8 + $0x1ac] ss:$16 sps:$4 sm:$0xff]  }
 0x369   : > { %8322 = vrcp.f32 %v1944_v10  ;;  %v7875_v10 = vld [vmem:[#allocation8 + $0x4a8] ss:$16 sps:$4 sm:$0xff]  }
 0x36a   : > { %4907 = vmatpush2.bf16.msra.mxu1 %v7758_v59  ;;  %v7827_v59 = vld [vmem:[#allocation8 + $0x1a8] ss:$16 sps:$4 sm:$0xff]  }
 0x36b   : > { %4948 = vmatpush2.bf16.msra.mxu0 %v7761_v12  ;;  %4958 = vmatprep.subr.bf16.mxu1 %v7766_v13  ;;  %v7835_v12 = vld [vmem:[#allocation8 + $0x18c] ss:$16 sps:$4 sm:$0xff]   ;;  %v7830_v13 = vld [vmem:[#allocation8 + $0xd80] ss:$16 sps:$4 sm:$0xff]  }
 0x36c   : > { %4999 = vmatprep.subr.bf16.mxu0 %v7769_v15  ;;  %v7838_v15 = vld [vmem:[#allocation8 + $0xd64] ss:$16 sps:$4 sm:$0xff]  }
 0x36d   : > { %4909 = vmatmul.mubr.bf16.vlgmr.msra.gmra.mxu1 %v9491_v20 }
 0x36e   : > { %4950 = vmatmul.mubr.bf16.vlgmr.msra.gmra.mxu0 %v9493_v22  ;;  %4959 = vmatpush1.bf16.msra.mxu1 %v7764_v19  ;;  %v7836_v19 = vld [vmem:[#allocation8 + $0xd60] ss:$16 sps:$4 sm:$0xff]  }
 0x36f   : > { %5000 = vmatpush1.bf16.msra.mxu0 %v7767_v21  ;;  %5031 = vmatprep.mubr.bf16.mxu0 %v9433_v1  ;;  %v7785_v1 = vld [vmem:[#allocation8 + $0x88] ss:$16 sps:$4 sm:$0xff]  }
 0x370   : > { %4960 = vmatprep.subr.bf16.mxu1 %v7772_v33  ;;  %5001 = vmatprep.subr.bf16.mxu0 %v7775_v25  ;;  %v7839_v21 = vld [vmem:[#allocation8 + $0x168] ss:$16 sps:$4 sm:$0xff]   ;;  %v7844_v33 = vld [vmem:[#allocation8 + $0xd44] ss:$16 sps:$4 sm:$0xff]   ;;  %v7847_v25 = vld [vmem:[#allocation8 + $0x14c] ss:$16 sps:$4 sm:$0xff]  }
 0x371   : > { %4990 = vmatprep.mubr.bf16.mxu1 %v9495_v26 }
 0x372   : > { %4961 = vmatpush1.bf16.msra.mxu1 %v7770_v36  ;;  %v7842_v36 = vld [vmem:[#allocation8 + $0xd40] ss:$16 sps:$4 sm:$0xff]  }
 0x373   : > { %5002 = vmatpush1.bf16.msra.mxu0 %v7773_v52  ;;  %4962 = vmatprep.subr.bf16.mxu1 %v7778_v27  ;;  %v4692_v52 = vlaneseq  ;;  %v7845_v27 = vld [vmem:[#allocation8 + $0x148] ss:$16 sps:$4 sm:$0xff]  }
 0x374   : > { %5003 = vmatprep.subr.bf16.mxu0 %v7781_v28  ;;  %v7850_v28 = vld [vmem:[#allocation8 + $0xd24] ss:$16 sps:$4 sm:$0xff]  }
 0x376   : > { %4963 = vmatpush1.bf16.msra.mxu1 %v7776_v32  ;;  %v7853_v32 = vld [vmem:[#allocation8 + $0x12c] ss:$16 sps:$4 sm:$0xff]  }
 0x377   : > { %5004 = vmatpush1.bf16.msra.mxu0 %v7779_v37  ;;  %4964 = vmatprep.subr.bf16.mxu1 %v7784_v39  ;;  %v7848_v37 = vld [vmem:[#allocation8 + $0xd20] ss:$16 sps:$4 sm:$0xff]   ;;  %v9502_v39 = vshrl.u32 %v4692_v52, 7  ;;  %v7898_v52 = vld [vmem:[#allocation8 + $0x22c] ss:$16 sps:$4 sm:$0xff]  }
 0x378   : > { %5005 = vmatprep.subr.bf16.mxu0 %v7787_v40  ;;  %v7851_v40 = vld [vmem:[#allocation8 + $0x128] ss:$16 sps:$4 sm:$0xff]  }
 0x37a   : > { %4965 = vmatpush1.bf16.msra.mxu1 %v7782_v45  ;;  %v7856_v45 = vld [vmem:[#allocation8 + $0xd04] ss:$16 sps:$4 sm:$0xff]  }
 0x37b   : > { %5006 = vmatpush1.bf16.msra.mxu0 %v7785_v1  ;;  %4966 = vmatprep.subr.bf16.mxu1 %v7790_v50  ;;  %v8323_v1 = vpop.eup %8322  ;;  %v7859_v50 = vld [vmem:[#allocation8 + $0x10c] ss:$16 sps:$4 sm:$0xff]  }
 0x37c   : > { %5007 = vmatprep.subr.bf16.mxu0 %v7793_v51  ;;  %v7854_v51 = vld [vmem:[#allocation8 + $0xd00] ss:$16 sps:$4 sm:$0xff]  }
 0x37e   : > { %4967 = vmatpush1.bf16.msra.mxu1 %v7788_v57  ;;  %v4694_v57 = vsub.s32 0, %v9502_v39 }
 0x37f   : > { %5008 = vmatpush1.bf16.msra.mxu0 %v7791_v60  ;;  %4968 = vmatprep.subr.bf16.mxu1 %v7796_v17  ;;  %v1986_v60 = vmul.f32 %v8323_v1, %v9465_v38  ;;  %v7857_v17 = vld [vmem:[#allocation8 + $0x108] ss:$16 sps:$4 sm:$0xff]  }
 0x380   : > { %5009 = vmatprep.subr.bf16.mxu0 %v7799_v35  ;;  %v7862_v35 = vld [vmem:[#allocation8 + $0x2ec] ss:$16 sps:$4 sm:$0xff]   ;;  %v7905_v1 = vld [vmem:[#allocation8 + $0x408] ss:$16 sps:$4 sm:$0xff]  }
 0x382   : > { %4969 = vmatpush1.bf16.msra.mxu1 %v7794_v61  ;;  %v2450_v61 = vld [vmem:[#allocation9] sm:$0xf] }
 0x383   : > { %5010 = vmatpush1.bf16.msra.mxu0 %v7797_v63  ;;  %4970 = vmatprep.subr.bf16.mxu1 %v7802_v23  ;;  %v4698_v63 = vsub.s32 1, %v9502_v39  ;;  %v7860_v23 = vld [vmem:[#allocation8 + $0x2e8] ss:$16 sps:$4 sm:$0xff]  }
 0x384   : > { %5011 = vmatprep.subr.bf16.mxu0 %v7805_v0  ;;  %v4695_v0 = vrot.slane %v2450_v61, %v4694_v57 }
 0x385   : > { %v4699_v38 = vrot.slane %v2450_v61, %v4698_v63  ;;  %v7919_v61 = vld [vmem:[#allocation8 + $0x5cc] ss:$16 sps:$4 sm:$0xff]  }
 0x386   : > { %4971 = vmatpush1.bf16.msra.mxu1 %v7800_v49  ;;  %v9509_v49 = vpack.c.bf16 %v1986_v60, %v1986_v60  ;;  %v7908_v60 = vld [vmem:[#allocation8 + $0x3e8] ss:$16 sps:$4 sm:$0xff]  }
 0x387   : > { %5012 = vmatpush1.bf16.msra.mxu0 %v7803_v44  ;;  %4972 = vmatprep.subr.bf16.mxu1 %v7808_v30  ;;  %v7863_v44 = vld [vmem:[#allocation8 + $0x4e8] ss:$16 sps:$4 sm:$0xff]   ;;  %v7868_v30 = vld [vmem:[#allocation8 + $0x2cc] ss:$16 sps:$4 sm:$0xff]  }
 0x388   : > { %5013 = vmatprep.subr.bf16.mxu0 %v7811_v3 }
 0x38a   : > { %4973 = vmatpush1.bf16.msra.mxu1 %v7806_v4  ;;  %v7871_v4 = vld [vmem:[#allocation8 + $0x4cc] ss:$16 sps:$4 sm:$0xff]  }
 0x38b   : > { %5014 = vmatpush1.bf16.msra.mxu0 %v7809_v5  ;;  %4974 = vmatprep.subr.bf16.mxu1 %v7814_v41 }
 0x38c   : > { %5015 = vmatprep.subr.bf16.mxu0 %v7817_v42  ;;  %v7866_v42 = vld [vmem:[#allocation8 + $0x2c8] ss:$16 sps:$4 sm:$0xff]  }
 0x38e   : > { %4975 = vmatpush2.bf16.msra.mxu1 %v7812_v46 }
 0x38f   : > { %5016 = vmatpush2.bf16.msra.mxu0 %v7815_v47  ;;  %4976 = vmatprep.subr.bf16.mxu1 %v7820_v53  ;;  %v7869_v47 = vld [vmem:[#allocation8 + $0x4c8] ss:$16 sps:$4 sm:$0xff]   ;;  %v7874_v53 = vld [vmem:[#allocation8 + $0x2ac] ss:$16 sps:$4 sm:$0xff]  }
 0x390   : > { %5017 = vmatprep.subr.bf16.mxu0 %v7823_v6 }
 0x392   : > { %4977 = vmatpush2.bf16.msra.mxu1 %v7818_v7 }
 0x393   : > { %5018 = vmatpush2.bf16.msra.mxu0 %v7821_v54  ;;  %4978 = vmatprep.subr.bf16.mxu1 %v7826_v8  ;;  %v7877_v8 = vld [vmem:[#allocation8 + $0x4ac] ss:$16 sps:$4 sm:$0xff]  }
 0x394   : > { %5019 = vmatprep.subr.bf16.mxu0 %v7829_v58 }
 0x396   : > { %4979 = vmatpush2.bf16.msra.mxu1 %v7824_v31  ;;  %v7872_v31 = vld [vmem:[#allocation8 + $0x2a8] ss:$16 sps:$4 sm:$0xff]  }
 0x397   : > { %5020 = vmatpush2.bf16.msra.mxu0 %v7827_v59  ;;  %4980 = vmatprep.subr.bf16.mxu1 %v7832_v11  ;;  %v7880_v59 = vld [vmem:[#allocation8 + $0x28c] ss:$16 sps:$4 sm:$0xff]  }
 0x398   : > { %5021 = vmatprep.subr.bf16.mxu0 %v7835_v12  ;;  %v7883_v12 = vld [vmem:[#allocation8 + $0x48c] ss:$16 sps:$4 sm:$0xff]  }
 0x39a   : > { %4981 = vmatpush2.bf16.msra.mxu1 %v7830_v13  ;;  %v7881_v13 = vld [vmem:[#allocation8 + $0x488] ss:$16 sps:$4 sm:$0xff]  }
 0x39b   : > { %5022 = vmatpush2.bf16.msra.mxu0 %v7833_v14  ;;  %4982 = vmatprep.subr.bf16.mxu1 %v7838_v15  ;;  %v7886_v14 = vld [vmem:[#allocation8 + $0x26c] ss:$16 sps:$4 sm:$0xff]  }
 0x39c   : > { %5023 = vmatprep.subr.bf16.mxu0 %v7841_v16  ;;  %v7889_v15 = vld [vmem:[#allocation8 + $0x46c] ss:$16 sps:$4 sm:$0xff]   ;;  %v7884_v16 = vld [vmem:[#allocation8 + $0x268] ss:$16 sps:$4 sm:$0xff]  }
 0x39e   : > { %4983 = vmatpush2.bf16.msra.mxu1 %v7836_v19  ;;  %v7887_v19 = vld [vmem:[#allocation8 + $0x468] ss:$16 sps:$4 sm:$0xff]  }
 0x39f   : > { %5024 = vmatpush2.bf16.msra.mxu0 %v7839_v21  ;;  %4984 = vmatprep.subr.bf16.mxu1 %v7844_v33  ;;  %v7892_v21 = vld [vmem:[#allocation8 + $0x24c] ss:$16 sps:$4 sm:$0xff]  }
 0x3a0   : > { %5025 = vmatprep.subr.bf16.mxu0 %v7847_v25  ;;  %v7895_v33 = vld [vmem:[#allocation8 + $0x44c] ss:$16 sps:$4 sm:$0xff]   ;;  %v7890_v25 = vld [vmem:[#allocation8 + $0x248] ss:$16 sps:$4 sm:$0xff]  }
 0x3a2   : > { %4985 = vmatpush2.bf16.msra.mxu1 %v7842_v36  ;;  %v7893_v36 = vld [vmem:[#allocation8 + $0x448] ss:$16 sps:$4 sm:$0xff]  }
 0x3a3   : > { %5026 = vmatpush2.bf16.msra.mxu0 %v7845_v27  ;;  %4986 = vmatprep.subr.bf16.mxu1 %v7850_v28  ;;  %v7901_v27 = vld [vmem:[#allocation8 + $0x42c] ss:$16 sps:$4 sm:$0xff]   ;;  %v7896_v28 = vld [vmem:[#allocation8 + $0x228] ss:$16 sps:$4 sm:$0xff]  }
 0x3a4   : > { %5027 = vmatprep.subr.bf16.mxu0 %v7853_v32  ;;  %v7899_v32 = vld [vmem:[#allocation8 + $0x428] ss:$16 sps:$4 sm:$0xff]  }
 0x3a6   : > { %4987 = vmatpush2.bf16.msra.mxu1 %v7848_v37  ;;  %v7904_v37 = vld [vmem:[#allocation8 + $0x20c] ss:$16 sps:$4 sm:$0xff]  }
 0x3a7   : > { %5028 = vmatpush2.bf16.msra.mxu0 %v7851_v40  ;;  %4988 = vmatprep.subr.bf16.mxu1 %v7856_v45  ;;  %v7907_v40 = vld [vmem:[#allocation8 + $0x40c] ss:$16 sps:$4 sm:$0xff]   ;;  %v7902_v45 = vld [vmem:[#allocation8 + $0x208] ss:$16 sps:$4 sm:$0xff]  }
 0x3a8   : > { %5029 = vmatprep.subr.bf16.mxu0 %v7859_v50  ;;  %v7910_v50 = vld [vmem:[#allocation8 + $0x3ec] ss:$16 sps:$4 sm:$0xff]  }
 0x3aa   : > { %4989 = vmatpush2.bf16.msra.mxu1 %v7854_v51  ;;  %v7913_v51 = vld [vmem:[#allocation8 + $0x5ec] ss:$16 sps:$4 sm:$0xff]  }
 0x3ab   : > { %5030 = vmatpush2.bf16.msra.mxu0 %v7857_v17  ;;  %5040 = vmatprep.subr.bf16.mxu1 %v7862_v35  ;;  %v7911_v17 = vld [vmem:[#allocation8 + $0x5e8] ss:$16 sps:$4 sm:$0xff]   ;;  %v7916_v35 = vld [vmem:[#allocation8 + $0x3cc] ss:$16 sps:$4 sm:$0xff]  }
 0x3ac   : > { %5081 = vmatprep.subr.bf16.mxu0 %v7865_v55  ;;  %v7914_v55 = vld [vmem:[#allocation8 + $0x3c8] ss:$16 sps:$4 sm:$0xff]  }
 0x3ad   : > { %4991 = vmatmul.mubr.bf16.vlgmr.msra.gmra.mxu1 %v9509_v49  ;;  %v4746_v3 = vpop.f32.mrf.mxu1 }
 0x3ae   : > { %5032 = vmatmul.mubr.bf16.vlgmr.msra.gmra.mxu0 %v9435_v29  ;;  %v4747_v5 = vadd.f32 %v4746_v3, %v4695_v0  ;;  %v4787_v41 = vpop.f32.mrf.mxu0  ;;  %5041 = vmatpush1.bf16.msra.mxu1 %v7860_v23  ;;  %v7917_v23 = vld [vmem:[#allocation8 + $0x5c8] ss:$16 sps:$4 sm:$0xff]   ;;  %v7922_v0 = vld [vmem:[#allocation8 + $0x3ac] ss:$16 sps:$4 sm:$0xff]  }
 0x3af   : > { %5072 = vmatprep.mubr.bf16.mxu1 %v9437_v2  ;;  %5082 = vmatpush1.bf16.msra.mxu0 %v7863_v44  ;;  %v4748_v46 = vpop.f32.mrf.mxu1  ;;  %v7925_v44 = vld [vmem:[#allocation8 + $0x5ac] ss:$16 sps:$4 sm:$0xff]  }
 0x3b0   : > { %v9516_v6 = vadd.f32 %v4787_v41, %v4747_v5  ;;  %5113 = vmatprep.mubr.bf16.mxu0 %v9459_v62  ;;  %v4749_v7 = vadd.f32 %v4748_v46, %v4699_v38  ;;  %v4789_v54 = vpop.f32.mrf.mxu0  ;;  %5042 = vmatprep.subr.bf16.mxu1 %v7868_v30  ;;  %v7878_v62 = vld [vmem:[#allocation8 + $0x288] ss:$16 sps:$4 sm:$0xff]   ;;  %v7928_v3 = vld [vmem:[#allocation8 + $0x38c] ss:$16 sps:$4 sm:$0xff]  }
 0x3b1   : > { %5083 = vmatprep.subr.bf16.mxu0 %v7871_v4  ;;  %v4750_v29 = vpop.f32.mrf.mxu1  ;;  %v7920_v38 = vld [vmem:[#allocation8 + $0x3a8] ss:$16 sps:$4 sm:$0xff]   ;;  %v7931_v4 = vld [vmem:[#allocation8 + $0x58c] ss:$16 sps:$4 sm:$0xff]  }
 0x3b2   : > { %v9519_v9 = vadd.f32 %v4789_v54, %v4749_v7  ;;  %v4791_v58 = vpop.f32.mrf.mxu0  ;;  %5043 = vmatpush1.bf16.msra.mxu1 %v7866_v42  ;;  %v7923_v30 = vld [vmem:[#allocation8 + $0x5a8] ss:$16 sps:$4 sm:$0xff]   ;;  %v7934_v42 = vld [vmem:[#allocation8 + $0x36c] ss:$16 sps:$4 sm:$0xff]  }
 0x3b3   : > { %5084 = vmatpush1.bf16.msra.mxu0 %v7869_v47  ;;  %v4751_v2 = vpop.f32.mrf.mxu1  ;;  %5044 = vmatprep.subr.bf16.mxu1 %v7874_v53  ;;  %v7926_v5 = vld [vmem:[#allocation8 + $0x388] ss:$16 sps:$4 sm:$0xff]   ;;  %v7937_v46 = vld [vmem:[#allocation8 + $0x56c] ss:$16 sps:$4 sm:$0xff]  }
 0x3b4   : > { %v4792_v11 = vpop.f32.mrf.mxu0  ;;  %5085 = vmatprep.subr.bf16.mxu0 %v7877_v8  ;;  %v7929_v41 = vld [vmem:[#allocation8 + $0x588] ss:$16 sps:$4 sm:$0xff]   ;;  %v7940_v7 = vld [vmem:[#allocation8 + $0x34c] ss:$16 sps:$4 sm:$0xff]  }
 0x3b5   : > { %v7932_v47 = vld [vmem:[#allocation8 + $0x368] ss:$16 sps:$4 sm:$0xff]   ;;  %v7943_v54 = vld [vmem:[#allocation8 + $0x54c] ss:$16 sps:$4 sm:$0xff]  }
 0x3b6   : > { %5045 = vmatpush1.bf16.msra.mxu1 %v7872_v31  ;;  %v7935_v53 = vld [vmem:[#allocation8 + $0x568] ss:$16 sps:$4 sm:$0xff]   ;;  %v7946_v58 = vld [vmem:[#allocation8 + $0x32c] ss:$16 sps:$4 sm:$0xff]  }
 0x3b7   : > { %5086 = vmatpush1.bf16.msra.mxu0 %v7875_v10  ;;  %5046 = vmatprep.subr.bf16.mxu1 %v7880_v59  ;;  %v7938_v8 = vld [vmem:[#allocation8 + $0x348] ss:$16 sps:$4 sm:$0xff]   ;;  %v7949_v31 = vld [vmem:[#allocation8 + $0x52c] ss:$16 sps:$4 sm:$0xff]  }
 0x3b8   : > { %5087 = vmatprep.subr.bf16.mxu0 %v7883_v12  ;;  %v7941_v29 = vld [vmem:[#allocation8 + $0x548] ss:$16 sps:$4 sm:$0xff]   ;;  %v7952_v59 = vld [vmem:[#allocation8 + $0x30c] ss:$16 sps:$4 sm:$0xff]  }
 0x3b9   : > { %v7944_v2 = vld [vmem:[#allocation8 + $0x328] ss:$16 sps:$4 sm:$0xff]   ;;  %v7955_v11 = vld [vmem:[#allocation8 + $0x50c] ss:$16 sps:$4 sm:$0xff]  }
 0x3ba   : > { %5047 = vmatpush1.bf16.msra.mxu1 %v7878_v62  ;;  %v7947_v10 = vld [vmem:[#allocation8 + $0x528] ss:$16 sps:$4 sm:$0xff]  }
 0x3bb   : > { %5088 = vmatpush1.bf16.msra.mxu0 %v7881_v13  ;;  %5048 = vmatprep.subr.bf16.mxu1 %v7886_v14  ;;  %v7950_v12 = vld [vmem:[#allocation8 + $0x308] ss:$16 sps:$4 sm:$0xff]   ;;  %v7958_v13 = vld [vmem:[#allocation8 + $0x6ec] ss:$16 sps:$4 sm:$0xff]  }
 0x3bc   : > { %5089 = vmatprep.subr.bf16.mxu0 %v7889_v15  ;;  %v7953_v62 = vld [vmem:[#allocation8 + $0x508] ss:$16 sps:$4 sm:$0xff]   ;;  %v7961_v14 = vld [vmem:[#allocation8 + $0x8ec] ss:$16 sps:$4 sm:$0xff]  }
 0x3bd   : > { %v7956_v15 = vld [vmem:[#allocation8 + $0x6e8] ss:$16 sps:$4 sm:$0xff]  }
 0x3be   : > { %5049 = vmatpush1.bf16.msra.mxu1 %v7884_v16  ;;  %v7959_v16 = vld [vmem:[#allocation8 + $0x8e8] ss:$16 sps:$4 sm:$0xff]  }
 0x3bf   : > { %5090 = vmatpush1.bf16.msra.mxu0 %v7887_v19  ;;  %5050 = vmatprep.subr.bf16.mxu1 %v7892_v21  ;;  %v7964_v19 = vld [vmem:[#allocation8 + $0x6cc] ss:$16 sps:$4 sm:$0xff]  }
 0x3c0   : > { %5091 = vmatprep.subr.bf16.mxu0 %v7895_v33  ;;  %v7967_v33 = vld [vmem:[#allocation8 + $0x8cc] ss:$16 sps:$4 sm:$0xff]  }
 0x3c2   : > { %5051 = vmatpush1.bf16.msra.mxu1 %v7890_v25 }
 0x3c3   : > { %5092 = vmatpush1.bf16.msra.mxu0 %v7893_v36  ;;  %5052 = vmatprep.subr.bf16.mxu1 %v7898_v52  ;;  %v7962_v52 = vld [vmem:[#allocation8 + $0x6c8] ss:$16 sps:$4 sm:$0xff]  }
 0x3c4   : > { %5093 = vmatprep.subr.bf16.mxu0 %v7901_v27 }
 0x3c6   : > { %5053 = vmatpush1.bf16.msra.mxu1 %v7896_v28  ;;  %v7965_v28 = vld [vmem:[#allocation8 + $0x8c8] ss:$16 sps:$4 sm:$0xff]  }
 0x3c7   : > { %5094 = vmatpush1.bf16.msra.mxu0 %v7899_v32  ;;  %5054 = vmatprep.subr.bf16.mxu1 %v7904_v37  ;;  %v7970_v32 = vld [vmem:[#allocation8 + $0x6ac] ss:$16 sps:$4 sm:$0xff]  }
 0x3c8   : > { %5095 = vmatprep.subr.bf16.mxu0 %v7907_v40 }
 0x3ca   : > { %5055 = vmatpush1.bf16.msra.mxu1 %v7902_v45 }
 0x3cb   : > { %5096 = vmatpush1.bf16.msra.mxu0 %v7905_v1  ;;  %5056 = vmatprep.subr.bf16.mxu1 %v7910_v50 }
 0x3cc   : > { %5097 = vmatprep.subr.bf16.mxu0 %v7913_v51  ;;  %v7971_v51 = vld [vmem:[#allocation8 + $0x8a8] ss:$16 sps:$4 sm:$0xff]  }
 0x3ce   : > { %5057 = vmatpush2.bf16.msra.mxu1 %v7908_v60  ;;  %v7976_v60 = vld [vmem:[#allocation8 + $0x68c] ss:$16 sps:$4 sm:$0xff]  }
 0x3cf   : > { %5098 = vmatpush2.bf16.msra.mxu0 %v7911_v17  ;;  %5058 = vmatprep.subr.bf16.mxu1 %v7916_v35  ;;  %v7977_v35 = vld [vmem:[#allocation8 + $0x888] ss:$16 sps:$4 sm:$0xff]  }
 0x3d0   : > { %5099 = vmatprep.subr.bf16.mxu0 %v7919_v61  ;;  %v7982_v61 = vld [vmem:[#allocation8 + $0x66c] ss:$16 sps:$4 sm:$0xff]  }
 0x3d2   : > { %5059 = vmatpush2.bf16.msra.mxu1 %v7914_v55  ;;  %v7985_v55 = vld [vmem:[#allocation8 + $0x86c] ss:$16 sps:$4 sm:$0xff]  }
 0x3d3   : > { %5100 = vmatpush2.bf16.msra.mxu0 %v7917_v23  ;;  %5060 = vmatprep.subr.bf16.mxu1 %v7922_v0  ;;  %v7980_v23 = vld [vmem:[#allocation8 + $0x668] ss:$16 sps:$4 sm:$0xff]  }
 0x3d4   : > { %5101 = vmatprep.subr.bf16.mxu0 %v7925_v44  ;;  %v7983_v0 = vld [vmem:[#allocation8 + $0x868] ss:$16 sps:$4 sm:$0xff]   ;;  %v7988_v44 = vld [vmem:[#allocation8 + $0x64c] ss:$16 sps:$4 sm:$0xff]  }
 0x3d6   : > { %5061 = vmatpush2.bf16.msra.mxu1 %v7920_v38  ;;  %v7991_v38 = vld [vmem:[#allocation8 + $0x84c] ss:$16 sps:$4 sm:$0xff]  }
 0x3d7   : > { %5102 = vmatpush2.bf16.msra.mxu0 %v7923_v30  ;;  %5062 = vmatprep.subr.bf16.mxu1 %v7928_v3  ;;  %v7986_v30 = vld [vmem:[#allocation8 + $0x648] ss:$16 sps:$4 sm:$0xff]  }
 0x3d8   : > { %5103 = vmatprep.subr.bf16.mxu0 %v7931_v4  ;;  %v7989_v3 = vld [vmem:[#allocation8 + $0x848] ss:$16 sps:$4 sm:$0xff]   ;;  %v7994_v4 = vld [vmem:[#allocation8 + $0x62c] ss:$16 sps:$4 sm:$0xff]  }
 0x3da   : > { %5063 = vmatpush2.bf16.msra.mxu1 %v7926_v5  ;;  %v7997_v5 = vld [vmem:[#allocation8 + $0x82c] ss:$16 sps:$4 sm:$0xff]  }
 0x3db   : > { %5104 = vmatpush2.bf16.msra.mxu0 %v7929_v41  ;;  %5064 = vmatprep.subr.bf16.mxu1 %v7934_v42  ;;  %v7992_v41 = vld [vmem:[#allocation8 + $0x628] ss:$16 sps:$4 sm:$0xff]  }
 0x3dc   : > { %5105 = vmatprep.subr.bf16.mxu0 %v7937_v46  ;;  %v7995_v42 = vld [vmem:[#allocation8 + $0x828] ss:$16 sps:$4 sm:$0xff]   ;;  %v8000_v46 = vld [vmem:[#allocation8 + $0x60c] ss:$16 sps:$4 sm:$0xff]  }
 0x3de   : > { %5065 = vmatpush2.bf16.msra.mxu1 %v7932_v47  ;;  %v8003_v47 = vld [vmem:[#allocation8 + $0x80c] ss:$16 sps:$4 sm:$0xff]  }
 0x3df   : > { %5106 = vmatpush2.bf16.msra.mxu0 %v7935_v53  ;;  %5066 = vmatprep.subr.bf16.mxu1 %v7940_v7  ;;  %v7998_v53 = vld [vmem:[#allocation8 + $0x608] ss:$16 sps:$4 sm:$0xff]  }
 0x3e0   : > { %5107 = vmatprep.subr.bf16.mxu0 %v7943_v54  ;;  %v8001_v7 = vld [vmem:[#allocation8 + $0x808] ss:$16 sps:$4 sm:$0xff]   ;;  %v8006_v54 = vld [vmem:[#allocation8 + $0x7ec] ss:$16 sps:$4 sm:$0xff]  }
 0x3e2   : > { %5067 = vmatpush2.bf16.msra.mxu1 %v7938_v8  ;;  %v8009_v8 = vld [vmem:[#allocation8 + $0x9ec] ss:$16 sps:$4 sm:$0xff]  }
 0x3e3   : > { %5108 = vmatpush2.bf16.msra.mxu0 %v7941_v29  ;;  %5068 = vmatprep.subr.bf16.mxu1 %v7946_v58  ;;  %v8004_v29 = vld [vmem:[#allocation8 + $0x7e8] ss:$16 sps:$4 sm:$0xff]  }
 0x3e4   : > { %5109 = vmatprep.subr.bf16.mxu0 %v7949_v31  ;;  %v8007_v58 = vld [vmem:[#allocation8 + $0x9e8] ss:$16 sps:$4 sm:$0xff]   ;;  %v8012_v31 = vld [vmem:[#allocation8 + $0x7cc] ss:$16 sps:$4 sm:$0xff]  }
 0x3e6   : > { %5069 = vmatpush2.bf16.msra.mxu1 %v7944_v2  ;;  %v8015_v2 = vld [vmem:[#allocation8 + $0x9cc] ss:$16 sps:$4 sm:$0xff]  }
 0x3e7   : > { %5110 = vmatpush2.bf16.msra.mxu0 %v7947_v10  ;;  %5070 = vmatprep.subr.bf16.mxu1 %v7952_v59  ;;  %v8010_v10 = vld [vmem:[#allocation8 + $0x7c8] ss:$16 sps:$4 sm:$0xff]  }
 0x3e8   : > { %5111 = vmatprep.subr.bf16.mxu0 %v7955_v11  ;;  %v8013_v59 = vld [vmem:[#allocation8 + $0x9c8] ss:$16 sps:$4 sm:$0xff]   ;;  %v8018_v11 = vld [vmem:[#allocation8 + $0x7ac] ss:$16 sps:$4 sm:$0xff]  }
 0x3ea   : > { %5071 = vmatpush2.bf16.msra.mxu1 %v7950_v12  ;;  %v8021_v12 = vld [vmem:[#allocation8 + $0x9ac] ss:$16 sps:$4 sm:$0xff]  }
 0x3eb   : > { %5112 = vmatpush2.bf16.msra.mxu0 %v7953_v62  ;;  %5122 = vmatprep.subr.bf16.mxu1 %v7958_v13  ;;  %v8016_v62 = vld [vmem:[#allocation8 + $0x7a8] ss:$16 sps:$4 sm:$0xff]  }
 0x3ec   : > { %5163 = vmatprep.subr.bf16.mxu0 %v7961_v14  ;;  %v8019_v13 = vld [vmem:[#allocation8 + $0x9a8] ss:$16 sps:$4 sm:$0xff]   ;;  %v8024_v14 = vld [vmem:[#allocation8 + $0x78c] ss:$16 sps:$4 sm:$0xff]  }
 0x3ed   : > { %v4828_v21 = vpop.f32.mrf.mxu1  ;;  %5073 = vmatmul.mubr.bf16.vlgmr.msra.gmra.mxu1 %v9439_v34 }
 0x3ee   : > { %v4829_v25 = vadd.f32 %v4828_v21, %v9516_v6  ;;  %v4869_v36 = vpop.f32.mrf.mxu0  ;;  %5114 = vmatmul.mubr.bf16.vlgmr.msra.gmra.mxu0 %v9473_v48  ;;  %5123 = vmatpush1.bf16.msra.mxu1 %v7956_v15  ;;  %v7973_v6 = vld [vmem:[#allocation8 + $0x8ac] ss:$16 sps:$4 sm:$0xff]  }
 0x3ef   : > { %5154 = vmatprep.mubr.bf16.mxu1 %v9461_v18  ;;  %5164 = vmatpush1.bf16.msra.mxu0 %v7959_v16  ;;  %v4830_v27 = vpop.f32.mrf.mxu1  ;;  %v7968_v18 = vld [vmem:[#allocation8 + $0x6a8] ss:$16 sps:$4 sm:$0xff]   ;;  %v8027_v15 = vld [vmem:[#allocation8 + $0x98c] ss:$16 sps:$4 sm:$0xff]  }
 0x3f0   : > { %v9525_v37 = vadd.f32 %v4869_v36, %v4829_v25  ;;  %5195 = vmatprep.mubr.bf16.mxu0 %v9477_v24  ;;  %v4831_v34 = vadd.f32 %v4830_v27, %v9519_v9  ;;  %v4871_v40 = vpop.f32.mrf.mxu0  ;;  %5124 = vmatprep.subr.bf16.mxu1 %v7964_v19  ;;  %v7979_v24 = vld [vmem:[#allocation8 + $0x88c] ss:$16 sps:$4 sm:$0xff]   ;;  %v7974_v9 = vld [vmem:[#allocation8 + $0x688] ss:$16 sps:$4 sm:$0xff]  }
 0x3f1   : > { %v4832_v45 = vpop.f32.mrf.mxu1  ;;  %5165 = vmatprep.subr.bf16.mxu0 %v7967_v33  ;;  %v8022_v16 = vld [vmem:[#allocation8 + $0x788] ss:$16 sps:$4 sm:$0xff]   ;;  %v8030_v21 = vld [vmem:[#allocation8 + $0x76c] ss:$16 sps:$4 sm:$0xff]  }
 0x3f2   : > { %v9529_v48 = vadd.f32 %v4871_v40, %v4831_v34  ;;  %v4873_v1 = vpop.f32.mrf.mxu0  ;;  %5125 = vmatpush1.bf16.msra.mxu1 %v7962_v52  ;;  %v8025_v19 = vld [vmem:[#allocation8 + $0x988] ss:$16 sps:$4 sm:$0xff]   ;;  %v8033_v33 = vld [vmem:[#allocation8 + $0x96c] ss:$16 sps:$4 sm:$0xff]  }
 0x3f3   : > { %5166 = vmatpush1.bf16.msra.mxu0 %v7965_v28  ;;  %v4833_v50 = vpop.f32.mrf.mxu1  ;;  %5126 = vmatprep.subr.bf16.mxu1 %v7970_v32  ;;  %v8028_v25 = vld [vmem:[#allocation8 + $0x768] ss:$16 sps:$4 sm:$0xff]   ;;  %v8036_v52 = vld [vmem:[#allocation8 + $0x74c] ss:$16 sps:$4 sm:$0xff]  }
 0x3f4   : > { %v4874_v17 = vpop.f32.mrf.mxu0  ;;  %5167 = vmatprep.subr.bf16.mxu0 %v7973_v6  ;;  %v8031_v36 = vld [vmem:[#allocation8 + $0x968] ss:$16 sps:$4 sm:$0xff]   ;;  %v8039_v27 = vld [vmem:[#allocation8 + $0x94c] ss:$16 sps:$4 sm:$0xff]  }
 0x3f5   : > { %v8034_v28 = vld [vmem:[#allocation8 + $0x748] ss:$16 sps:$4 sm:$0xff]   ;;  %v8042_v34 = vld [vmem:[#allocation8 + $0x72c] ss:$16 sps:$4 sm:$0xff]  }
 0x3f6   : > { %5127 = vmatpush1.bf16.msra.mxu1 %v7968_v18  ;;  %v8037_v32 = vld [vmem:[#allocation8 + $0x948] ss:$16 sps:$4 sm:$0xff]   ;;  %v8045_v40 = vld [vmem:[#allocation8 + $0x92c] ss:$16 sps:$4 sm:$0xff]  }
 0x3f7   : > { %5168 = vmatpush1.bf16.msra.mxu0 %v7971_v51  ;;  %5128 = vmatprep.subr.bf16.mxu1 %v7976_v60  ;;  %v8040_v6 = vld [vmem:[#allocation8 + $0x728] ss:$16 sps:$4 sm:$0xff]   ;;  %v8048_v1 = vld [vmem:[#allocation8 + $0x70c] ss:$16 sps:$4 sm:$0xff]  }
 0x3f8   : > { %5169 = vmatprep.subr.bf16.mxu0 %v7979_v24  ;;  %v8043_v45 = vld [vmem:[#allocation8 + $0x928] ss:$16 sps:$4 sm:$0xff]   ;;  %v8051_v18 = vld [vmem:[#allocation8 + $0x90c] ss:$16 sps:$4 sm:$0xff]  }
 0x3f9   : > { %v8046_v50 = vld [vmem:[#allocation8 + $0x708] ss:$16 sps:$4 sm:$0xff]   ;;  %v8054_v60 = vld [vmem:[#allocation8 + $0xaec] ss:$16 sps:$4 sm:$0xff]  }
 0x3fa   : > { %5129 = vmatpush1.bf16.msra.mxu1 %v7974_v9  ;;  %v8049_v51 = vld [vmem:[#allocation8 + $0x908] ss:$16 sps:$4 sm:$0xff]   ;;  %v8057_v17 = vld [vmem:[#allocation8 + $0xcec] ss:$16 sps:$4 sm:$0xff]  }
 0x3fb   : > { %5170 = vmatpush1.bf16.msra.mxu0 %v7977_v35  ;;  %5130 = vmatprep.subr.bf16.mxu1 %v7982_v61  ;;  %v8052_v24 = vld [vmem:[#allocation8 + $0xae8] ss:$16 sps:$4 sm:$0xff]   ;;  %v8060_v35 = vld [vmem:[#allocation8 + $0xacc] ss:$16 sps:$4 sm:$0xff]  }
 0x3fc   : > { %5171 = vmatprep.subr.bf16.mxu0 %v7985_v55  ;;  %v8055_v9 = vld [vmem:[#allocation8 + $0xce8] ss:$16 sps:$4 sm:$0xff]   ;;  %v8063_v55 = vld [vmem:[#allocation8 + $0xccc] ss:$16 sps:$4 sm:$0xff]  }
 0x3fe   : > { %5131 = vmatpush1.bf16.msra.mxu1 %v7980_v23 }
 0x3ff   : > { %5172 = vmatpush1.bf16.msra.mxu0 %v7983_v0  ;;  %5132 = vmatprep.subr.bf16.mxu1 %v7988_v44  ;;  %v8058_v44 = vld [vmem:[#allocation8 + $0xac8] ss:$16 sps:$4 sm:$0xff]  }
 0x400   : > { %5173 = vmatprep.subr.bf16.mxu0 %v7991_v38 }
 0x402   : > { %5133 = vmatpush1.bf16.msra.mxu1 %v7986_v30  ;;  %v8061_v30 = vld [vmem:[#allocation8 + $0xcc8] ss:$16 sps:$4 sm:$0xff]  }
 0x403   : > { %5174 = vmatpush1.bf16.msra.mxu0 %v7989_v3  ;;  %5134 = vmatprep.subr.bf16.mxu1 %v7994_v4  ;;  %v8066_v3 = vld [vmem:[#allocation8 + $0xaac] ss:$16 sps:$4 sm:$0xff]  }
 0x404   : > { %5175 = vmatprep.subr.bf16.mxu0 %v7997_v5 }
 0x406   : > { %5135 = vmatpush1.bf16.msra.mxu1 %v7992_v41  ;;  %v8064_v41 = vld [vmem:[#allocation8 + $0xaa8] ss:$16 sps:$4 sm:$0xff]  }
 0x407   : > { %5176 = vmatpush1.bf16.msra.mxu0 %v7995_v42  ;;  %5136 = vmatprep.subr.bf16.mxu1 %v8000_v46  ;;  %v8067_v42 = vld [vmem:[#allocation8 + $0xca8] ss:$16 sps:$4 sm:$0xff]   ;;  %v8072_v46 = vld [vmem:[#allocation8 + $0xa8c] ss:$16 sps:$4 sm:$0xff]  }
 0x408   : > { %5177 = vmatprep.subr.bf16.mxu0 %v8003_v47 }
 0x40a   : > { %5137 = vmatpush1.bf16.msra.mxu1 %v7998_v53  ;;  %v8075_v53 = vld [vmem:[#allocation8 + $0xc8c] ss:$16 sps:$4 sm:$0xff]  }
 0x40b   : > { %5178 = vmatpush1.bf16.msra.mxu0 %v8001_v7  ;;  %5138 = vmatprep.subr.bf16.mxu1 %v8006_v54  ;;  %v8070_v7 = vld [vmem:[#allocation8 + $0xa88] ss:$16 sps:$4 sm:$0xff]   ;;  %v8078_v54 = vld [vmem:[#allocation8 + $0xa6c] ss:$16 sps:$4 sm:$0xff]  }
 0x40c   : > { %5179 = vmatprep.subr.bf16.mxu0 %v8009_v8  ;;  %v8081_v8 = vld [vmem:[#allocation8 + $0xc6c] ss:$16 sps:$4 sm:$0xff]  }
 0x40e   : > { %5139 = vmatpush2.bf16.msra.mxu1 %v8004_v29  ;;  %v8076_v29 = vld [vmem:[#allocation8 + $0xa68] ss:$16 sps:$4 sm:$0xff]  }
 0x40f   : > { %5180 = vmatpush2.bf16.msra.mxu0 %v8007_v58  ;;  %5140 = vmatprep.subr.bf16.mxu1 %v8012_v31  ;;  %v8079_v58 = vld [vmem:[#allocation8 + $0xc68] ss:$16 sps:$4 sm:$0xff]   ;;  %v8084_v31 = vld [vmem:[#allocation8 + $0xa4c] ss:$16 sps:$4 sm:$0xff]  }
 0x410   : > { %5181 = vmatprep.subr.bf16.mxu0 %v8015_v2  ;;  %v8087_v2 = vld [vmem:[#allocation8 + $0xc4c] ss:$16 sps:$4 sm:$0xff]  }
 0x412   : > { %5141 = vmatpush2.bf16.msra.mxu1 %v8010_v10  ;;  %v8082_v10 = vld [vmem:[#allocation8 + $0xa48] ss:$16 sps:$4 sm:$0xff]  }
 0x413   : > { %5182 = vmatpush2.bf16.msra.mxu0 %v8013_v59  ;;  %5142 = vmatprep.subr.bf16.mxu1 %v8018_v11  ;;  %v8085_v59 = vld [vmem:[#allocation8 + $0xc48] ss:$16 sps:$4 sm:$0xff]   ;;  %v8090_v11 = vld [vmem:[#allocation8 + $0xa2c] ss:$16 sps:$4 sm:$0xff]  }
 0x414   : > { %5183 = vmatprep.subr.bf16.mxu0 %v8021_v12  ;;  %v8093_v12 = vld [vmem:[#allocation8 + $0xc2c] ss:$16 sps:$4 sm:$0xff]  }
 0x416   : > { %5143 = vmatpush2.bf16.msra.mxu1 %v8016_v62  ;;  %v8088_v62 = vld [vmem:[#allocation8 + $0xa28] ss:$16 sps:$4 sm:$0xff]  }
 0x417   : > { %5184 = vmatpush2.bf16.msra.mxu0 %v8019_v13  ;;  %5144 = vmatprep.subr.bf16.mxu1 %v8024_v14  ;;  %v8091_v13 = vld [vmem:[#allocation8 + $0xc28] ss:$16 sps:$4 sm:$0xff]   ;;  %v8096_v14 = vld [vmem:[#allocation8 + $0xa0c] ss:$16 sps:$4 sm:$0xff]  }
 0x418   : > { %5185 = vmatprep.subr.bf16.mxu0 %v8027_v15  ;;  %v8099_v15 = vld [vmem:[#allocation8 + $0xc0c] ss:$16 sps:$4 sm:$0xff]  }
 0x41a   : > { %5145 = vmatpush2.bf16.msra.mxu1 %v8022_v16  ;;  %v8094_v16 = vld [vmem:[#allocation8 + $0xa08] ss:$16 sps:$4 sm:$0xff]  }
 0x41b   : > { %5186 = vmatpush2.bf16.msra.mxu0 %v8025_v19  ;;  %5146 = vmatprep.subr.bf16.mxu1 %v8030_v21  ;;  %v8097_v19 = vld [vmem:[#allocation8 + $0xc08] ss:$16 sps:$4 sm:$0xff]   ;;  %v8102_v21 = vld [vmem:[#allocation8 + $0xbec] ss:$16 sps:$4 sm:$0xff]  }
 0x41c   : > { %5187 = vmatprep.subr.bf16.mxu0 %v8033_v33  ;;  %v8105_v33 = vld [vmem:[#allocation8 + $0xdec] ss:$16 sps:$4 sm:$0xff]  }
 0x41e   : > { %5147 = vmatpush2.bf16.msra.mxu1 %v8028_v25  ;;  %v8100_v25 = vld [vmem:[#allocation8 + $0xbe8] ss:$16 sps:$4 sm:$0xff]  }
 0x41f   : > { %5188 = vmatpush2.bf16.msra.mxu0 %v8031_v36  ;;  %5148 = vmatprep.subr.bf16.mxu1 %v8036_v52  ;;  %v8103_v36 = vld [vmem:[#allocation8 + $0xde8] ss:$16 sps:$4 sm:$0xff]   ;;  %v8108_v52 = vld [vmem:[#allocation8 + $0xbcc] ss:$16 sps:$4 sm:$0xff]  }
 0x420   : > { %5189 = vmatprep.subr.bf16.mxu0 %v8039_v27  ;;  %v8111_v27 = vld [vmem:[#allocation8 + $0xdcc] ss:$16 sps:$4 sm:$0xff]  }
 0x422   : > { %5149 = vmatpush2.bf16.msra.mxu1 %v8034_v28  ;;  %v8106_v28 = vld [vmem:[#allocation8 + $0xbc8] ss:$16 sps:$4 sm:$0xff]  }
 0x423   : > { %5190 = vmatpush2.bf16.msra.mxu0 %v8037_v32  ;;  %5150 = vmatprep.subr.bf16.mxu1 %v8042_v34  ;;  %v8109_v32 = vld [vmem:[#allocation8 + $0xdc8] ss:$16 sps:$4 sm:$0xff]   ;;  %v8114_v34 = vld [vmem:[#allocation8 + $0xbac] ss:$16 sps:$4 sm:$0xff]  }
 0x424   : > { %5191 = vmatprep.subr.bf16.mxu0 %v8045_v40  ;;  %v8117_v40 = vld [vmem:[#allocation8 + $0xdac] ss:$16 sps:$4 sm:$0xff]  }
 0x426   : > { %5151 = vmatpush2.bf16.msra.mxu1 %v8040_v6  ;;  %v8112_v6 = vld [vmem:[#allocation8 + $0xba8] ss:$16 sps:$4 sm:$0xff]  }
 0x427   : > { %5192 = vmatpush2.bf16.msra.mxu0 %v8043_v45  ;;  %5152 = vmatprep.subr.bf16.mxu1 %v8048_v1  ;;  %v8115_v45 = vld [vmem:[#allocation8 + $0xda8] ss:$16 sps:$4 sm:$0xff]   ;;  %v8120_v1 = vld [vmem:[#allocation8 + $0xb8c] ss:$16 sps:$4 sm:$0xff]  }
 0x428   : > { %5193 = vmatprep.subr.bf16.mxu0 %v8051_v18  ;;  %v8123_v18 = vld [vmem:[#allocation8 + $0xd8c] ss:$16 sps:$4 sm:$0xff]  }
 0x42a   : > { %5153 = vmatpush2.bf16.msra.mxu1 %v8046_v50  ;;  %v8118_v50 = vld [vmem:[#allocation8 + $0xb88] ss:$16 sps:$4 sm:$0xff]  }
 0x42b   : > { %5194 = vmatpush2.bf16.msra.mxu0 %v8049_v51  ;;  %5204 = vmatprep.subr.bf16.mxu1 %v8054_v60  ;;  %v8121_v51 = vld [vmem:[#allocation8 + $0xd88] ss:$16 sps:$4 sm:$0xff]   ;;  %v8126_v60 = vld [vmem:[#allocation8 + $0xb6c] ss:$16 sps:$4 sm:$0xff]  }
 0x42c   : > { %5245 = vmatprep.subr.bf16.mxu0 %v8057_v17  ;;  %v8129_v17 = vld [vmem:[#allocation8 + $0xd6c] ss:$16 sps:$4 sm:$0xff]  }
 0x42d   : > { %v4910_v61 = vpop.f32.mrf.mxu1  ;;  %5155 = vmatmul.mubr.bf16.vlgmr.msra.gmra.mxu1 %v9475_v56 }
 0x42e   : > { %v4911_v23 = vadd.f32 %v4910_v61, %v9525_v37  ;;  %v4951_v0 = vpop.f32.mrf.mxu0  ;;  %5196 = vmatmul.mubr.bf16.vlgmr.msra.gmra.mxu0 %v9491_v20  ;;  %5205 = vmatpush1.bf16.msra.mxu1 %v8052_v24  ;;  %v8069_v37 = vld [vmem:[#allocation8 + $0xcac] ss:$16 sps:$4 sm:$0xff]   ;;  %v8124_v24 = vld [vmem:[#allocation8 + $0xb68] ss:$16 sps:$4 sm:$0xff]  }
 0x42f   : > { %5236 = vmatprep.mubr.bf16.mxu1 %v9479_v43  ;;  %5246 = vmatpush1.bf16.msra.mxu0 %v8055_v9  ;;  %v9535_v38 = vpop.f32.mrf.mxu1  ;;  %v8127_v9 = vld [vmem:[#allocation8 + $0xd68] ss:$16 sps:$4 sm:$0xff]   ;;  %v8135_v61 = vld [vmem:[#allocation8 + $0xd4c] ss:$16 sps:$4 sm:$0xff]  }
 0x430   : > { %v9537_v4 = vadd.f32 %v4951_v0, %v4911_v23  ;;  %5277 = vmatprep.mubr.bf16.mxu0 %v9495_v26  ;;  %v9540_v56 = vpop.f32.mrf.mxu0  ;;  %5206 = vmatprep.subr.bf16.mxu1 %v8060_v35  ;;  %v8073_v26 = vld [vmem:[#allocation8 + $0xc88] ss:$16 sps:$4 sm:$0xff]   ;;  %v8132_v35 = vld [vmem:[#allocation8 + $0xb4c] ss:$16 sps:$4 sm:$0xff]  }
 0x431   : > { %v4914_v5 = vpop.f32.mrf.mxu1  ;;  %5247 = vmatprep.subr.bf16.mxu0 %v8063_v55  ;;  %v8130_v55 = vld [vmem:[#allocation8 + $0xb48] ss:$16 sps:$4 sm:$0xff]   ;;  %v8138_v0 = vld [vmem:[#allocation8 + $0xb2c] ss:$16 sps:$4 sm:$0xff]  }
 0x432   : > { %v4955_v20 = vpop.f32.mrf.mxu0  ;;  %5207 = vmatpush1.bf16.msra.mxu1 %v8058_v44  ;;  %v8133_v23 = vld [vmem:[#allocation8 + $0xd48] ss:$16 sps:$4 sm:$0xff]   ;;  %v8141_v44 = vld [vmem:[#allocation8 + $0xd2c] ss:$16 sps:$4 sm:$0xff]  }
 0x433   : > { %5248 = vmatpush1.bf16.msra.mxu0 %v8061_v30  ;;  %v4915_v43 = vpop.f32.mrf.mxu1  ;;  %5208 = vmatprep.subr.bf16.mxu1 %v8066_v3  ;;  %v8136_v30 = vld [vmem:[#allocation8 + $0xb28] ss:$16 sps:$4 sm:$0xff]   ;;  %v8147_v5 = vld [vmem:[#allocation8 + $0xd0c] ss:$16 sps:$4 sm:$0xff]  }
 0x434   : > { %v4956_v47 = vpop.f32.mrf.mxu0  ;;  %5249 = vmatprep.subr.bf16.mxu0 %v8069_v37  ;;  %v8139_v3 = vld [vmem:[#allocation8 + $0xd28] ss:$16 sps:$4 sm:$0xff]   ;;  %v8144_v37 = vld [vmem:[#allocation8 + $0xb0c] ss:$16 sps:$4 sm:$0xff]  }
 0x435   : > { %v8142_v20 = vld [vmem:[#allocation8 + $0xb08] ss:$16 sps:$4 sm:$0xff]  }
 0x436   : > { %5209 = vmatpush1.bf16.msra.mxu1 %v8064_v41  ;;  %v8145_v41 = vld [vmem:[#allocation8 + $0xd08] ss:$16 sps:$4 sm:$0xff]  }
 0x437   : > { %5250 = vmatpush1.bf16.msra.mxu0 %v8067_v42  ;;  %5210 = vmatprep.subr.bf16.mxu1 %v8072_v46  ;;  %v8150_v43 = vld [vmem:[#allocation11 + $0x74] ss:$8 sps:$4 sm:$0xff]   ;;  %v4913_v42 = vadd.f32 %v9535_v38, %v9529_v48  ;;  %v8148_v46 = vld [vmem:[#allocation11 + $0x70] ss:$8 sps:$4 sm:$0xff]   ;;  %v8153_v47 = vld [vmem:[#allocation11 + $0x64] ss:$8 sps:$4 sm:$0xff]  }
 0x438   : > { %5251 = vmatprep.subr.bf16.mxu0 %v8075_v53  ;;  %v8156_v48 = vld [vmem:[#allocation11 + $0x54] ss:$8 sps:$4 sm:$0xff]  }
 0x43a   : > { %5211 = vmatpush1.bf16.msra.mxu1 %v8070_v7  ;;  %v4954_v7 = vadd.f32 %v9540_v56, %v4913_v42  ;;  %v8159_v56 = vld [vmem:[#allocation11 + $0x44] ss:$8 sps:$4 sm:$0xff]   ;;  %v8226_v42 = vld [vmem:[#allocation11 + $0x1d0] ss:$8 sps:$4 sm:$0xff]  }
 0x43b   : > { %5252 = vmatpush1.bf16.msra.mxu0 %v8073_v26  ;;  %5212 = vmatprep.subr.bf16.mxu1 %v8078_v54  ;;  %v8151_v54 = vld [vmem:[#allocation11 + $0x60] ss:$8 sps:$4 sm:$0xff]  }
 0x43c   : > { %5253 = vmatprep.subr.bf16.mxu0 %v8081_v8 }
 0x43e   : > { %5213 = vmatpush1.bf16.msra.mxu1 %v8076_v29 }
 0x43f   : > { %5254 = vmatpush1.bf16.msra.mxu0 %v8079_v58  ;;  %5214 = vmatprep.subr.bf16.mxu1 %v8084_v31 }
 0x440   : > { %5255 = vmatprep.subr.bf16.mxu0 %v8087_v2 }
 0x442   : > { %5215 = vmatpush1.bf16.msra.mxu1 %v8082_v10  ;;  %v8154_v10 = vld [vmem:[#allocation11 + $0x50] ss:$8 sps:$4 sm:$0xff]  }
 0x443   : > { %5256 = vmatpush1.bf16.msra.mxu0 %v8085_v59  ;;  %5216 = vmatprep.subr.bf16.mxu1 %v8090_v11 }
 0x444   : > { %5257 = vmatprep.subr.bf16.mxu0 %v8093_v12  ;;  %v8196_v12 = vld [vmem:[#allocation11 + $0x170] ss:$8 sps:$4 sm:$0xff]  }
 0x446   : > { %5217 = vmatpush1.bf16.msra.mxu1 %v8088_v62  ;;  %v8201_v62 = vld [vmem:[#allocation11 + $0x164] ss:$8 sps:$4 sm:$0xff]  }
 0x447   : > { %5258 = vmatpush1.bf16.msra.mxu0 %v8091_v13  ;;  %5218 = vmatprep.subr.bf16.mxu1 %v8096_v14  ;;  %v8157_v13 = vld [vmem:[#allocation11 + $0x40] ss:$8 sps:$4 sm:$0xff]   ;;  %v8162_v14 = vld [vmem:[#allocation11 + $0x34] ss:$8 sps:$4 sm:$0xff]  }
 0x448   : > { %5259 = vmatprep.subr.bf16.mxu0 %v8099_v15  ;;  %v8199_v15 = vld [vmem:[#allocation11 + $0x160] ss:$8 sps:$4 sm:$0xff]  }
 0x44a   : > { %5219 = vmatpush1.bf16.msra.mxu1 %v8094_v16  ;;  %v8204_v16 = vld [vmem:[#allocation11 + $0x154] ss:$8 sps:$4 sm:$0xff]  }
 0x44b   : > { %5260 = vmatpush1.bf16.msra.mxu0 %v8097_v19  ;;  %5220 = vmatprep.subr.bf16.mxu1 %v8102_v21  ;;  %v8160_v19 = vld [vmem:[#allocation11 + $0x30] ss:$8 sps:$4 sm:$0xff]   ;;  %v8165_v21 = vld [vmem:[#allocation11 + $0x24] ss:$8 sps:$4 sm:$0xff]  }
 0x44c   : > { %5261 = vmatprep.subr.bf16.mxu0 %v8105_v33  ;;  %v8202_v33 = vld [vmem:[#allocation11 + $0x150] ss:$8 sps:$4 sm:$0xff]  }
 0x44e   : > { %5221 = vmatpush2.bf16.msra.mxu1 %v8100_v25  ;;  %v8207_v25 = vld [vmem:[#allocation11 + $0x144] ss:$8 sps:$4 sm:$0xff]  }
 0x44f   : > { %5262 = vmatpush2.bf16.msra.mxu0 %v8103_v36  ;;  %5222 = vmatprep.subr.bf16.mxu1 %v8108_v52  ;;  %v8163_v36 = vld [vmem:[#allocation11 + $0x20] ss:$8 sps:$4 sm:$0xff]   ;;  %v8168_v52 = vld [vmem:[#allocation11 + $0x14] ss:$8 sps:$4 sm:$0xff]  }
 0x450   : > { %5263 = vmatprep.subr.bf16.mxu0 %v8111_v27  ;;  %v8205_v27 = vld [vmem:[#allocation11 + $0x140] ss:$8 sps:$4 sm:$0xff]  }
 0x452   : > { %5223 = vmatpush2.bf16.msra.mxu1 %v8106_v28  ;;  %v8210_v28 = vld [vmem:[#allocation11 + $0x134] ss:$8 sps:$4 sm:$0xff]  }
 0x453   : > { %5264 = vmatpush2.bf16.msra.mxu0 %v8109_v32  ;;  %5224 = vmatprep.subr.bf16.mxu1 %v8114_v34  ;;  %v8166_v32 = vld [vmem:[#allocation11 + $0x10] ss:$8 sps:$4 sm:$0xff]   ;;  %v8171_v34 = vld [vmem:[#allocation11 + $0x4] ss:$8 sps:$4 sm:$0xff]  }
 0x454   : > { %5265 = vmatprep.subr.bf16.mxu0 %v8117_v40  ;;  %v8208_v40 = vld [vmem:[#allocation11 + $0x130] ss:$8 sps:$4 sm:$0xff]  }
 0x456   : > { %5225 = vmatpush2.bf16.msra.mxu1 %v8112_v6  ;;  %v8213_v6 = vld [vmem:[#allocation11 + $0x124] ss:$8 sps:$4 sm:$0xff]  }
 0x457   : > { %5266 = vmatpush2.bf16.msra.mxu0 %v8115_v45  ;;  %5226 = vmatprep.subr.bf16.mxu1 %v8120_v1  ;;  %v8169_v45 = vld [vmem:[#allocation11] ss:$8 sps:$4 sm:$0xff]   ;;  %v8174_v1 = vld [vmem:[#allocation11 + $0xf4] ss:$8 sps:$4 sm:$0xff]  }
 0x458   : > { %5267 = vmatprep.subr.bf16.mxu0 %v8123_v18  ;;  %v8211_v18 = vld [vmem:[#allocation11 + $0x120] ss:$8 sps:$4 sm:$0xff]  }
 0x45a   : > { %5227 = vmatpush2.bf16.msra.mxu1 %v8118_v50  ;;  %v8216_v50 = vld [vmem:[#allocation11 + $0x114] ss:$8 sps:$4 sm:$0xff]  }
 0x45b   : > { %5268 = vmatpush2.bf16.msra.mxu0 %v8121_v51  ;;  %5228 = vmatprep.subr.bf16.mxu1 %v8126_v60  ;;  %v8172_v51 = vld [vmem:[#allocation11 + $0xf0] ss:$8 sps:$4 sm:$0xff]   ;;  %v8177_v60 = vld [vmem:[#allocation11 + $0xe4] ss:$8 sps:$4 sm:$0xff]  }
 0x45c   : > { %5269 = vmatprep.subr.bf16.mxu0 %v8129_v17  ;;  %v8214_v17 = vld [vmem:[#allocation11 + $0x110] ss:$8 sps:$4 sm:$0xff]  }
 0x45e   : > { %5229 = vmatpush2.bf16.msra.mxu1 %v8124_v24  ;;  %v8219_v24 = vld [vmem:[#allocation11 + $0x104] ss:$8 sps:$4 sm:$0xff]  }
 0x45f   : > { %5270 = vmatpush2.bf16.msra.mxu0 %v8127_v9  ;;  %5230 = vmatprep.subr.bf16.mxu1 %v8132_v35  ;;  %v8175_v9 = vld [vmem:[#allocation11 + $0xe0] ss:$8 sps:$4 sm:$0xff]   ;;  %v8180_v35 = vld [vmem:[#allocation11 + $0xd4] ss:$8 sps:$4 sm:$0xff]  }
 0x460   : > { %5271 = vmatprep.subr.bf16.mxu0 %v8135_v61  ;;  %v8217_v61 = vld [vmem:[#allocation11 + $0x100] ss:$8 sps:$4 sm:$0xff]  }
 0x462   : > { %5231 = vmatpush2.bf16.msra.mxu1 %v8130_v55  ;;  %v8222_v55 = vld [vmem:[#allocation11 + $0x1f4] ss:$8 sps:$4 sm:$0xff]  }
 0x463   : > { %5272 = vmatpush2.bf16.msra.mxu0 %v8133_v23  ;;  %5232 = vmatprep.subr.bf16.mxu1 %v8138_v0  ;;  %v8178_v23 = vld [vmem:[#allocation11 + $0xd0] ss:$8 sps:$4 sm:$0xff]   ;;  %v8183_v0 = vld [vmem:[#allocation11 + $0xc4] ss:$8 sps:$4 sm:$0xff]  }
 0x464   : > { %5273 = vmatprep.subr.bf16.mxu0 %v8141_v44  ;;  %v8220_v44 = vld [vmem:[#allocation11 + $0x1f0] ss:$8 sps:$4 sm:$0xff]  }
 0x466   : > { %5233 = vmatpush2.bf16.msra.mxu1 %v8136_v30  ;;  %v8225_v30 = vld [vmem:[#allocation11 + $0x1e4] ss:$8 sps:$4 sm:$0xff]  }
 0x467   : > { %5274 = vmatpush2.bf16.msra.mxu0 %v8139_v3  ;;  %5234 = vmatprep.subr.bf16.mxu1 %v8144_v37  ;;  %v8181_v3 = vld [vmem:[#allocation11 + $0xc0] ss:$8 sps:$4 sm:$0xff]   ;;  %v8186_v37 = vld [vmem:[#allocation11 + $0xb4] ss:$8 sps:$4 sm:$0xff]  }
 0x468   : > { %5275 = vmatprep.subr.bf16.mxu0 %v8147_v5  ;;  %v8223_v5 = vld [vmem:[#allocation11 + $0x1e0] ss:$8 sps:$4 sm:$0xff]  }
 0x46a   : > { %5235 = vmatpush2.bf16.msra.mxu1 %v8142_v20  ;;  %v8228_v20 = vld [vmem:[#allocation11 + $0x1d4] ss:$8 sps:$4 sm:$0xff]  }
 0x46b   : > { %5276 = vmatpush2.bf16.msra.mxu0 %v8145_v41  ;;  %5690 = vmatprep.subr.bf16.mxu1 %v8150_v43  ;;  %v8184_v41 = vld [vmem:[#allocation11 + $0xb0] ss:$8 sps:$4 sm:$0xff]   ;;  %v8189_v43 = vld [vmem:[#allocation11 + $0xa4] ss:$8 sps:$4 sm:$0xff]  }
 0x46d   : > { %v9544_v53 = vpop.f32.mrf.mxu1  ;;  %5237 = vmatmul.mubr.bf16.vlgmr.msra.gmra.mxu1 %v9493_v22 }
 0x46e   : > { %v9548_v26 = vpop.f32.mrf.mxu0  ;;  %5278 = vmatmul.mubr.bf16.vlgmr.msra.gmra.mxu0 %v9509_v49  ;;  %5691 = vmatpush1.bf16.msra.mxu1 %v8148_v46  ;;  %v8198_v49 = vld [vmem:[#allocation11 + $0x174] ss:$8 sps:$4 sm:$0xff]   ;;  %v8231_v46 = vld [vmem:[#allocation11 + $0x1c4] ss:$8 sps:$4 sm:$0xff]  }
 0x46f   : > { %v4994_v8 = vpop.f32.mrf.mxu1  ;;  %5692 = vmatprep.subr.bf16.mxu1 %v8153_v47  ;;  %5731 = vmatprep.subr.bf16.mxu0 %v8198_v49  ;;  %v8187_v47 = vld [vmem:[#allocation11 + $0xa0] ss:$8 sps:$4 sm:$0xff]  }
 0x470   : > { %v4995_v38 = vadd.f32 %v4994_v8, %v4954_v7  ;;  %v9551_v29 = vpop.f32.mrf.mxu0  ;;  %5732 = vmatpush1.bf16.msra.mxu0 %v8196_v12  ;;  %v8192_v7 = vld [vmem:[#allocation11 + $0x94] ss:$8 sps:$4 sm:$0xff]  }
 0x471   : > { %v4996_v58 = vpop.f32.mrf.mxu1  ;;  %5733 = vmatprep.subr.bf16.mxu0 %v8201_v62  ;;  %v8234_v8 = vld [vmem:[#allocation11 + $0x1b4] ss:$8 sps:$4 sm:$0xff]   ;;  %v8237_v62 = vld [vmem:[#allocation11 + $0x1a4] ss:$8 sps:$4 sm:$0xff]  }
 0x472   : > { %v5287_v31 = vmax.f32 %v4995_v38, 0.0  ;;  %v5037_v2 = vpop.f32.mrf.mxu0  ;;  %5693 = vmatpush1.bf16.msra.mxu1 %v8151_v54  ;;  %v8229_v54 = vld [vmem:[#allocation11 + $0x1c0] ss:$8 sps:$4 sm:$0xff]   ;;  %v4993_v38 = vadd.f32 %v9544_v53, %v9537_v4  ;;  %v8195_v58 = vld [vmem:[#allocation11 + $0x84] ss:$8 sps:$4 sm:$0xff]  }
 0x473   : > { %v4997_v22 = vpop.f32.mrf.mxu1  ;;  %5694 = vmatprep.subr.bf16.mxu1 %v8156_v48  ;;  %v8190_v48 = vld [vmem:[#allocation11 + $0x90] ss:$8 sps:$4 sm:$0xff]  }
 0x474   : > { %v5291_v59 = vpack.c.bf16 %v5287_v31, %v5287_v31  ;;  %v5038_v11 = vpop.f32.mrf.mxu0  ;;  %5734 = vmatpush1.bf16.msra.mxu0 %v8199_v15  ;;  %v4702_v31 = vsub.s32 2, %v9502_v39  ;;  %v8232_v2 = vld [vmem:[#allocation11 + $0x1b0] ss:$8 sps:$4 sm:$0xff]   ;;  %v8193_v22 = vld [vmem:[#allocation11 + $0x80] ss:$8 sps:$4 sm:$0xff]  }
 0x475   : > { %5735 = vmatprep.subr.bf16.mxu0 %v8204_v16  ;;  %v8235_v16 = vld [vmem:[#allocation11 + $0x1a0] ss:$8 sps:$4 sm:$0xff]  }
 0x476   : > { %5695 = vmatpush1.bf16.msra.mxu1 %v8154_v10  ;;  %5722 = vmatprep.mubr.bf16.mxu1 %v5291_v59  ;;  %v4706_v10 = vsub.s32 3, %v9502_v39  ;;  %v8324_v59 = vld [vmem:[#allocation9] sm:$0xf]  ;;  %v8267_v39 = vld [vmem:[#allocation17] sm:$0xff]  }
 0x477   : > { %5696 = vmatprep.subr.bf16.mxu1 %v8159_v56  ;;  %v5286_v56 = vmax.f32 %v4993_v38, 0.0  ;;  %v4703_v11 = vrot.slane %v8324_v59, %v4702_v31 }
 0x478   : > { %5736 = vmatpush1.bf16.msra.mxu0 %v8202_v33  ;;  %v4707_v12 = vrot.slane %v8324_v59, %v4706_v10 }
 0x479   : > { %5737 = vmatprep.subr.bf16.mxu0 %v8207_v25  ;;  %v5290_v49 = vpack.c.bf16 %v5286_v56, %v5286_v56  ;;  %v5034_v4 = vadd.f32 %v9548_v26, %v4703_v11 }
 0x47a   : > { %5697 = vmatpush1.bf16.msra.mxu1 %v8157_v13  ;;  %v5036_v13 = vadd.f32 %v9551_v29, %v4707_v12  ;;  %v8241_v29 = vld [vmem:[#allocation11 + $0x180] ss:$8 sps:$4 sm:$0xff]  }
 0x47b   : > { %5698 = vmatprep.subr.bf16.mxu1 %v8162_v14 }
 0x47c   : > { %5738 = vmatpush1.bf16.msra.mxu0 %v8205_v27 }
 0x47d   : > { %5739 = vmatprep.subr.bf16.mxu0 %v8210_v28 }
 0x47e   : > { %5699 = vmatpush1.bf16.msra.mxu1 %v8160_v19 }
 0x47f   : > { %5700 = vmatprep.subr.bf16.mxu1 %v8165_v21 }
 0x480   : > { %5740 = vmatpush1.bf16.msra.mxu0 %v8208_v40  ;;  %v8243_v40 = vld [vmem:[#allocation11 + $0x184] ss:$8 sps:$4 sm:$0xff]  }
 0x481   : > { %5741 = vmatprep.subr.bf16.mxu0 %v8213_v6 }
 0x482   : > { %5701 = vmatpush1.bf16.msra.mxu1 %v8163_v36 }
 0x483   : > { %5702 = vmatprep.subr.bf16.mxu1 %v8168_v52  ;;  %v8240_v52 = vld [vmem:[#allocation11 + $0x194] ss:$8 sps:$4 sm:$0xff]  }
 0x484   : > { %5742 = vmatpush1.bf16.msra.mxu0 %v8211_v18 }
 0x485   : > { %5743 = vmatprep.subr.bf16.mxu0 %v8216_v50 }
 0x486   : > { %5703 = vmatpush1.bf16.msra.mxu1 %v8166_v32  ;;  %v8238_v32 = vld [vmem:[#allocation11 + $0x190] ss:$8 sps:$4 sm:$0xff]  }
 0x487   : > { %5704 = vmatprep.subr.bf16.mxu1 %v8171_v34 }
 0x488   : > { %5744 = vmatpush1.bf16.msra.mxu0 %v8214_v17 }
 0x489   : > { %5745 = vmatprep.subr.bf16.mxu0 %v8219_v24 }
 0x48a   : > { %5705 = vmatpush1.bf16.msra.mxu1 %v8169_v45 }
 0x48b   : > { %5706 = vmatprep.subr.bf16.mxu1 %v8174_v1 }
 0x48c   : > { %5746 = vmatpush1.bf16.msra.mxu0 %v8217_v61  ;;  %v8246_v61 = vld [vmem:[#allocation14 + $0x70] sm:$0xff]  }
 0x48d   : > { %5747 = vmatprep.subr.bf16.mxu0 %v8222_v55 }
 0x48e   : > { %5707 = vmatpush2.bf16.msra.mxu1 %v8172_v51 }
 0x48f   : > { %5708 = vmatprep.subr.bf16.mxu1 %v8177_v60 }
 0x490   : > { %5748 = vmatpush2.bf16.msra.mxu0 %v8220_v44  ;;  %v8249_v44 = vld [vmem:[#allocation14 + $0x28] sm:$0xff]  }
 0x491   : > { %5749 = vmatprep.subr.bf16.mxu0 %v8225_v30  ;;  %v8250_v30 = vld [vmem:[#allocation14 + $0x60] sm:$0xff]  }
 0x492   : > { %5709 = vmatpush2.bf16.msra.mxu1 %v8175_v9  ;;  %v8244_v9 = vld [vmem:[#allocation14 + $0x78] sm:$0xff]  }
 0x493   : > { %5710 = vmatprep.subr.bf16.mxu1 %v8180_v35  ;;  %v8245_v35 = vld [vmem:[#allocation14 + $0x38] sm:$0xff]  }
 0x494   : > { %5750 = vmatpush2.bf16.msra.mxu0 %v8223_v5  ;;  %v8253_v5 = vld [vmem:[#allocation14 + $0x18] sm:$0xff]  }
 0x495   : > { %5751 = vmatprep.subr.bf16.mxu0 %v8228_v20  ;;  %v8254_v20 = vld [vmem:[#allocation14 + $0x50] sm:$0xff]  }
 0x496   : > { %5711 = vmatpush2.bf16.msra.mxu1 %v8178_v23  ;;  %v8247_v23 = vld [vmem:[#allocation14 + $0x30] sm:$0xff]  }
 0x497   : > { %5712 = vmatprep.subr.bf16.mxu1 %v8183_v0  ;;  %v8248_v0 = vld [vmem:[#allocation14 + $0x68] sm:$0xff]  }
 0x498   : > { %5752 = vmatpush2.bf16.msra.mxu0 %v8226_v42 }
 0x499   : > { %5753 = vmatprep.subr.bf16.mxu0 %v8231_v46 }
 0x49a   : > { %5713 = vmatpush2.bf16.msra.mxu1 %v8181_v3  ;;  %v8251_v3 = vld [vmem:[#allocation14 + $0x20] sm:$0xff]  }
 0x49b   : > { %5714 = vmatprep.subr.bf16.mxu1 %v8186_v37  ;;  %v8252_v37 = vld [vmem:[#allocation14 + $0x58] sm:$0xff]  }
 0x49c   : > { %5754 = vmatpush2.bf16.msra.mxu0 %v8229_v54 }
 0x49d   : > { %5755 = vmatprep.subr.bf16.mxu0 %v8234_v8 }
 0x49e   : > { %5715 = vmatpush2.bf16.msra.mxu1 %v8184_v41  ;;  %v8255_v41 = vld [vmem:[#allocation14 + $0x10] sm:$0xff]  }
 0x49f   : > { %5716 = vmatprep.subr.bf16.mxu1 %v8189_v43 }
 0x4a0   : > { %5756 = vmatpush2.bf16.msra.mxu0 %v8232_v2 }
 0x4a1   : > { %5757 = vmatprep.subr.bf16.mxu0 %v8237_v62 }
 0x4a2   : > { %5717 = vmatpush2.bf16.msra.mxu1 %v8187_v47 }
 0x4a3   : > { %5718 = vmatprep.subr.bf16.mxu1 %v8192_v7 }
 0x4a4   : > { %5758 = vmatpush2.bf16.msra.mxu0 %v8235_v16  ;;  %v8259_v16 = vld [vmem:[#allocation14] sm:$0xff]  }
 0x4a5   : > { %5759 = vmatprep.subr.bf16.mxu0 %v8240_v52  ;;  %v8264_v52 = vld [vmem:[#allocation17 + $0x18] sm:$0xff]  }
 0x4a6   : > { %5719 = vmatpush2.bf16.msra.mxu1 %v8190_v48 }
 0x4a7   : > { %5720 = vmatprep.subr.bf16.mxu1 %v8195_v58 }
 0x4a8   : > { %5760 = vmatpush2.bf16.msra.mxu0 %v8238_v32 }
 0x4a9   : > { %5761 = vmatprep.subr.bf16.mxu0 %v8243_v40 }
 0x4aa   : > { %5721 = vmatpush2.bf16.msra.mxu1 %v8193_v22 }
 0x4ab   : > { %6976 = vmatprep.subr.bf16.mxu1 %v8244_v9  ;;  %v5808_v9 = vld [vmem:[#allocation15] sm:$0x1] }
 0x4ac   : > { %5762 = vmatpush2.bf16.msra.mxu0 %v8241_v29 }
 0x4ad   : > { %v5074_v53 = vpop.f32.mrf.mxu1  ;;  %5723 = vmatmul.mubr.bf16.vlgmr.msra.gmra.mxu1 %v5290_v49 }
 0x4ae   : > { %v5075_v14 = vadd.f32 %v5074_v53, %v5034_v4  ;;  %v5115_v15 = vpop.f32.mrf.mxu0  ;;  %6977 = vmatpush3.bf16.msra.mxu1 %v8245_v35 }
 0x4af   : > { %v5076_v19 = vpop.f32.mrf.mxu1  ;;  %6978 = vmatprep.subr.bf16.mxu1 %v8246_v61 }
 0x4b0   : > { %v5116_v21 = vadd.f32 %v5115_v15, %v5075_v14  ;;  %v5077_v33 = vadd.f32 %v5076_v19, %v5036_v13  ;;  %v5117_v25 = vpop.f32.mrf.mxu0  ;;  %v8256_v13 = vld [vmem:[#allocation14 + $0x48] sm:$0xff]   ;;  %v8258_v15 = vld [vmem:[#allocation14 + $0x40] sm:$0xff]  }
 0x4b1   : > { %v5078_v36 = vpop.f32.mrf.mxu1  ;;  %v8257_v14 = vld [vmem:[#allocation14 + $0x8] sm:$0xff]   ;;  %v8260_v19 = vld [vmem:[#allocation17 + $0x38] sm:$0xff]  }
 0x4b2   : > { %v5118_v27 = vadd.f32 %v5117_v25, %v5077_v33  ;;  %v5119_v28 = vpop.f32.mrf.mxu0  ;;  %6979 = vmatpush3.bf16.msra.mxu1 %v8247_v23  ;;  %v8261_v33 = vld [vmem:[#allocation17 + $0x30] sm:$0xff]   ;;  %v8262_v25 = vld [vmem:[#allocation17 + $0x28] sm:$0xff]   ;;  %v8263_v36 = vld [vmem:[#allocation17 + $0x20] sm:$0xff]  }
 0x4b3   : > { %v5079_v26 = vpop.f32.mrf.mxu1  ;;  %6980 = vmatprep.subr.bf16.mxu1 %v8248_v0 }
 0x4b4   : > { %v5120_v34 = vpop.f32.mrf.mxu0 }
 0x4b6   : > { %6981 = vmatpush3.bf16.msra.mxu1 %v8249_v44 }
 0x4b7   : > { %6982 = vmatprep.subr.bf16.mxu1 %v8250_v30 }
 0x4ba   : > { %6983 = vmatpush3.bf16.msra.mxu1 %v8251_v3  ;;  %v5963_v3 = vld [vmem:[#allocation18] sm:$0x1] }
 0x4bb   : > { %6984 = vmatprep.subr.bf16.mxu1 %v8252_v37 }
 0x4be   : > { %6985 = vmatpush3.bf16.msra.mxu1 %v8253_v5 }
 0x4bf   : > { %6986 = vmatprep.subr.bf16.mxu1 %v8254_v20 }
 0x4c2   : > { %6987 = vmatpush3.bf16.msra.mxu1 %v8255_v41 }
 0x4c3   : > { %6988 = vmatprep.subr.bf16.mxu1 %v8256_v13 }
 0x4c6   : > { %6989 = vmatpush3.bf16.msra.mxu1 %v8257_v14 }
 0x4c7   : > { %6990 = vmatprep.subr.bf16.mxu1 %v8258_v15 }
 0x4ca   : > { %6991 = vmatpush3.bf16.msra.mxu1 %v8259_v16 }
 0x4ed   : > { %v5156_v6 = vpop.f32.mrf.mxu1 }
 0x4ee   : > { %v5157_v45 = vadd.f32 %v5156_v6, %v5116_v21  ;;  %v5197_v1 = vpop.f32.mrf.mxu0  ;;  %v8722_v21 = vmov 0.0  }
 0x4ef   : > { %v5158_v18 = vpop.f32.mrf.mxu1  ;;  %7027 = vmatprep.subr.bf16.mxu0 %v8722_v21 }
 0x4f0   : > { %v5198_v50 = vadd.f32 %v5197_v1, %v5157_v45  ;;  %v5199_v51 = vpop.f32.mrf.mxu0  ;;  %v5159_v43 = vadd.f32 %v5158_v18, %v5118_v27  ;;  %v5358_v27 = vld [vmem:[#allocation12] sm:$0x3] }
 0x4f1   : > { %v5160_v60 = vpop.f32.mrf.mxu1  ;;  %v5683_v28 = vrot.slane %v5358_v27, %v4694_v57  ;;  %v5687_v32 = vrot.slane %v5358_v27, %v4698_v63  ;;  %v8266_v57 = vld [vmem:[#allocation17 + $0x8] sm:$0xff]  }
 0x4f2   : > { %v5201_v17 = vpop.f32.mrf.mxu0  ;;  %v5200_v46 = vadd.f32 %v5199_v51, %v5159_v43 }
 0x4f3   : > { %v5161_v24 = vpop.f32.mrf.mxu1 }
 0x4f4   : > { %v5202_v55 = vpop.f32.mrf.mxu0  ;;  %v8265_v24 = vld [vmem:[#allocation17 + $0x10] sm:$0xff]  }
 0x52d   : > { %v5238_v42 = vpop.f32.mrf.mxu1 }
 0x52e   : > { %v5239_v47 = vadd.f32 %v5238_v42, %v5198_v50  ;;  %v5279_v7 = vpop.f32.mrf.mxu0 }
 0x52f   : > { %v5240_v54 = vpop.f32.mrf.mxu1 }
 0x530   : > { %v5280_v8 = vadd.f32 %v5279_v7, %v5239_v47  ;;  %v5241_v48 = vadd.f32 %v5240_v54, %v5200_v46  ;;  %v5281_v38 = vpop.f32.mrf.mxu0 }
 0x531   : > { %v5242_v58 = vpop.f32.mrf.mxu1 }
 0x532   : > { %v5282_v31 = vadd.f32 %v5281_v38, %v5241_v48  ;;  %v5283_v2 = vpop.f32.mrf.mxu0  ;;  %v5288_v10 = vmax.f32 %v5280_v8, 0.0 }
 0x533   : > { %v5243_v22 = vpop.f32.mrf.mxu1 }
 0x534   : > { %v5289_v56 = vmax.f32 %v5282_v31, 0.0  ;;  %v5284_v59 = vpop.f32.mrf.mxu0  ;;  %v5292_v12 = vpack.c.bf16 %v5288_v10, %v5288_v10 }
 0x536   : > { %v5293_v11 = vpack.c.bf16 %v5289_v56, %v5289_v56 }
 0x538   : > { %5763 = vmatprep.mubr.bf16.mxu0 %v5293_v11 }
 0x539   : > { %5764 = vmatmul.mubr.bf16.vlgmr.msra.gmra.mxu0 %v5292_v12 }
 0x53a   : > { %7028 = vmatpush3.bf16.msra.mxu0 %v8260_v19  ;;  %7043 = vmatprep.mubr.msk.bf16.mxu0 %vm8723_vm3, %v8722_v21 }
 0x53b   : > { %7029 = vmatprep.subr.bf16.mxu0 %v8722_v21 }
 0x53e   : > { %7030 = vmatpush3.bf16.msra.mxu0 %v8261_v33 }
 0x53f   : > { %7031 = vmatprep.subr.bf16.mxu0 %v8722_v21 }
 0x542   : > { %7032 = vmatpush3.bf16.msra.mxu0 %v8262_v25 }
 0x543   : > { %7033 = vmatprep.subr.bf16.mxu0 %v8722_v21 }
 0x546   : > { %7034 = vmatpush3.bf16.msra.mxu0 %v8263_v36 }
 0x547   : > { %7035 = vmatprep.subr.bf16.mxu0 %v8722_v21 }
 0x54a   : > { %7036 = vmatpush3.bf16.msra.mxu0 %v8264_v52 }
 0x54b   : > { %7037 = vmatprep.subr.bf16.mxu0 %v8722_v21 }
 0x54e   : > { %7038 = vmatpush3.bf16.msra.mxu0 %v8265_v24 }
 0x54f   : > { %7039 = vmatprep.subr.bf16.mxu0 %v8722_v21 }
 0x552   : > { %7040 = vmatpush3.bf16.msra.mxu0 %v8266_v57 }
 0x553   : > { %7041 = vmatprep.subr.bf16.mxu0 %v8722_v21 }
 0x556   : > { %7042 = vmatpush3.bf16.msra.mxu0 %v8267_v39 }
 0x56d   : > { %v5724_v49 = vpop.f32.mrf.mxu1 }
 0x56e   : > { %v5725_v26 = vadd.f32 %v5724_v49, %v5683_v28 }
 0x56f   : > { %v5726_v4 = vpop.f32.mrf.mxu1 }
 0x570   : > { %v5727_v40 = vadd.f32 %v5726_v4, %v5687_v32 }
 0x571   : > { %v5728_v53 = vpop.f32.mrf.mxu1 }
 0x573   : > { %v5729_v62 = vpop.f32.mrf.mxu1 }
 0x5f9   : > { %v5765_v34 = vpop.f32.mrf.mxu0 }
 0x5fa   : > { %v5766_v29 = vadd.f32 %v5765_v34, %v5725_v26 }
 0x5fb   : > { %v5767_v6 = vpop.f32.mrf.mxu0 }
 0x5fc   : > { %v5768_v45 = vadd.f32 %v5767_v6, %v5727_v40  ;;  %v5772_v1 = vmax.f32 %v5766_v29, 0.0 }
 0x5fd   : > { %v5769_v18 = vpop.f32.mrf.mxu0 }
 0x5fe   : > { %v5773_v50 = vmax.f32 %v5768_v45, 0.0  ;;  %v5774_v17 = vpack.c.bf16 %v5772_v1, %v5772_v1 }
 0x5ff   : > { %v5770_v51 = vpop.f32.mrf.mxu0 }
 0x600   : > { %v5775_v60 = vpack.c.bf16 %v5773_v50, %v5773_v50 }
 0x602   : > { %5937 = vmatprep.mubr.bf16.mxu1 %v5775_v60 }
 0x603   : > { %5938 = vmatmul.mubr.bf16.vlgmr.msra.gmra.mxu1 %v5774_v17 }
 0x6c3   : > { %v6992_v63 = vpop.f32.mrf.mxu1 }
 0x6c5   : > { %v6993_v35 = vpop.f32.mrf.mxu1 }
 0x6c6   : > { %v6994_v61 = vadd.f32 %v6993_v35, %v6992_v63 }
 0x6c7   : > { %v6995_v55 = vpop.f32.mrf.mxu1 }
 0x6c8   : > { %v5940_v23 = vadd.f32 %v6994_v61, %v5808_v9 }
 0x6c9   : > { %v6996_v0 = vpop.f32.mrf.mxu1 }
 0x6ca   : > { %v5945_v44 = vmax.f32 %v5940_v23, 0.0 }
 0x6cc   : > { %v5946_v30 = vpack.c.bf16 %v5945_v44, %v5945_v44 }
 0x6ce   : > { %7044 = vmatmul.mubr.bf16.vlgmr.msra.gmra.mxu0 %v5946_v30 }
 0x78e   : > { %v6046_v37 = vpop.f32.mrf.mxu0 }
 0x78f   : > { %v6047_v5 = vadd.f32 %v6046_v37, %v5963_v3 }
 0x790   : > { %v7045_v20 = vpop.f32.mrf.mxu0 }
 0x791   : > { %6052 = vst [vmem:[%s9067_s26] sm:$0x1] %v6047_v5 }
 0x792   : > { %v6049_v41 = vpop.f32.mrf.mxu0 }
 0x794   : > { %v7046_v43 = vpop.f32.mrf.mxu0 }
 0x795 PF: > { %s6963_s30 = sshll.u32 %s8689_s25, 4  ;;  %s6066_s2 = sshll.u32 %s9067_s26, 4  ;;  %s6067_s2 = int_to_ptr.vmem [resolvable:$true] %s6066_s2 }
 0x796   : > { %s6064_s17 = scalar_lea.hbm %s9623_s12, %s6963_s30  ;;  %s6054_s18 = scalar_lea.sflag [#allocation5], %s563_s13 }
 0x797   : > { %s8585_s24 = scalar_lea.vmem %s6067_s2, 16  ;;  %p9660_p9 = scmp.ne.s32.totalorder %s9644_s16, 0 }
 0x798   : > { %p8586_p5 = scmp.ne.s32.totalorder %s6067_s2, %s8585_s24  ;;  %s8724_s29 = smov [#allocation20]  }
 0x799   : > { %s8589_s15 = sshll.u32 %s8724_s29, 4  ;;  %s8590_s15 = int_to_ptr.vmem [resolvable:$false] %s8589_s15 }
 0x79a   : > { %p8587_p6 = pnand %p8586_p5, %p9660_p9  ;;  %s8591_s27 = scalar_lea.vmem %s8590_s15, 32 }
 0x79b   : > { %p8592_p13 = scmp.lt.s32.totalorder %s6067_s2, %s8590_s15  ;;  %p8593_p10 = scmp.lt.s32.totalorder %s8591_s27, %s8585_s24 }
 0x79c   : > { %p8588_p3 = pneg %p8587_p6 }
 0x79d   : > { %p8594_p7 = por %p8593_p10, %p8592_p13 }
 0x79f   : > { %p8595_p8 = pnand %p8594_p7, %p8588_p3 }
 0x7a1   : > { %8598 = shalt.err (!%p8595_p8)
}
 0x7a2   : > { %s8599_s25 = scalar_lea.hbm %s6064_s17, 16  ;;  %s8603_s20 = scalar_lea.hbm %s9623_s12, 32 }
 0x7a3   : > { %p8600_p11 = scmp.ne.s32.totalorder %s6064_s17, %s8599_s25  ;;  %p8604_p1 = scmp.lt.s32.totalorder %s6064_s17, %s9623_s12 }
 0x7a4   : > { %p8605_p2 = scmp.lt.s32.totalorder %s8603_s20, %s8599_s25 }
 0x7a5   : > { %p8601_p12 = pnand %p8600_p11, %p9660_p9 }
 0x7a6   : > { %p8606_p4 = por %p8605_p2, %p8604_p1 }
 0x7a7   : > { %p8602_p0 = pneg %p8601_p12 }
 0x7a9   : > { %p8607_p5 = pnand %p8606_p4, %p8602_p0 }
 0x7ab   : > { %8610 = shalt.err (!%p8607_p5)
}
 0x7ac   : > { %7091 = dma.vmem_to_hbm [thread:$0]  (%p9660_p9), %s6067_s2, 16, %s6064_s17, %s6054_s18  }
 0x7ad PF: > { %s9661_s5 = sld [smem:[#allocation33_spill]]  ;;  %p7148_p6 = scmp.ge.s32.totalorder %s8701_s28, 2 }
 0x7ae   : > { %s6078_s30 = sand.u32 1, %s8673_s21  }
 0x7af   : > { %s6079_s14 = scalar_lea.sflag [#allocation5], %s6078_s30 }
 0x7b3   : > { %p9662_p3 = scmp.ne.s32.totalorder %s9661_s5, 0 }
 0x7b5   : > { %p7125_p13 = pnand %p7148_p6, %p9662_p3 }
 0x7b7   : > { %p7126_p10 = pneg %p7125_p13 }
 0x7b9   : > { %8668 = dma.done.wait (%p7126_p10), %s6079_s14, 16  }
 0x7ba   : > { %8670 = vsyncadd (%p7126_p10), %s6079_s14, 4294967280  ;;  %s31_s28 = sadd.s32 1, %s8701_s28   ;;  %s9663_s23 = sld [smem:[#allocation28_spill]] }
 0x7bb   : > { %p28_p7 = scmp.ge.s32.totalorder %s31_s28, 6   ;;  %s9664_s24 = sld [smem:[#allocation34_spill]] }
 0x7bc   : > { %s9665_s16 = sld [smem:[#allocation29_spill]]  ;;  %s9669_s21 = smov %s8677_s22 }
 0x7bd   : > { %s9666_s25 = sld [smem:[#allocation30_spill]] }
 0x7be   : > { %s9667_s26 = sld [smem:[#allocation31_spill]]  ;;  %30 = sbr.rel (!%p28_p7) target bundleno = 15 (0xf), region = 152 }
 0x7bf   : > { %s9668_s27 = sld [smem:[#allocation32_spill]] }
 0x7c0   : > { %s9670_s22 = smov %s9663_s23 }
 0x7c1   : > { %s9671_s23 = smov %s9664_s24 }
 0x7c2   : > { %s9672_s24 = smov %s9665_s16 }
 0x7c3   :  { %6083 = vsyncpa [#allocation4], 1 }
 0x7c4   :  { %6085 = vsyncpa [#allocation4 + $0x1], 1 }
 0x7c5   :  { %6086 = vsyncpa [#allocation7], 1 }
 0x7c6   :  { %6087 = vsyncpa [#allocation10], 1 }
 0x7c7   :  { %6088 = vsyncpa [#allocation13], 1 }
 0x7c8   :  { %6089 = vsyncpa [#allocation16], 1 }
 0x7c9   :  { %6090 = vsyncpa [#allocation19], 1 }
 0x7ca   :  { %6091 = vsyncpa [#allocation5], 1 }
 0x7cb   :  { %6093 = vsyncpa [#allocation5 + $0x1], 1 }

</bundles_post_ra>
